<compile_context>
chip_gen: v5e
topology: v5e:2x2
jax: 0.10.0
libtpu: 0.0.40
codegen_flags: <defaults>
</compile_context>

<pallas_src>
import jax
import jax.numpy as jnp
from jax.experimental import pallas as pl
from jax.experimental.pallas import tpu as pltpu

DESCRIPTOR_LAYER_DIMENSION = 5 * 5 * 9                                  # 225
DESCRIPTOR_LAYER_WITH_META_DIMENSION = DESCRIPTOR_LAYER_DIMENSION + 1   # 226
BLOCK_DIMENSION = 200
OUTPUT_DIMENSION = 100
OUT_PAD = 128            # lane-dense padded output width (real column = 0)


def _round_up(x, m):
    return ((x + m - 1) // m) * m


def probe_renderer_kernel(lp_ref, desc_ref,
                          w_in_ref, b_in_ref,
                          wa_ref, wb_ref, bab_ref,
                          w1_ref, b1_ref, w2_ref, b2_ref, w3_ref, b3_ref,
                          out_ref):
    bf16 = jnp.bfloat16
    f32 = jnp.float32

    # Input fully-connected + ReLU.  bf16 x bf16 MXU matmul, f32 accumulation.
    out = jnp.maximum(
        jnp.dot(lp_ref[...].astype(bf16), w_in_ref[...],
                preferred_element_type=f32) + b_in_ref[...], 0.0)

    # DisneyBlocks: out = ReLU(out @ Wa_i + desc_i @ Wb_i + (ba_i + bb_i))
    n_blocks = wa_ref.shape[0]
    for i in range(n_blocks):                         # static, small trip-count
        a = jnp.dot(out.astype(bf16), wa_ref[i], preferred_element_type=f32)
        b = jnp.dot(desc_ref[i], wb_ref[i], preferred_element_type=f32)
        out = jnp.maximum(a + b + bab_ref[i], 0.0)

    # Output head: Linear->ReLU->Linear->ReLU->Linear->LeakyReLU
    h = jnp.maximum(
        jnp.dot(out.astype(bf16), w1_ref[...], preferred_element_type=f32)
        + b1_ref[...], 0.0)
    h = jnp.maximum(
        jnp.dot(h.astype(bf16), w2_ref[...], preferred_element_type=f32)
        + b2_ref[...], 0.0)
    y = (jnp.dot(h.astype(bf16), w3_ref[...], preferred_element_type=f32)
         + b3_ref[...])
    out_ref[...] = jnp.where(y >= 0.0, y, 0.01 * y)   # LeakyReLU(0.01)


def prepare_params(p):
    """Convert math-layout f32 params into the kernel layout (bf16 weights,
    padded descriptor K-dim, combined Disney bias, lane-dense output head)."""
    D = BLOCK_DIMENSION
    n_blocks, desc_dim, _ = p["wb"].shape
    desc_pad = _round_up(desc_dim, 128)               # 226 -> 256

    wb_p = jnp.zeros((n_blocks, desc_pad, D), jnp.float32)
    wb_p = wb_p.at[:, :desc_dim, :].set(p["wb"])
    w3_p = jnp.zeros((p["w3"].shape[0], OUT_PAD), jnp.float32)
    w3_p = w3_p.at[:, :1].set(p["w3"])
    b3_p = jnp.zeros((1, OUT_PAD), jnp.float32).at[:, :1].set(p["b3"])

    return {
        "w_in": p["w_in"].astype(jnp.bfloat16), "b_in": p["b_in"],
        "wa": p["wa"].astype(jnp.bfloat16),
        "wb": wb_p.astype(jnp.bfloat16),
        "bab": p["ba"] + p["bb"],                     # pre-added Disney biases
        "w1": p["w1"].astype(jnp.bfloat16), "b1": p["b1"],
        "w2": p["w2"].astype(jnp.bfloat16), "b2": p["b2"],
        "w3": w3_p.astype(jnp.bfloat16), "b3": b3_p,
    }


def probe_renderer_forward(light_probe, disney_descriptor, params, *, tb=512):
    """light_probe: (B, lp_dim) f32; disney_descriptor: (B, n_blocks, 226) f32.
    `params` is the kernel-layout dict from prepare_params()."""
    B, lp_dim = light_probe.shape
    _, n_blocks, desc_dim = disney_descriptor.shape
    desc_pad = _round_up(desc_dim, 128)

    # Batch tiling: TB a multiple of 128, batch padded to a TB multiple.
    TB = min(tb, _round_up(B, 128))
    Bp = _round_up(B, TB)
    n_tiles = pl.cdiv(Bp, TB)

    lp = jnp.zeros((Bp, lp_dim), jnp.float32).at[:B].set(light_probe)
    # (B, n_blocks, 226) -> (n_blocks, Bp, 256) bf16, lane-dense per block.
    desc = jnp.zeros((n_blocks, Bp, desc_pad), jnp.bfloat16)
    desc = desc.at[:, :B, :desc_dim].set(
        jnp.transpose(disney_descriptor, (1, 0, 2)).astype(jnp.bfloat16))

    def full(shape):
        zeros = (0,) * len(shape)
        return pl.BlockSpec(shape, lambda i, z=zeros: z)

    in_specs = [
        pl.BlockSpec((TB, lp_dim), lambda i: (i, 0)),
        pl.BlockSpec((n_blocks, TB, desc_pad), lambda i: (0, i, 0)),
        full(params["w_in"].shape), full(params["b_in"].shape),
        full(params["wa"].shape), full(params["wb"].shape),
        full(params["bab"].shape),
        full(params["w1"].shape), full(params["b1"].shape),
        full(params["w2"].shape), full(params["b2"].shape),
        full(params["w3"].shape), full(params["b3"].shape),
    ]
    out_spec = pl.BlockSpec((TB, OUT_PAD), lambda i: (i, 0))

    out_padded = pl.pallas_call(
        probe_renderer_kernel,
        out_shape=jax.ShapeDtypeStruct((Bp, OUT_PAD), jnp.float32),
        grid=(n_tiles,),
        in_specs=in_specs,
        out_specs=out_spec,
        compiler_params=pltpu.CompilerParams(
            dimension_semantics=("parallel",),
            vmem_limit_bytes=48 * 1024 * 1024),       # safe on v5e/v6e/v7x
    )(lp, desc,
      params["w_in"], params["b_in"],
      params["wa"], params["wb"], params["bab"],
      params["w1"], params["b1"], params["w2"], params["b2"],
      params["w3"], params["b3"])

    # Drop batch padding and the lane padding of the scalar output.
    return out_padded[:B, :1]


def init_params(key, lp_dim, n_blocks):
    """Math-layout f32 params: weights are (in_features, out_features)."""
    ks = jax.random.split(key, 12)
    D, O, M = BLOCK_DIMENSION, OUTPUT_DIMENSION, DESCRIPTOR_LAYER_WITH_META_DIMENSION
    n = lambda k, shape, scale: (scale * jax.random.normal(k, shape)).astype(jnp.float32)
    return {
        "w_in": n(ks[0], (lp_dim, D), 0.05), "b_in": n(ks[1], (1, D), 0.05),
        "wa": n(ks[2], (n_blocks, D, D), 0.03), "ba": n(ks[3], (n_blocks, 1, D), 0.03),
        "wb": n(ks[4], (n_blocks, M, D), 0.03), "bb": n(ks[5], (n_blocks, 1, D), 0.03),
        "w1": n(ks[6], (D, O), 0.05), "b1": n(ks[7], (1, O), 0.05),
        "w2": n(ks[8], (O, O), 0.05), "b2": n(ks[9], (1, O), 0.05),
        "w3": n(ks[10], (O, 1), 0.05), "b3": n(ks[11], (1, 1), 0.05),
    }


def reference_forward(light_probe, disney_descriptor, p):
    """f32 reference that emulates the kernel's bf16-weight / bf16-activation
    matmuls (f32 accumulation), matching PyTorch forward semantics."""
    bf = lambda x: x.astype(jnp.bfloat16).astype(jnp.float32)
    out = jnp.maximum(bf(light_probe) @ bf(p["w_in"]) + p["b_in"], 0.0)
    for i in range(p["wa"].shape[0]):
        a = bf(out) @ bf(p["wa"][i])
        b = bf(disney_descriptor[:, i, :]) @ bf(p["wb"][i])
        out = jnp.maximum(a + b + p["ba"][i] + p["bb"][i], 0.0)
    h = jnp.maximum(bf(out) @ bf(p["w1"]) + p["b1"], 0.0)
    h = jnp.maximum(bf(h) @ bf(p["w2"]) + p["b2"], 0.0)
    y = bf(h) @ bf(p["w3"]) + p["b3"]
    return jnp.where(y >= 0.0, y, 0.01 * y)


if __name__ == "__main__":
    B = 8                     # batch (small demo; kernel tiles large batches)
    LP_DIM = 64               # lightProbeDimension
    N_BLOCKS = 4              # blockCount

    key = jax.random.PRNGKey(0)
    k_lp, k_desc, k_p = jax.random.split(key, 3)
    light_probe = jax.random.normal(k_lp, (B, LP_DIM), dtype=jnp.float32)
    disney_descriptor = jax.random.normal(
        k_desc, (B, N_BLOCKS, DESCRIPTOR_LAYER_WITH_META_DIMENSION), dtype=jnp.float32)

    params_f32 = init_params(k_p, LP_DIM, N_BLOCKS)
    params = prepare_params(params_f32)

    out = probe_renderer_forward(light_probe, disney_descriptor, params)
    out = jax.block_until_ready(out)

    ref = jax.block_until_ready(
        reference_forward(light_probe, disney_descriptor, params_f32))
    assert out.shape == (B, 1)
    assert jnp.allclose(out, ref, atol=1e-2, rtol=1e-2), (
        float(jnp.max(jnp.abs(out - ref))))

    print("KERNEL_OK")
</pallas_src>

<mosaic_0001>
module attributes {stable_mosaic.version = 11 : i64} {
  func.func @probe_renderer_kernel(%arg0: i32, %arg1: memref<128x64xf32, #tpu.memory_space<vmem>>, %arg2: memref<4x128x256xbf16, #tpu.memory_space<vmem>>, %arg3: memref<64x200xbf16, #tpu.memory_space<vmem>>, %arg4: memref<1x200xf32, #tpu.memory_space<vmem>>, %arg5: memref<4x200x200xbf16, #tpu.memory_space<vmem>>, %arg6: memref<4x256x200xbf16, #tpu.memory_space<vmem>>, %arg7: memref<4x1x200xf32, #tpu.memory_space<vmem>>, %arg8: memref<200x100xbf16, #tpu.memory_space<vmem>>, %arg9: memref<1x100xf32, #tpu.memory_space<vmem>>, %arg10: memref<100x100xbf16, #tpu.memory_space<vmem>>, %arg11: memref<1x100xf32, #tpu.memory_space<vmem>>, %arg12: memref<100x128xbf16, #tpu.memory_space<vmem>>, %arg13: memref<1x128xf32, #tpu.memory_space<vmem>>, %arg14: memref<128x128xf32, #tpu.memory_space<vmem>>) attributes {dimension_semantics = [#tpu.dimension_semantics<parallel>], iteration_bounds = array<i64: 1>, scalar_prefetch = 0 : i64, scratch_operands = 0 : i64, tpu.core_type = #tpu.core_type<tc>, window_params = [{transform_indices = @transform_0, window_bounds = array<i64: 128, 64>}, {transform_indices = @transform_1, window_bounds = array<i64: 4, 128, 256>}, {pipeline_mode = #tpu.pipeline_mode<synchronous>, transform_indices = @transform_2, window_bounds = array<i64: 64, 200>}, {pipeline_mode = #tpu.pipeline_mode<synchronous>, transform_indices = @transform_3, window_bounds = array<i64: 1, 200>}, {pipeline_mode = #tpu.pipeline_mode<synchronous>, transform_indices = @transform_4, window_bounds = array<i64: 4, 200, 200>}, {pipeline_mode = #tpu.pipeline_mode<synchronous>, transform_indices = @transform_5, window_bounds = array<i64: 4, 256, 200>}, {pipeline_mode = #tpu.pipeline_mode<synchronous>, transform_indices = @transform_6, window_bounds = array<i64: 4, 1, 200>}, {pipeline_mode = #tpu.pipeline_mode<synchronous>, transform_indices = @transform_7, window_bounds = array<i64: 200, 100>}, {pipeline_mode = #tpu.pipeline_mode<synchronous>, transform_indices = @transform_8, window_bounds = array<i64: 1, 100>}, {pipeline_mode = #tpu.pipeline_mode<synchronous>, transform_indices = @transform_9, window_bounds = array<i64: 100, 100>}, {pipeline_mode = #tpu.pipeline_mode<synchronous>, transform_indices = @transform_10, window_bounds = array<i64: 1, 100>}, {pipeline_mode = #tpu.pipeline_mode<synchronous>, transform_indices = @transform_11, window_bounds = array<i64: 100, 128>}, {pipeline_mode = #tpu.pipeline_mode<synchronous>, transform_indices = @transform_12, window_bounds = array<i64: 1, 128>}, {transform_indices = @transform_13, window_bounds = array<i64: 128, 128>}]} {
    %c0 = arith.constant 0 : index
    %c0_0 = arith.constant 0 : index
    %0 = vector.load %arg1[%c0, %c0_0] : memref<128x64xf32, #tpu.memory_space<vmem>>, vector<128x64xf32>
    %1 = arith.truncf %0 : vector<128x64xf32> to vector<128x64xbf16>
    %c0_1 = arith.constant 0 : index
    %c0_2 = arith.constant 0 : index
    %2 = vector.load %arg3[%c0_1, %c0_2] : memref<64x200xbf16, #tpu.memory_space<vmem>>, vector<64x200xbf16>
    %cst = arith.constant dense<0.000000e+00> : vector<128x200xf32>
    %3 = tpu.matmul %1, %2, %cst {dimension_numbers = #tpu.dot_dimension_numbers<[1], [0], [0], [1], [0, 0, 1, 1], [], []>} : vector<128x64xbf16>, vector<64x200xbf16>, vector<128x200xf32> -> vector<128x200xf32>
    %c0_3 = arith.constant 0 : index
    %c0_4 = arith.constant 0 : index
    %4 = vector.load %arg4[%c0_3, %c0_4] : memref<1x200xf32, #tpu.memory_space<vmem>>, vector<1x200xf32>
    %5 = vector.broadcast %4 : vector<1x200xf32> to vector<128x200xf32>
    %6 = arith.addf %3, %5 : vector<128x200xf32>
    %cst_5 = arith.constant 0.000000e+00 : f32
    %7 = vector.broadcast %cst_5 : f32 to vector<128x200xf32>
    %8 = arith.maximumf %6, %7 : vector<128x200xf32>
    %9 = arith.truncf %8 : vector<128x200xf32> to vector<128x200xbf16>
    %c0_6 = arith.constant 0 : index
    %c0_7 = arith.constant 0 : index
    %c0_8 = arith.constant 0 : index
    %10 = vector.load %arg5[%c0_6, %c0_7, %c0_8] : memref<4x200x200xbf16, #tpu.memory_space<vmem>>, vector<1x200x200xbf16>
    %11 = vector.shape_cast %10 : vector<1x200x200xbf16> to vector<200x200xbf16>
    %cst_9 = arith.constant dense<0.000000e+00> : vector<128x200xf32>
    %12 = tpu.matmul %9, %11, %cst_9 {dimension_numbers = #tpu.dot_dimension_numbers<[1], [0], [0], [1], [0, 0, 1, 1], [], []>} : vector<128x200xbf16>, vector<200x200xbf16>, vector<128x200xf32> -> vector<128x200xf32>
    %c0_10 = arith.constant 0 : index
    %c0_11 = arith.constant 0 : index
    %c0_12 = arith.constant 0 : index
    %13 = vector.load %arg2[%c0_10, %c0_11, %c0_12] : memref<4x128x256xbf16, #tpu.memory_space<vmem>>, vector<1x128x256xbf16>
    %14 = vector.shape_cast %13 : vector<1x128x256xbf16> to vector<128x256xbf16>
    %c0_13 = arith.constant 0 : index
    %c0_14 = arith.constant 0 : index
    %c0_15 = arith.constant 0 : index
    %15 = vector.load %arg6[%c0_13, %c0_14, %c0_15] : memref<4x256x200xbf16, #tpu.memory_space<vmem>>, vector<1x256x200xbf16>
    %16 = vector.shape_cast %15 : vector<1x256x200xbf16> to vector<256x200xbf16>
    %cst_16 = arith.constant dense<0.000000e+00> : vector<128x200xf32>
    %17 = tpu.matmul %14, %16, %cst_16 {dimension_numbers = #tpu.dot_dimension_numbers<[1], [0], [0], [1], [0, 0, 1, 1], [], []>} : vector<128x256xbf16>, vector<256x200xbf16>, vector<128x200xf32> -> vector<128x200xf32>
    %18 = arith.addf %12, %17 : vector<128x200xf32>
    %c0_17 = arith.constant 0 : index
    %c0_18 = arith.constant 0 : index
    %c0_19 = arith.constant 0 : index
    %19 = vector.load %arg7[%c0_17, %c0_18, %c0_19] : memref<4x1x200xf32, #tpu.memory_space<vmem>>, vector<1x1x200xf32>
    %20 = vector.shape_cast %19 : vector<1x1x200xf32> to vector<1x200xf32>
    %21 = vector.broadcast %20 : vector<1x200xf32> to vector<128x200xf32>
    %22 = arith.addf %18, %21 : vector<128x200xf32>
    %cst_20 = arith.constant 0.000000e+00 : f32
    %23 = vector.broadcast %cst_20 : f32 to vector<128x200xf32>
    %24 = arith.maximumf %22, %23 : vector<128x200xf32>
    %25 = arith.truncf %24 : vector<128x200xf32> to vector<128x200xbf16>
    %c1 = arith.constant 1 : index
    %c0_21 = arith.constant 0 : index
    %c0_22 = arith.constant 0 : index
    %26 = vector.load %arg5[%c1, %c0_21, %c0_22] : memref<4x200x200xbf16, #tpu.memory_space<vmem>>, vector<1x200x200xbf16>
    %27 = vector.shape_cast %26 : vector<1x200x200xbf16> to vector<200x200xbf16>
    %cst_23 = arith.constant dense<0.000000e+00> : vector<128x200xf32>
    %28 = tpu.matmul %25, %27, %cst_23 {dimension_numbers = #tpu.dot_dimension_numbers<[1], [0], [0], [1], [0, 0, 1, 1], [], []>} : vector<128x200xbf16>, vector<200x200xbf16>, vector<128x200xf32> -> vector<128x200xf32>
    %c1_24 = arith.constant 1 : index
    %c0_25 = arith.constant 0 : index
    %c0_26 = arith.constant 0 : index
    %29 = vector.load %arg2[%c1_24, %c0_25, %c0_26] : memref<4x128x256xbf16, #tpu.memory_space<vmem>>, vector<1x128x256xbf16>
    %30 = vector.shape_cast %29 : vector<1x128x256xbf16> to vector<128x256xbf16>
    %c1_27 = arith.constant 1 : index
    %c0_28 = arith.constant 0 : index
    %c0_29 = arith.constant 0 : index
    %31 = vector.load %arg6[%c1_27, %c0_28, %c0_29] : memref<4x256x200xbf16, #tpu.memory_space<vmem>>, vector<1x256x200xbf16>
    %32 = vector.shape_cast %31 : vector<1x256x200xbf16> to vector<256x200xbf16>
    %cst_30 = arith.constant dense<0.000000e+00> : vector<128x200xf32>
    %33 = tpu.matmul %30, %32, %cst_30 {dimension_numbers = #tpu.dot_dimension_numbers<[1], [0], [0], [1], [0, 0, 1, 1], [], []>} : vector<128x256xbf16>, vector<256x200xbf16>, vector<128x200xf32> -> vector<128x200xf32>
    %34 = arith.addf %28, %33 : vector<128x200xf32>
    %c1_31 = arith.constant 1 : index
    %c0_32 = arith.constant 0 : index
    %c0_33 = arith.constant 0 : index
    %35 = vector.load %arg7[%c1_31, %c0_32, %c0_33] : memref<4x1x200xf32, #tpu.memory_space<vmem>>, vector<1x1x200xf32>
    %36 = vector.shape_cast %35 : vector<1x1x200xf32> to vector<1x200xf32>
    %37 = vector.broadcast %36 : vector<1x200xf32> to vector<128x200xf32>
    %38 = arith.addf %34, %37 : vector<128x200xf32>
    %cst_34 = arith.constant 0.000000e+00 : f32
    %39 = vector.broadcast %cst_34 : f32 to vector<128x200xf32>
    %40 = arith.maximumf %38, %39 : vector<128x200xf32>
    %41 = arith.truncf %40 : vector<128x200xf32> to vector<128x200xbf16>
    %c2 = arith.constant 2 : index
    %c0_35 = arith.constant 0 : index
    %c0_36 = arith.constant 0 : index
    %42 = vector.load %arg5[%c2, %c0_35, %c0_36] : memref<4x200x200xbf16, #tpu.memory_space<vmem>>, vector<1x200x200xbf16>
    %43 = vector.shape_cast %42 : vector<1x200x200xbf16> to vector<200x200xbf16>
    %cst_37 = arith.constant dense<0.000000e+00> : vector<128x200xf32>
    %44 = tpu.matmul %41, %43, %cst_37 {dimension_numbers = #tpu.dot_dimension_numbers<[1], [0], [0], [1], [0, 0, 1, 1], [], []>} : vector<128x200xbf16>, vector<200x200xbf16>, vector<128x200xf32> -> vector<128x200xf32>
    %c2_38 = arith.constant 2 : index
    %c0_39 = arith.constant 0 : index
    %c0_40 = arith.constant 0 : index
    %45 = vector.load %arg2[%c2_38, %c0_39, %c0_40] : memref<4x128x256xbf16, #tpu.memory_space<vmem>>, vector<1x128x256xbf16>
    %46 = vector.shape_cast %45 : vector<1x128x256xbf16> to vector<128x256xbf16>
    %c2_41 = arith.constant 2 : index
    %c0_42 = arith.constant 0 : index
    %c0_43 = arith.constant 0 : index
    %47 = vector.load %arg6[%c2_41, %c0_42, %c0_43] : memref<4x256x200xbf16, #tpu.memory_space<vmem>>, vector<1x256x200xbf16>
    %48 = vector.shape_cast %47 : vector<1x256x200xbf16> to vector<256x200xbf16>
    %cst_44 = arith.constant dense<0.000000e+00> : vector<128x200xf32>
    %49 = tpu.matmul %46, %48, %cst_44 {dimension_numbers = #tpu.dot_dimension_numbers<[1], [0], [0], [1], [0, 0, 1, 1], [], []>} : vector<128x256xbf16>, vector<256x200xbf16>, vector<128x200xf32> -> vector<128x200xf32>
    %50 = arith.addf %44, %49 : vector<128x200xf32>
    %c2_45 = arith.constant 2 : index
    %c0_46 = arith.constant 0 : index
    %c0_47 = arith.constant 0 : index
    %51 = vector.load %arg7[%c2_45, %c0_46, %c0_47] : memref<4x1x200xf32, #tpu.memory_space<vmem>>, vector<1x1x200xf32>
    %52 = vector.shape_cast %51 : vector<1x1x200xf32> to vector<1x200xf32>
    %53 = vector.broadcast %52 : vector<1x200xf32> to vector<128x200xf32>
    %54 = arith.addf %50, %53 : vector<128x200xf32>
    %cst_48 = arith.constant 0.000000e+00 : f32
    %55 = vector.broadcast %cst_48 : f32 to vector<128x200xf32>
    %56 = arith.maximumf %54, %55 : vector<128x200xf32>
    %57 = arith.truncf %56 : vector<128x200xf32> to vector<128x200xbf16>
    %c3 = arith.constant 3 : index
    %c0_49 = arith.constant 0 : index
    %c0_50 = arith.constant 0 : index
    %58 = vector.load %arg5[%c3, %c0_49, %c0_50] : memref<4x200x200xbf16, #tpu.memory_space<vmem>>, vector<1x200x200xbf16>
    %59 = vector.shape_cast %58 : vector<1x200x200xbf16> to vector<200x200xbf16>
    %cst_51 = arith.constant dense<0.000000e+00> : vector<128x200xf32>
    %60 = tpu.matmul %57, %59, %cst_51 {dimension_numbers = #tpu.dot_dimension_numbers<[1], [0], [0], [1], [0, 0, 1, 1], [], []>} : vector<128x200xbf16>, vector<200x200xbf16>, vector<128x200xf32> -> vector<128x200xf32>
    %c3_52 = arith.constant 3 : index
    %c0_53 = arith.constant 0 : index
    %c0_54 = arith.constant 0 : index
    %61 = vector.load %arg2[%c3_52, %c0_53, %c0_54] : memref<4x128x256xbf16, #tpu.memory_space<vmem>>, vector<1x128x256xbf16>
    %62 = vector.shape_cast %61 : vector<1x128x256xbf16> to vector<128x256xbf16>
    %c3_55 = arith.constant 3 : index
    %c0_56 = arith.constant 0 : index
    %c0_57 = arith.constant 0 : index
    %63 = vector.load %arg6[%c3_55, %c0_56, %c0_57] : memref<4x256x200xbf16, #tpu.memory_space<vmem>>, vector<1x256x200xbf16>
    %64 = vector.shape_cast %63 : vector<1x256x200xbf16> to vector<256x200xbf16>
    %cst_58 = arith.constant dense<0.000000e+00> : vector<128x200xf32>
    %65 = tpu.matmul %62, %64, %cst_58 {dimension_numbers = #tpu.dot_dimension_numbers<[1], [0], [0], [1], [0, 0, 1, 1], [], []>} : vector<128x256xbf16>, vector<256x200xbf16>, vector<128x200xf32> -> vector<128x200xf32>
    %66 = arith.addf %60, %65 : vector<128x200xf32>
    %c3_59 = arith.constant 3 : index
    %c0_60 = arith.constant 0 : index
    %c0_61 = arith.constant 0 : index
    %67 = vector.load %arg7[%c3_59, %c0_60, %c0_61] : memref<4x1x200xf32, #tpu.memory_space<vmem>>, vector<1x1x200xf32>
    %68 = vector.shape_cast %67 : vector<1x1x200xf32> to vector<1x200xf32>
    %69 = vector.broadcast %68 : vector<1x200xf32> to vector<128x200xf32>
    %70 = arith.addf %66, %69 : vector<128x200xf32>
    %cst_62 = arith.constant 0.000000e+00 : f32
    %71 = vector.broadcast %cst_62 : f32 to vector<128x200xf32>
    %72 = arith.maximumf %70, %71 : vector<128x200xf32>
    %73 = arith.truncf %72 : vector<128x200xf32> to vector<128x200xbf16>
    %c0_63 = arith.constant 0 : index
    %c0_64 = arith.constant 0 : index
    %74 = vector.load %arg8[%c0_63, %c0_64] : memref<200x100xbf16, #tpu.memory_space<vmem>>, vector<200x100xbf16>
    %cst_65 = arith.constant dense<0.000000e+00> : vector<128x100xf32>
    %75 = tpu.matmul %73, %74, %cst_65 {dimension_numbers = #tpu.dot_dimension_numbers<[1], [0], [0], [1], [0, 0, 1, 1], [], []>} : vector<128x200xbf16>, vector<200x100xbf16>, vector<128x100xf32> -> vector<128x100xf32>
    %c0_66 = arith.constant 0 : index
    %c0_67 = arith.constant 0 : index
    %76 = vector.load %arg9[%c0_66, %c0_67] : memref<1x100xf32, #tpu.memory_space<vmem>>, vector<1x100xf32>
    %77 = vector.broadcast %76 : vector<1x100xf32> to vector<128x100xf32>
    %78 = arith.addf %75, %77 : vector<128x100xf32>
    %cst_68 = arith.constant 0.000000e+00 : f32
    %79 = vector.broadcast %cst_68 : f32 to vector<128x100xf32>
    %80 = arith.maximumf %78, %79 : vector<128x100xf32>
    %81 = arith.truncf %80 : vector<128x100xf32> to vector<128x100xbf16>
    %c0_69 = arith.constant 0 : index
    %c0_70 = arith.constant 0 : index
    %82 = vector.load %arg10[%c0_69, %c0_70] : memref<100x100xbf16, #tpu.memory_space<vmem>>, vector<100x100xbf16>
    %cst_71 = arith.constant dense<0.000000e+00> : vector<128x100xf32>
    %83 = tpu.matmul %81, %82, %cst_71 {dimension_numbers = #tpu.dot_dimension_numbers<[1], [0], [0], [1], [0, 0, 1, 1], [], []>} : vector<128x100xbf16>, vector<100x100xbf16>, vector<128x100xf32> -> vector<128x100xf32>
    %c0_72 = arith.constant 0 : index
    %c0_73 = arith.constant 0 : index
    %84 = vector.load %arg11[%c0_72, %c0_73] : memref<1x100xf32, #tpu.memory_space<vmem>>, vector<1x100xf32>
    %85 = vector.broadcast %84 : vector<1x100xf32> to vector<128x100xf32>
    %86 = arith.addf %83, %85 : vector<128x100xf32>
    %cst_74 = arith.constant 0.000000e+00 : f32
    %87 = vector.broadcast %cst_74 : f32 to vector<128x100xf32>
    %88 = arith.maximumf %86, %87 : vector<128x100xf32>
    %89 = arith.truncf %88 : vector<128x100xf32> to vector<128x100xbf16>
    %c0_75 = arith.constant 0 : index
    %c0_76 = arith.constant 0 : index
    %90 = vector.load %arg12[%c0_75, %c0_76] : memref<100x128xbf16, #tpu.memory_space<vmem>>, vector<100x128xbf16>
    %cst_77 = arith.constant dense<0.000000e+00> : vector<128x128xf32>
    %91 = tpu.matmul %89, %90, %cst_77 {dimension_numbers = #tpu.dot_dimension_numbers<[1], [0], [0], [1], [0, 0, 1, 1], [], []>} : vector<128x100xbf16>, vector<100x128xbf16>, vector<128x128xf32> -> vector<128x128xf32>
    %c0_78 = arith.constant 0 : index
    %c0_79 = arith.constant 0 : index
    %92 = vector.load %arg13[%c0_78, %c0_79] : memref<1x128xf32, #tpu.memory_space<vmem>>, vector<1x128xf32>
    %93 = vector.broadcast %92 : vector<1x128xf32> to vector<128x128xf32>
    %94 = arith.addf %91, %93 : vector<128x128xf32>
    %cst_80 = arith.constant 0.000000e+00 : f32
    %95 = vector.broadcast %cst_80 : f32 to vector<128x128xf32>
    %96 = arith.cmpf oge, %94, %95 : vector<128x128xf32>
    %cst_81 = arith.constant 0.00999999977 : f32
    %97 = vector.broadcast %cst_81 : f32 to vector<128x128xf32>
    %98 = arith.mulf %97, %94 : vector<128x128xf32>
    %99 = arith.select %96, %94, %98 : vector<128x128xi1>, vector<128x128xf32>
    %c0_82 = arith.constant 0 : index
    %c0_83 = arith.constant 0 : index
    %100 = vector.load %arg14[%c0_82, %c0_83] : memref<128x128xf32, #tpu.memory_space<vmem>>, vector<128x128xf32>
    tpu.vector_store %arg14[%c0_82, %c0_83], %99 {strides = array<i32>} : memref<128x128xf32, #tpu.memory_space<vmem>>, vector<128x128xf32>,
    return
  }
  func.func @transform_0(%arg0: i32) -> (i32, i32) {
    %c0_i32 = arith.constant 0 : i32
    %c0_i32_0 = arith.constant 0 : i32
    return %arg0, %c0_i32 : i32, i32
  }
  func.func @transform_1(%arg0: i32) -> (i32, i32, i32) {
    %c0_i32 = arith.constant 0 : i32
    %c0_i32_0 = arith.constant 0 : i32
    %c0_i32_1 = arith.constant 0 : i32
    return %c0_i32, %arg0, %c0_i32_0 : i32, i32, i32
  }
  func.func @transform_2(%arg0: i32) -> (i32, i32) {
    %c0_i32 = arith.constant 0 : i32
    %c0_i32_0 = arith.constant 0 : i32
    %c0_i32_1 = arith.constant 0 : i32
    return %c0_i32, %c0_i32_0 : i32, i32
  }
  func.func @transform_3(%arg0: i32) -> (i32, i32) {
    %c0_i32 = arith.constant 0 : i32
    %c0_i32_0 = arith.constant 0 : i32
    %c0_i32_1 = arith.constant 0 : i32
    return %c0_i32, %c0_i32_0 : i32, i32
  }
  func.func @transform_4(%arg0: i32) -> (i32, i32, i32) {
    %c0_i32 = arith.constant 0 : i32
    %c0_i32_0 = arith.constant 0 : i32
    %c0_i32_1 = arith.constant 0 : i32
    %c0_i32_2 = arith.constant 0 : i32
    return %c0_i32, %c0_i32_0, %c0_i32_1 : i32, i32, i32
  }
  func.func @transform_5(%arg0: i32) -> (i32, i32, i32) {
    %c0_i32 = arith.constant 0 : i32
    %c0_i32_0 = arith.constant 0 : i32
    %c0_i32_1 = arith.constant 0 : i32
    %c0_i32_2 = arith.constant 0 : i32
    return %c0_i32, %c0_i32_0, %c0_i32_1 : i32, i32, i32
  }
  func.func @transform_6(%arg0: i32) -> (i32, i32, i32) {
    %c0_i32 = arith.constant 0 : i32
    %c0_i32_0 = arith.constant 0 : i32
    %c0_i32_1 = arith.constant 0 : i32
    %c0_i32_2 = arith.constant 0 : i32
    return %c0_i32, %c0_i32_0, %c0_i32_1 : i32, i32, i32
  }
  func.func @transform_7(%arg0: i32) -> (i32, i32) {
    %c0_i32 = arith.constant 0 : i32
    %c0_i32_0 = arith.constant 0 : i32
    %c0_i32_1 = arith.constant 0 : i32
    return %c0_i32, %c0_i32_0 : i32, i32
  }
  func.func @transform_8(%arg0: i32) -> (i32, i32) {
    %c0_i32 = arith.constant 0 : i32
    %c0_i32_0 = arith.constant 0 : i32
    %c0_i32_1 = arith.constant 0 : i32
    return %c0_i32, %c0_i32_0 : i32, i32
  }
  func.func @transform_9(%arg0: i32) -> (i32, i32) {
    %c0_i32 = arith.constant 0 : i32
    %c0_i32_0 = arith.constant 0 : i32
    %c0_i32_1 = arith.constant 0 : i32
    return %c0_i32, %c0_i32_0 : i32, i32
  }
  func.func @transform_10(%arg0: i32) -> (i32, i32) {
    %c0_i32 = arith.constant 0 : i32
    %c0_i32_0 = arith.constant 0 : i32
    %c0_i32_1 = arith.constant 0 : i32
    return %c0_i32, %c0_i32_0 : i32, i32
  }
  func.func @transform_11(%arg0: i32) -> (i32, i32) {
    %c0_i32 = arith.constant 0 : i32
    %c0_i32_0 = arith.constant 0 : i32
    %c0_i32_1 = arith.constant 0 : i32
    return %c0_i32, %c0_i32_0 : i32, i32
  }
  func.func @transform_12(%arg0: i32) -> (i32, i32) {
    %c0_i32 = arith.constant 0 : i32
    %c0_i32_0 = arith.constant 0 : i32
    %c0_i32_1 = arith.constant 0 : i32
    return %c0_i32, %c0_i32_0 : i32, i32
  }
  func.func @transform_13(%arg0: i32) -> (i32, i32) {
    %c0_i32 = arith.constant 0 : i32
    %c0_i32_0 = arith.constant 0 : i32
    return %arg0, %c0_i32 : i32, i32
  }
}

</mosaic_0001>

<bundles_post_ra>
// kernel: tpu_custom_call.1
= control target key start
LH: loop header
LB: loop body
LE: loop exit
PB: predicated region body
PF: predicated region fallthrough
CT: control target
= control target key end

     0   :  { %vm124_vm0 = vcmask 523264   ;;  %s9874_s0 = inlined_call_operand.vmem [shape: f32[128,64], index: 0, kind: input, shape index: {}]   ;;  %s9875_s1 = inlined_call_operand.vmem [shape: bf16[4,128,256], index: 1, kind: input, shape index: {}]   ;;  %s9876_s2 = inlined_call_operand.vmem [shape: bf16[64,200], index: 2, kind: input, shape index: {}]   ;;  %s9877_s3 = inlined_call_operand.vmem [shape: f32[1,200], index: 3, kind: input, shape index: {}]   ;;  %s9878_s4 = inlined_call_operand.vmem [shape: bf16[4,200,200], index: 4, kind: input, shape index: {}]   ;;  %s9879_s5 = inlined_call_operand.vmem [shape: bf16[4,256,200], index: 5, kind: input, shape index: {}]   ;;  %s9880_s6 = inlined_call_operand.vmem [shape: f32[4,1,200], index: 6, kind: input, shape index: {}]   ;;  %s9881_s7 = inlined_call_operand.vmem [shape: bf16[200,100], index: 7, kind: input, shape index: {}]   ;;  %s9882_s8 = inlined_call_operand.vmem [shape: f32[1,100], index: 8, kind: input, shape index: {}]   ;;  %s9883_s9 = inlined_call_operand.vmem [shape: bf16[100,100], index: 9, kind: input, shape index: {}]   ;;  %s9884_s10 = inlined_call_operand.vmem [shape: f32[1,100], index: 10, kind: input, shape index: {}]   ;;  %s9885_s11 = inlined_call_operand.vmem [shape: bf16[100,128], index: 11, kind: input, shape index: {}]   ;;  %s9886_s12 = inlined_call_operand.vmem [shape: f32[1,128], index: 12, kind: input, shape index: {}]   ;;  %s9887_s13 = inlined_call_operand.hbm [shape: f32[128,128], index: 13, kind: output, shape index: {}]  }
   0x1   :  { %v4744_v0 = vld [vmem:[%s9876_s2 + $0x30] sm:$0xf]  ;;  %v6331_v1 = vld [vmem:[%s9876_s2 + $0x34] sm:$0xf0]  ;;  %v6330_v2 = vld [vmem:[%s9876_s2 + $0x34] sm:$0xf] }
   0x2   :  { %v4745_v3 = vor.u32 %v6331_v1, %v4744_v0  ;;  %v4746_v4 = vld [vmem:[%s9876_s2 + $0x38] sm:$0xf0]  ;;  %v4736_v5 = vld [vmem:[%s9876_s2 + $0x20] sm:$0xf]  ;;  %v6329_v6 = vld [vmem:[%s9876_s2 + $0x24] sm:$0xf0] }
   0x3   :  { %v4749_v7 = vor.u32 %v6330_v2, %v4746_v4  ;;  %v6328_v8 = vld [vmem:[%s9876_s2 + $0x24] sm:$0xf]  ;;  %v4738_v9 = vld [vmem:[%s9876_s2 + $0x28] sm:$0xf0]  ;;  %v4737_v10 = vor.u32 %v6329_v6, %v4736_v5  ;;  %v4728_v12 = vld [vmem:[%s9876_s2 + $0x10] sm:$0xf] }
   0x4   :  { %153 = vmatpush.bf16.msra.mxu0 %v4745_v3  ;;  %6644 = vmatpush.bf16.msra.mxu2 %v4745_v3  ;;  %v4741_v11 = vor.u32 %v6328_v8, %v4738_v9  ;;  %v6327_v13 = vld [vmem:[%s9876_s2 + $0x14] sm:$0xf0]  ;;  %v6326_v14 = vld [vmem:[%s9876_s2 + $0x14] sm:$0xf]  ;;  %v4730_v15 = vld [vmem:[%s9876_s2 + $0x18] sm:$0xf0] }
   0x5   :  { %202 = vmatpush.bf16.msra.mxu1 %v4749_v7  ;;  %6648 = vmatpush.bf16.msra.mxu3 %v4749_v7  ;;  %v4729_v16 = vor.u32 %v6327_v13, %v4728_v12  ;;  %v4720_v17 = vld [vmem:[%s9876_s2] sm:$0xf]  ;;  %v4733_v18 = vor.u32 %v6326_v14, %v4730_v15  ;;  %v6325_v19 = vld [vmem:[%s9876_s2 + $0x4] sm:$0xf0]  ;;  %v6324_v20 = vld [vmem:[%s9876_s2 + $0x4] sm:$0xf] }
   0x6   :  { %v4722_v21 = vld [vmem:[%s9876_s2 + $0x8] sm:$0xf0]  ;;  %v46_v22 = vld [vmem:[%s9874_s0] sm:$0xff]  ;;  %v6386_v24 = vld [vmem:[%s9879_s5 + $0x74] sm:$0xf]  ;;  %v4721_v28 = vor.u32 %v6325_v19, %v4720_v17 }
   0x7   :  { %v47_v23 = vld [vmem:[%s9874_s0 + $0x8] sm:$0xff]  ;;  %v4890_v25 = vld [vmem:[%s9879_s5 + $0x78] sm:$0xf0]  ;;  %v4952_v26 = vld [vmem:[%s9879_s5 + $0xf0] sm:$0xf]  ;;  %v4725_v32 = vor.u32 %v6324_v20, %v4722_v21 }
   0x8   :  { %154 = vmatpush.bf16.msra.mxu0 %v4737_v10  ;;  %6645 = vmatpush.bf16.msra.mxu2 %v4737_v10  ;;  %v6403_v27 = vld [vmem:[%s9879_s5 + $0xf4] sm:$0xf0]  ;;  %v56_v29 = vld [vmem:[%s9874_s0 + $0x50] sm:$0xff]  ;;  %v54_v31 = vld [vmem:[%s9874_s0 + $0x40] sm:$0xff]  ;;  %v4893_v36 = vor.u32 %v6386_v24, %v4890_v25  ;;  %v62_v41 = vpack.c.bf16 %v47_v23, %v46_v22 }
   0x9   :  { %203 = vmatpush.bf16.msra.mxu1 %v4741_v11  ;;  %6649 = vmatpush.bf16.msra.mxu3 %v4741_v11  ;;  %v57_v30 = vld [vmem:[%s9874_s0 + $0x58] sm:$0xff]  ;;  %v55_v33 = vld [vmem:[%s9874_s0 + $0x48] sm:$0xff]  ;;  %v6384_v34 = vld [vmem:[%s9879_s5 + $0x64] sm:$0xf]  ;;  %v4953_v37 = vor.u32 %v6403_v27, %v4952_v26 }
   0xa   :  { %v4888_v35 = vld [vmem:[%s9879_s5 + $0x70] sm:$0xf]  ;;  %v6387_v38 = vld [vmem:[%s9879_s5 + $0x74] sm:$0xf0]  ;;  %v6402_v39 = vld [vmem:[%s9879_s5 + $0xf4] sm:$0xf]  ;;  %v6857_v42 = vpack.c.bf16 %v57_v30, %v56_v29  ;;  %v6868_v46 = vpack.c.bf16 %v55_v33, %v54_v31 }
   0xb   :  { %v4954_v40 = vld [vmem:[%s9879_s5 + $0xf8] sm:$0xf0]  ;;  %v4882_v43 = vld [vmem:[%s9879_s5 + $0x68] sm:$0xf0]  ;;  %v4944_v44 = vld [vmem:[%s9879_s5 + $0xe0] sm:$0xf]  ;;  %v4889_v47 = vor.u32 %v6387_v38, %v4888_v35 }
   0xc   :  { %155 = vmatpush.bf16.msra.mxu0 %v4729_v16  ;;  %6646 = vmatpush.bf16.msra.mxu2 %v4729_v16  ;;  %v6401_v45 = vld [vmem:[%s9879_s5 + $0xe4] sm:$0xf0]  ;;  %v4957_v48 = vor.u32 %v6402_v39, %v4954_v40  ;;  %v6382_v49 = vld [vmem:[%s9879_s5 + $0x54] sm:$0xf]  ;;  %v4880_v50 = vld [vmem:[%s9879_s5 + $0x60] sm:$0xf]  ;;  %v4885_v51 = vor.u32 %v6384_v34, %v4882_v43 }
   0xd   :  { %204 = vmatpush.bf16.msra.mxu1 %v4733_v18  ;;  %6650 = vmatpush.bf16.msra.mxu3 %v4733_v18  ;;  %v4945_v52 = vor.u32 %v6401_v45, %v4944_v44  ;;  %v6385_v53 = vld [vmem:[%s9879_s5 + $0x64] sm:$0xf0]  ;;  %v6400_v54 = vld [vmem:[%s9879_s5 + $0xe4] sm:$0xf]  ;;  %v4946_v55 = vld [vmem:[%s9879_s5 + $0xe8] sm:$0xf0] }
   0xe   :  { %v4874_v56 = vld [vmem:[%s9879_s5 + $0x58] sm:$0xf0]  ;;  %v4936_v57 = vld [vmem:[%s9879_s5 + $0xd0] sm:$0xf]  ;;  %v6399_v58 = vld [vmem:[%s9879_s5 + $0xd4] sm:$0xf0]  ;;  %v4881_v59 = vor.u32 %v6385_v53, %v4880_v50  ;;  %v4949_v62 = vor.u32 %v6400_v54, %v4946_v55 }
   0xf   :  { %v4872_v60 = vld [vmem:[%s9879_s5 + $0x50] sm:$0xf]  ;;  %v6383_v61 = vld [vmem:[%s9879_s5 + $0x54] sm:$0xf0]  ;;  %v4877_v63 = vor.u32 %v6382_v49, %v4874_v56  ;;  %v4937_v0 = vor.u32 %v6399_v58, %v4936_v57  ;;  %v6380_v1 = vld [vmem:[%s9879_s5 + $0x44] sm:$0xf] }
  0x10   :  { %156 = vmatpush.bf16.msra.mxu0 %v4721_v28  ;;  %6647 = vmatpush.bf16.msra.mxu2 %v4721_v28  ;;  %v6398_v2 = vld [vmem:[%s9879_s5 + $0xd4] sm:$0xf]  ;;  %v4938_v3 = vld [vmem:[%s9879_s5 + $0xd8] sm:$0xf0]  ;;  %v4866_v4 = vld [vmem:[%s9879_s5 + $0x48] sm:$0xf0]  ;;  %v4873_v9 = vor.u32 %v6383_v61, %v4872_v60 }
  0x11   :  { %205 = vmatpush.bf16.msra.mxu1 %v4725_v32  ;;  %6651 = vmatpush.bf16.msra.mxu3 %v4725_v32  ;;  %v4928_v5 = vld [vmem:[%s9879_s5 + $0xc0] sm:$0xf]  ;;  %v6397_v6 = vld [vmem:[%s9879_s5 + $0xc4] sm:$0xf0]  ;;  %v4941_v10 = vor.u32 %v6398_v2, %v4938_v3  ;;  %v6378_v11 = vld [vmem:[%s9879_s5 + $0x34] sm:$0xf]  ;;  %v4869_v16 = vor.u32 %v6380_v1, %v4866_v4 }
  0x12   :  { %v4864_v7 = vld [vmem:[%s9879_s5 + $0x40] sm:$0xf]  ;;  %v6381_v8 = vld [vmem:[%s9879_s5 + $0x44] sm:$0xf0]  ;;  %v4858_v12 = vld [vmem:[%s9879_s5 + $0x38] sm:$0xf0]  ;;  %v4929_v17 = vor.u32 %v6397_v6, %v4928_v5 }
  0x13   :  { %4750 = vmatmul.msk.bf16.vlgmr.msra.gmra.mxu0 %vm124_vm0, %v62_v41  ;;  %4755 = vmatmul.msk.bf16.vlgmr.msra.gmra.mxu2 %vm124_vm0, %v6857_v42  ;;  %v4920_v13 = vld [vmem:[%s9879_s5 + $0xb0] sm:$0xf]  ;;  %v6396_v14 = vld [vmem:[%s9879_s5 + $0xc4] sm:$0xf]  ;;  %v4930_v18 = vld [vmem:[%s9879_s5 + $0xc8] sm:$0xf0] }
  0x14   :  { %706 = vmatpush.bf16.msrb.mxu0 %v4893_v36  ;;  %4758 = vmatmul.msk.bf16.vlgmr.msra.gmra.mxu1 %vm124_vm0, %v62_v41  ;;  %v48_v15 = vld [vmem:[%s9874_s0 + $0x10] sm:$0xff]  ;;  %v6395_v19 = vld [vmem:[%s9879_s5 + $0xb4] sm:$0xf0] }
  0x15   :  { %657 = vmatpush.bf16.msrb.mxu3 %v4953_v37  ;;  %608 = vmatpush.bf16.msrb.mxu2 %v4889_v47 }
  0x16   :  { %4762 = vmatmul.msk.bf16.vlgmr.msra.gmra.mxu3 %vm124_vm0, %v6868_v46  ;;  %755 = vmatpush.bf16.msrb.mxu1 %v4957_v48 }
  0x18   :  { %707 = vmatpush.bf16.msrb.mxu0 %v4885_v51 }
  0x19   :  { %658 = vmatpush.bf16.msrb.mxu3 %v4945_v52  ;;  %609 = vmatpush.bf16.msrb.mxu2 %v4881_v59 }
  0x1a   :  { %756 = vmatpush.bf16.msrb.mxu1 %v4949_v62 }
  0x1c   :  { %708 = vmatpush.bf16.msrb.mxu0 %v4877_v63 }
  0x1d   :  { %659 = vmatpush.bf16.msrb.mxu3 %v4937_v0 }
  0x1e   :  { %18 = vsyncpa [#allocation3], 0  ;;  %v49_v20 = vld [vmem:[%s9874_s0 + $0x18] sm:$0xff]  ;;  %v58_v21 = vld [vmem:[%s9874_s0 + $0x60] sm:$0xff]  ;;  %610 = vmatpush.bf16.msrb.mxu2 %v4873_v9  ;;  %v4865_v23 = vor.u32 %v6381_v8, %v4864_v7  ;;  %757 = vmatpush.bf16.msrb.mxu1 %v4941_v10  ;;  %v4933_v24 = vor.u32 %v6396_v14, %v4930_v18  ;;  %v4861_v27 = vor.u32 %v6378_v11, %v4858_v12  ;;  %vm954_vm1 = vcmask 1043456   ;;  %s6692_s27 = smov 128  }
  0x1f   :  { %v59_v22 = vld [vmem:[%s9874_s0 + $0x68] sm:$0xff]  ;;  %v4856_v25 = vld [vmem:[%s9879_s5 + $0x30] sm:$0xf]  ;;  %v6379_v26 = vld [vmem:[%s9879_s5 + $0x34] sm:$0xf0]  ;;  %v4921_v28 = vor.u32 %v6395_v19, %v4920_v13  ;;  %v63_v29 = vpack.c.bf16 %v49_v20, %v48_v15  ;;  %vm929_vm2 = vcmask 588800  }
  0x20   :  { %709 = vmatpush.bf16.msrb.mxu0 %v4869_v16  ;;  %v6966_v30 = vpack.c.bf16 %v59_v22, %v58_v21  ;;  %v4857_v31 = vor.u32 %v6379_v26, %v4856_v25  ;;  %v4848_v32 = vld [vmem:[%s9879_s5 + $0x20] sm:$0xf]  ;;  %v6377_v33 = vld [vmem:[%s9879_s5 + $0x24] sm:$0xf0]  ;;  %v6394_v34 = vld [vmem:[%s9879_s5 + $0xb4] sm:$0xf] }
  0x21   :  { %660 = vmatpush.bf16.msrb.mxu3 %v4929_v17  ;;  %v4922_v35 = vld [vmem:[%s9879_s5 + $0xb8] sm:$0xf0]  ;;  %v4840_v37 = vld [vmem:[%s9879_s5 + $0x10] sm:$0xf]  ;;  %v6375_v38 = vld [vmem:[%s9879_s5 + $0x14] sm:$0xf0] }
  0x22   :  { %611 = vmatpush.bf16.msrb.mxu2 %v4865_v23  ;;  %758 = vmatpush.bf16.msrb.mxu1 %v4933_v24  ;;  %v4925_v36 = vor.u32 %v6394_v34, %v4922_v35  ;;  %v4912_v39 = vld [vmem:[%s9879_s5 + $0xa0] sm:$0xf]  ;;  %v6393_v40 = vld [vmem:[%s9879_s5 + $0xa4] sm:$0xf0]  ;;  %v6376_v41 = vld [vmem:[%s9879_s5 + $0x24] sm:$0xf]  ;;  %v4841_v60 = vor.u32 %v6375_v38, %v4840_v37 }
  0x23   :  { %4751 = vmatmul.msk.bf16.gmra.mxu0 %vm124_vm0, %v63_v29  ;;  %4756 = vmatmul.msk.bf16.gmra.mxu2 %vm124_vm0, %v6966_v30  ;;  %v4913_v43 = vor.u32 %v6393_v40, %v4912_v39  ;;  %v4850_v44 = vld [vmem:[%s9879_s5 + $0x28] sm:$0xf0]  ;;  %v6392_v45 = vld [vmem:[%s9879_s5 + $0xa4] sm:$0xf]  ;;  %v4904_v50 = vld [vmem:[%s9879_s5 + $0x90] sm:$0xf] }
  0x24   :  { %710 = vmatpush.bf16.msrb.mxu0 %v4861_v27  ;;  %4759 = vmatmul.msk.bf16.gmra.mxu1 %vm124_vm0, %v63_v29  ;;  %v4914_v47 = vld [vmem:[%s9879_s5 + $0xa8] sm:$0xf0]  ;;  %v4853_v48 = vor.u32 %v6376_v41, %v4850_v44  ;;  %v6391_v51 = vld [vmem:[%s9879_s5 + $0x94] sm:$0xf0]  ;;  %v6390_v52 = vld [vmem:[%s9879_s5 + $0x94] sm:$0xf] }
  0x25   :  { %661 = vmatpush.bf16.msrb.mxu3 %v4921_v28  ;;  %v4917_v49 = vor.u32 %v6392_v45, %v4914_v47  ;;  %v4905_v53 = vor.u32 %v6391_v51, %v4904_v50  ;;  %v4906_v54 = vld [vmem:[%s9879_s5 + $0x98] sm:$0xf0]  ;;  %v6374_v55 = vld [vmem:[%s9879_s5 + $0x14] sm:$0xf]  ;;  %v4896_v58 = vld [vmem:[%s9879_s5 + $0x80] sm:$0xf] }
  0x26   :  { %4763 = vmatmul.msk.bf16.gmra.mxu3 %vm124_vm0, %v6857_v42  ;;  %612 = vmatpush.bf16.msrb.mxu2 %v4857_v31  ;;  %v4849_v42 = vor.u32 %v6377_v33, %v4848_v32  ;;  %v4842_v56 = vld [vmem:[%s9879_s5 + $0x18] sm:$0xf0]  ;;  %v6389_v59 = vld [vmem:[%s9879_s5 + $0x84] sm:$0xf0]  ;;  %v4832_v61 = vld [vmem:[%s9879_s5] sm:$0xf]  ;;  %v4909_v62 = vor.u32 %v6390_v52, %v4906_v54 }
  0x27   :  { %759 = vmatpush.bf16.msrb.mxu1 %v4925_v36  ;;  %v4845_v57 = vor.u32 %v6374_v55, %v4842_v56  ;;  %v6373_v63 = vld [vmem:[%s9879_s5 + $0x4] sm:$0xf0]  ;;  %v6388_v0 = vld [vmem:[%s9879_s5 + $0x84] sm:$0xf]  ;;  %v4898_v1 = vld [vmem:[%s9879_s5 + $0x88] sm:$0xf0]  ;;  %v4897_v3 = vor.u32 %v6389_v59, %v4896_v58 }
  0x28   :  { %711 = vmatpush.bf16.msrb.mxu0 %v4853_v48  ;;  %v50_v2 = vld [vmem:[%s9874_s0 + $0x20] sm:$0xff]  ;;  %v51_v4 = vld [vmem:[%s9874_s0 + $0x28] sm:$0xff]  ;;  %v60_v5 = vld [vmem:[%s9874_s0 + $0x70] sm:$0xff]  ;;  %v4833_v7 = vor.u32 %v6373_v63, %v4832_v61  ;;  %v4901_v8 = vor.u32 %v6388_v0, %v4898_v1  ;;  %vm4427_vm3 = vcmask 1041408   ;;  %vm4402_vm4 = vcmask 818176   ;;  %s6693_s28 = smov 8  }
  0x29   :  { %662 = vmatpush.bf16.msrb.mxu3 %v4913_v43  ;;  %v61_v6 = vld [vmem:[%s9874_s0 + $0x78] sm:$0xff]  ;;  %v64_v9 = vpack.c.bf16 %v51_v4, %v50_v2  ;;  %v6372_v11 = vld [vmem:[%s9879_s5 + $0x4] sm:$0xf]  ;;  %v4834_v12 = vld [vmem:[%s9879_s5 + $0x8] sm:$0xf0] }
  0x2a   :  { %613 = vmatpush.bf16.msrb.mxu2 %v4849_v42  ;;  %v69_v10 = vpack.c.bf16 %v61_v6, %v60_v5  ;;  %v5016_v13 = vld [vmem:[%s9878_s4 + $0x70] sm:$0xf]  ;;  %v4837_v14 = vor.u32 %v6372_v11, %v4834_v12  ;;  %v6347_v15 = vld [vmem:[%s9878_s4 + $0x74] sm:$0xf0]  ;;  %v319_v16 = vld [vmem:[%s9878_s4 + $0xc0] sm:$0xff] }
  0x2b   :  { %760 = vmatpush.bf16.msrb.mxu1 %v4917_v49  ;;  %v5017_v17 = vor.u32 %v6347_v15, %v5016_v13  ;;  %v877_v18 = vunpack.c.l.b16 %v319_v16  ;;  %v52_v21 = vld [vmem:[%s9874_s0 + $0x30] sm:$0xff]  ;;  %v53_v22 = vld [vmem:[%s9874_s0 + $0x38] sm:$0xff]  ;;  %v4768_v23 = vld [vmem:[%s9875_s1] sm:$0xf]  ;;  %v878_v29 = vunpack.c.h.b16 %v319_v16 }
  0x2c   :  { %712 = vmatpush.bf16.msrb.mxu0 %v4845_v57  ;;  %v6357_v24 = vld [vmem:[%s9875_s1 + $0x4] sm:$0xf0]  ;;  %v65_v25 = vpack.c.bf16 %v53_v22, %v52_v21  ;;  %v6346_v27 = vld [vmem:[%s9878_s4 + $0x74] sm:$0xf]  ;;  %v5018_v28 = vld [vmem:[%s9878_s4 + $0x78] sm:$0xf0] }
  0x2d   :  { %663 = vmatpush.bf16.msrb.mxu3 %v4905_v53  ;;  %v903_v19 = vpack.c.b16 %v877_v18, %v877_v18  ;;  %v4769_v26 = vor.u32 %v6357_v24, %v4768_v23  ;;  %v5021_v31 = vor.u32 %v6346_v27, %v5018_v28  ;;  %v6345_v32 = vld [vmem:[%s9878_s4 + $0x64] sm:$0xf0]  ;;  %v904_v33 = vpack.c.b16 %v878_v29, %v878_v29  ;;  %v4776_v36 = vld [vmem:[%s9875_s1 + $0x10] sm:$0xf]  ;;  %v6359_v37 = vld [vmem:[%s9875_s1 + $0x14] sm:$0xf0] }
  0x2e   :  { %614 = vmatpush.bf16.msrb.mxu2 %v4841_v60  ;;  %v6356_v38 = vld [vmem:[%s9875_s1 + $0x4] sm:$0xf]  ;;  %v4770_v39 = vld [vmem:[%s9875_s1 + $0x8] sm:$0xf0]  ;;  %v4777_v40 = vor.u32 %v6359_v37, %v4776_v36  ;;  %v5048_v44 = vld [vmem:[%s9878_s4 + $0xb0] sm:$0xf] }
  0x2f   :  { %761 = vmatpush.bf16.msrb.mxu1 %v4909_v62  ;;  %v956_v20 = vsel %vm954_vm1, %v903_v19, 0  ;;  %v959_v35 = vsel %vm954_vm1, %v904_v33, 0  ;;  %v4773_v41 = vor.u32 %v6356_v38, %v4770_v39  ;;  %v6344_v42 = vld [vmem:[%s9878_s4 + $0x64] sm:$0xf]  ;;  %v5010_v43 = vld [vmem:[%s9878_s4 + $0x68] sm:$0xf0] }
  0x30   :  { %713 = vmatpush.bf16.msrb.mxu0 %v4837_v14  ;;  %v5013_v45 = vor.u32 %v6344_v42, %v5010_v43  ;;  %v5000_v47 = vld [vmem:[%s9878_s4 + $0x50] sm:$0xf]  ;;  %v6343_v48 = vld [vmem:[%s9878_s4 + $0x54] sm:$0xf0]  ;;  %v6354_v51 = vld [vmem:[%s9878_s4 + $0xb4] sm:$0xf] }
  0x31   :  { %664 = vmatpush.bf16.msrb.mxu3 %v4897_v3  ;;  %v5001_v50 = vor.u32 %v6343_v48, %v5000_v47  ;;  %v5050_v52 = vld [vmem:[%s9878_s4 + $0xb8] sm:$0xf0]  ;;  %v4784_v54 = vld [vmem:[%s9875_s1 + $0x20] sm:$0xf]  ;;  %v6361_v55 = vld [vmem:[%s9875_s1 + $0x24] sm:$0xf0] }
  0x32   :  { %615 = vmatpush.bf16.msrb.mxu2 %v4833_v7  ;;  %v5053_v53 = vor.u32 %v6354_v51, %v5050_v52  ;;  %v6358_v56 = vld [vmem:[%s9875_s1 + $0x14] sm:$0xf]  ;;  %v4778_v57 = vld [vmem:[%s9875_s1 + $0x18] sm:$0xf0]  ;;  %v4785_v58 = vor.u32 %v6361_v55, %v4784_v54  ;;  %v4992_v62 = vld [vmem:[%s9878_s4 + $0x40] sm:$0xf] }
  0x33   :  { %762 = vmatpush.bf16.msrb.mxu1 %v4901_v8  ;;  %4752 = vmatmul.msk.bf16.gmra.mxu0 %vm124_vm0, %v64_v9  ;;  %v4781_v59 = vor.u32 %v6358_v56, %v4778_v57  ;;  %v6342_v60 = vld [vmem:[%s9878_s4 + $0x54] sm:$0xf]  ;;  %v5002_v61 = vld [vmem:[%s9878_s4 + $0x58] sm:$0xf0]  ;;  %v6341_v0 = vld [vmem:[%s9878_s4 + $0x44] sm:$0xf0] }
  0x34   :  { %4757 = vmatmul.msk.bf16.gmra.mxu2 %vm124_vm0, %v69_v10  ;;  %4760 = vmatmul.msk.bf16.gmra.mxu1 %vm124_vm0, %v64_v9  ;;  %v5005_v63 = vor.u32 %v6342_v60, %v5002_v61  ;;  %v4993_v1 = vor.u32 %v6341_v0, %v4992_v62  ;;  %v4792_v2 = vld [vmem:[%s9875_s1 + $0x30] sm:$0xf]  ;;  %v6363_v3 = vld [vmem:[%s9875_s1 + $0x34] sm:$0xf0]  ;;  %v6360_v4 = vld [vmem:[%s9875_s1 + $0x24] sm:$0xf] }
  0x35   :  { %1013 = vmatpush.bf16.msra.mxu3 %v956_v20  ;;  %1059 = vmatpush.bf16.msra.mxu0 %v5021_v31  ;;  %v4786_v5 = vld [vmem:[%s9875_s1 + $0x28] sm:$0xf0]  ;;  %v4793_v6 = vor.u32 %v6363_v3, %v4792_v2  ;;  %v5040_v8 = vld [vmem:[%s9878_s4 + $0xa0] sm:$0xf]  ;;  %v6353_v9 = vld [vmem:[%s9878_s4 + $0xa4] sm:$0xf0] }
  0x36   :  { %4764 = vmatmul.msk.bf16.gmra.mxu3 %vm124_vm0, %v6966_v30  ;;  %961 = vmatpush.bf16.msra.mxu2 %v5017_v17  ;;  %v5008_v30 = vld [vmem:[%s9878_s4 + $0x60] sm:$0xf]  ;;  %v4789_v7 = vor.u32 %v6360_v4, %v4786_v5  ;;  %v5041_v11 = vor.u32 %v6353_v9, %v5040_v8  ;;  %v4994_v12 = vld [vmem:[%s9878_s4 + $0x48] sm:$0xf0]  ;;  %v6365_v15 = vld [vmem:[%s9875_s1 + $0x44] sm:$0xf0] }
  0x37   :  { %v5009_v34 = vor.u32 %v6345_v32, %v5008_v30  ;;  %1111 = vmatpush.bf16.msra.mxu1 %v959_v35  ;;  %v4800_v14 = vld [vmem:[%s9875_s1 + $0x40] sm:$0xf]  ;;  %v6362_v16 = vld [vmem:[%s9875_s1 + $0x34] sm:$0xf]  ;;  %v4794_v17 = vld [vmem:[%s9875_s1 + $0x38] sm:$0xf0] }
  0x38   :  { %v6352_v18 = vld [vmem:[%s9878_s4 + $0xa4] sm:$0xf]  ;;  %v5042_v19 = vld [vmem:[%s9878_s4 + $0xa8] sm:$0xf0]  ;;  %v4984_v20 = vld [vmem:[%s9878_s4 + $0x30] sm:$0xf]  ;;  %v7214_v21 = vor.u32 %v6365_v15, %v4800_v14  ;;  %v4797_v24 = vor.u32 %v6362_v16, %v4794_v17 }
  0x39   :  { %1060 = vmatpush.bf16.msra.mxu0 %v5013_v45  ;;  %v5045_v22 = vor.u32 %v6352_v18, %v5042_v19  ;;  %v6339_v23 = vld [vmem:[%s9878_s4 + $0x34] sm:$0xf0]  ;;  %v4986_v27 = vld [vmem:[%s9878_s4 + $0x38] sm:$0xf0]  ;;  %v4808_v29 = vld [vmem:[%s9875_s1 + $0x50] sm:$0xf] }
  0x3a   :  { %962 = vmatpush.bf16.msra.mxu2 %v5009_v34  ;;  %v6367_v30 = vld [vmem:[%s9875_s1 + $0x54] sm:$0xf0]  ;;  %v6364_v31 = vld [vmem:[%s9875_s1 + $0x44] sm:$0xf]  ;;  %v4802_v32 = vld [vmem:[%s9875_s1 + $0x48] sm:$0xf0] }
  0x3b   :  { %1112 = vmatpush.bf16.msra.mxu1 %v5053_v53  ;;  %v5032_v33 = vld [vmem:[%s9878_s4 + $0x90] sm:$0xf]  ;;  %v6351_v34 = vld [vmem:[%s9878_s4 + $0x94] sm:$0xf0]  ;;  %v4976_v35 = vld [vmem:[%s9878_s4 + $0x20] sm:$0xf]  ;;  %v7247_v36 = vor.u32 %v6367_v30, %v4808_v29 }
  0x3c   :  { %v5033_v37 = vor.u32 %v6351_v34, %v5032_v33  ;;  %v6337_v38 = vld [vmem:[%s9878_s4 + $0x24] sm:$0xf0]  ;;  %v78_v43 = vld [vmem:[%s9877_s3] sm:$0x3]  ;;  %v6350_v45 = vld [vmem:[%s9878_s4 + $0x94] sm:$0xf] }
  0x3d   :  { %1061 = vmatpush.bf16.msra.mxu0 %v5005_v63  ;;  %v6336_v48 = vld [vmem:[%s9878_s4 + $0x24] sm:$0xf]  ;;  %v7277_v55 = vperm.slane %v78_v43, 0  ;;  %v4968_v57 = vld [vmem:[%s9878_s4 + $0x10] sm:$0xf] }
  0x3e   :  { %963 = vmatpush.bf16.msra.mxu2 %v5001_v50  ;;  %v4816_v61 = vld [vmem:[%s9875_s1 + $0x60] sm:$0xf]  ;;  %v6369_v62 = vld [vmem:[%s9875_s1 + $0x64] sm:$0xf0]  ;;  %v6366_v63 = vld [vmem:[%s9875_s1 + $0x54] sm:$0xf] }
  0x3f   :  { %1113 = vmatpush.bf16.msra.mxu1 %v5045_v22  ;;  %v4810_v0 = vld [vmem:[%s9875_s1 + $0x58] sm:$0xf0]  ;;  %v4960_v2 = vld [vmem:[%s9878_s4] sm:$0xf]  ;;  %v6333_v3 = vld [vmem:[%s9878_s4 + $0x4] sm:$0xf0] }
  0x40   :  { %v4961_v8 = vor.u32 %v6333_v3, %v4960_v2  ;;  %v6334_v18 = vld [vmem:[%s9878_s4 + $0x14] sm:$0xf]  ;;  %v4970_v19 = vld [vmem:[%s9878_s4 + $0x18] sm:$0xf0]  ;;  %v5024_v22 = vld [vmem:[%s9878_s4 + $0x80] sm:$0xf] }
  0x41   :  { %v4824_v30 = vld [vmem:[%s9875_s1 + $0x70] sm:$0xf]  ;;  %v4818_v33 = vld [vmem:[%s9875_s1 + $0x68] sm:$0xf0] }
  0x42   :  { %964 = vmatpush.bf16.msra.mxu2 %v4993_v1 }
  0x43   :  { %4753 = vmatmul.msk.bf16.gmra.mxu0 %vm124_vm0, %v65_v25 }
  0x44   :  { %616 = vmatmul.bf16.vlgmr.msrb.gmra.mxu2 %v4769_v26  ;;  %4761 = vmatmul.msk.bf16.gmra.mxu1 %vm124_vm0, %v65_v25  ;;  %v4985_v25 = vor.u32 %v6339_v23, %v4984_v20  ;;  %v4973_v20 = vor.u32 %v6334_v18, %v4970_v19 }
  0x46   :  { %4765 = vmatmul.msk.bf16.gmra.mxu3 %vm124_vm0, %v69_v10  ;;  %v6340_v10 = vld [vmem:[%s9878_s4 + $0x44] sm:$0xf]  ;;  %965 = vmatpush.bf16.msra.mxu2 %v4985_v25 }
  0x47   :  { %v4997_v13 = vor.u32 %v6340_v10, %v4994_v12  ;;  %v4813_v12 = vor.u32 %v6366_v63, %v4810_v0 }
  0x49   :  { %1062 = vmatpush.bf16.msra.mxu0 %v4997_v13 }
  0x53   :  { %4754 = vmatmul.msk.bf16.gmra.mxu0 %vm124_vm0, %v6868_v46  ;;  %v6355_v46 = vld [vmem:[%s9878_s4 + $0xb4] sm:$0xf0] }
  0x54   :  { %621 = vmatmul.bf16.gmra.mxu2 %v4777_v40  ;;  %763 = vmatmul.bf16.vlgmr.msrb.gmra.mxu1 %v4773_v41  ;;  %v5049_v49 = vor.u32 %v6355_v46, %v5048_v44  ;;  %v7260_v44 = vperm.slane %v78_v43, 1  ;;  %v5034_v46 = vld [vmem:[%s9878_s4 + $0x98] sm:$0xf0] }
  0x55   :  { %v5037_v47 = vor.u32 %v6350_v45, %v5034_v46 }
  0x56   :  { %665 = vmatmul.bf16.vlgmr.msrb.gmra.mxu3 %v4773_v41  ;;  %v4977_v41 = vor.u32 %v6337_v38, %v4976_v35  ;;  %v6348_v35 = vld [vmem:[%s9878_s4 + $0x84] sm:$0xf] }
  0x57   :  { %1014 = vmatpush.bf16.msra.mxu3 %v5049_v49  ;;  %v4978_v49 = vld [vmem:[%s9878_s4 + $0x28] sm:$0xf0]  ;;  %1114 = vmatpush.bf16.msra.mxu1 %v5037_v47 }
  0x58   :  { %966 = vmatpush.bf16.msra.mxu2 %v4977_v41  ;;  %v4981_v51 = vor.u32 %v6336_v48, %v4978_v49 }
  0x5b   :  { %1015 = vmatpush.bf16.msra.mxu3 %v5041_v11 }
  0x5f   :  { %1016 = vmatpush.bf16.msra.mxu3 %v5033_v37  ;;  %v5026_v37 = vld [vmem:[%s9878_s4 + $0x88] sm:$0xf0] }
  0x60   :  { %v5029_v45 = vor.u32 %v6348_v35, %v5026_v37  ;;  %v5331_v37 = vld [vmem:[%s9879_s5 + $0x1f8] sm:$0xf0] }
  0x62   :  { %1115 = vmatpush.bf16.msra.mxu1 %v5029_v45 }
  0x63   :  { %714 = vmatmul.bf16.vlgmr.msrb.gmra.mxu0 %v4769_v26  ;;  %v6338_v26 = vld [vmem:[%s9878_s4 + $0x34] sm:$0xf] }
  0x64   :  { %626 = vmatmul.bf16.gmra.mxu2 %v4785_v58  ;;  %768 = vmatmul.bf16.gmra.mxu1 %v4781_v59  ;;  %v4989_v28 = vor.u32 %v6338_v26, %v4986_v27 }
  0x66   :  { %670 = vmatmul.bf16.gmra.mxu3 %v4781_v59  ;;  %1063 = vmatpush.bf16.msra.mxu0 %v4989_v28 }
  0x6a   :  { %1064 = vmatpush.bf16.msra.mxu0 %v4981_v51 }
  0x6e   :  { %1065 = vmatpush.bf16.msra.mxu0 %v4973_v20 }
  0x73   :  { %719 = vmatmul.bf16.gmra.mxu0 %v4777_v40  ;;  %v4805_v40 = vor.u32 %v6364_v31, %v4802_v32  ;;  %v6371_v31 = vld [vmem:[%s9875_s1 + $0x74] sm:$0xf0]  ;;  %v6368_v32 = vld [vmem:[%s9875_s1 + $0x64] sm:$0xf] }
  0x74   :  { %631 = vmatmul.bf16.gmra.mxu2 %v4793_v6  ;;  %773 = vmatmul.bf16.gmra.mxu1 %v4789_v7  ;;  %v7357_v43 = vor.u32 %v6371_v31, %v4824_v30  ;;  %v4821_v49 = vor.u32 %v6368_v32, %v4818_v33  ;;  %v6458_v33 = vld [vmem:[%s9879_s5 + $0x174] sm:$0xf] }
  0x76   :  { %675 = vmatmul.bf16.gmra.mxu3 %v4789_v7  ;;  %v7307_v7 = vor.u32 %v6369_v62, %v4816_v61 }
  0x83   :  { %724 = vmatmul.bf16.gmra.mxu0 %v4785_v58  ;;  %v6335_v58 = vld [vmem:[%s9878_s4 + $0x14] sm:$0xf0] }
  0x84   :  { %636 = vmatmul.bf16.gmra.mxu2 %v7214_v21  ;;  %778 = vmatmul.bf16.gmra.mxu1 %v4797_v24  ;;  %v4969_v60 = vor.u32 %v6335_v58, %v4968_v57  ;;  %v6332_v58 = vld [vmem:[%s9878_s4 + $0x4] sm:$0xf] }
  0x86   :  { %680 = vmatmul.bf16.gmra.mxu3 %v4797_v24  ;;  %967 = vmatpush.bf16.msra.mxu2 %v4969_v60 }
  0x8a   :  { %968 = vmatpush.bf16.msra.mxu2 %v4961_v8  ;;  %v6475_v8 = vld [vmem:[%s9879_s5 + $0x1f4] sm:$0xf0] }
  0x90   :  { %v7252_v39 = vpop.f32.mrf.mxu0 }
  0x91   :  { %v7254_v42 = vpop.f32.mrf.mxu1  ;;  %v159_v2 = vadd.f32 %v7252_v39, %v7277_v55 }
  0x93   :  { %729 = vmatmul.bf16.gmra.mxu0 %v4793_v6 }
  0x94   :  { %641 = vmatmul.bf16.gmra.mxu2 %v7247_v36  ;;  %783 = vmatmul.bf16.gmra.mxu1 %v4805_v40 }
  0x96   :  { %685 = vmatmul.bf16.gmra.mxu3 %v4805_v40  ;;  %v183_v50 = vpop.f32.mrf.mxu2 }
  0x97   :  { %v184_v59 = vadd.f32 %v183_v50, %v7277_v55 }
  0x98   :  { %v7275_v54 = vpop.f32.mrf.mxu0 }
  0x99   :  { %v227_v52 = vpop.f32.mrf.mxu3  ;;  %v7279_v56 = vpop.f32.mrf.mxu1  ;;  %v267_v4 = vmax.f32 %v184_v59, 0.0  ;;  %v4962_v59 = vld [vmem:[%s9878_s4 + $0x8] sm:$0xf0]  ;;  %v161_v0 = vadd.f32 %v7275_v54, %v7277_v55  ;;  %v5329_v54 = vld [vmem:[%s9879_s5 + $0x1f0] sm:$0xf] }
  0x9a   :  { %v228_v53 = vadd.f32 %v227_v52, %v7260_v44  ;;  %v4965_v60 = vor.u32 %v6332_v58, %v4962_v59  ;;  %v5321_v58 = vld [vmem:[%s9879_s5 + $0x1e0] sm:$0xf]  ;;  %v208_v59 = vadd.f32 %v7254_v42, %v7260_v44 }
  0x9b   :  { %v249_v39 = vmax.f32 %v161_v0, 0.0 }
  0x9c   :  { %v264_v9 = vmax.f32 %v228_v53, 0.0  ;;  %1066 = vmatpush.bf16.msra.mxu0 %v4965_v60 }
  0x9e   :  { %v185_v1 = vpop.f32.mrf.mxu2 }
  0x9f   :  { %v186_v5 = vadd.f32 %v185_v1, %v7277_v55 }
  0xa0   :  { %v7310_v11 = vpop.f32.mrf.mxu0 }
  0xa1   :  { %v229_v6 = vpop.f32.mrf.mxu3  ;;  %v269_v13 = vmax.f32 %v186_v5, 0.0  ;;  %v7312_v14 = vpop.f32.mrf.mxu1  ;;  %v6459_v5 = vld [vmem:[%s9879_s5 + $0x174] sm:$0xf0] }
  0xa2   :  { %v230_v10 = vadd.f32 %v229_v6, %v7260_v44 }
  0xa3   :  { %734 = vmatmul.bf16.gmra.mxu0 %v7214_v21  ;;  %v7316_v16 = vpack.c.bf16 %v269_v13, %v267_v4  ;;  %v6349_v21 = vld [vmem:[%s9878_s4 + $0x84] sm:$0xf0]  ;;  %v5265_v4 = vld [vmem:[%s9879_s5 + $0x170] sm:$0xf] }
  0xa4   :  { %v266_v15 = vmax.f32 %v230_v10, 0.0  ;;  %646 = vmatmul.bf16.gmra.mxu2 %v7307_v7  ;;  %788 = vmatmul.bf16.gmra.mxu1 %v4813_v12  ;;  %v5025_v24 = vor.u32 %v6349_v21, %v5024_v22  ;;  %v5266_v6 = vor.u32 %v6459_v5, %v5265_v4  ;;  %v4826_v10 = vld [vmem:[%s9875_s1 + $0x78] sm:$0xf0] }
  0xa6   :  { %v7318_v17 = vpack.c.bf16 %v266_v15, %v264_v9  ;;  %690 = vmatmul.bf16.gmra.mxu3 %v4813_v12  ;;  %v188_v23 = vpop.f32.mrf.mxu2  ;;  %v6370_v9 = vld [vmem:[%s9875_s1 + $0x74] sm:$0xf]  ;;  %v5330_v12 = vor.u32 %v6475_v8, %v5329_v54  ;;  %1559 = vmatpush.bf16.msrb.mxu2 %v5266_v6  ;;  %v247_v15 = vmax.f32 %v159_v2, 0.0  ;;  %v248_v2 = vmax.f32 %v208_v59, 0.0 }
  0xa7   :  { %1017 = vmatpush.bf16.msra.mxu3 %v5025_v24  ;;  %v189_v29 = vadd.f32 %v188_v23, %v7277_v55  ;;  %v4829_v24 = vor.u32 %v6370_v9, %v4826_v10 }
  0xa8   :  { %v7333_v27 = vpop.f32.mrf.mxu0 }
  0xa9   :  { %v232_v25 = vpop.f32.mrf.mxu3  ;;  %v7335_v28 = vpop.f32.mrf.mxu1  ;;  %v271_v38 = vmax.f32 %v189_v29, 0.0 }
  0xaa   :  { %v233_v26 = vadd.f32 %v232_v25, %v7260_v44  ;;  %v7408_v25 = vpack.c.bf16 %v249_v39, %v247_v15 }
  0xab   :  { %1608 = vmatpush.bf16.msrb.mxu3 %v5330_v12  ;;  %v6456_v12 = vld [vmem:[%s9879_s5 + $0x164] sm:$0xf] }
  0xac   :  { %v268_v46 = vmax.f32 %v233_v26, 0.0 }
  0xae   :  { %v190_v34 = vpop.f32.mrf.mxu2 }
  0xaf   :  { %v191_v40 = vadd.f32 %v190_v34, %v7277_v55  ;;  %v5267_v34 = vld [vmem:[%s9879_s5 + $0x178] sm:$0xf0] }
  0xb0   :  { %v7360_v48 = vpop.f32.mrf.mxu0  ;;  %v5270_v35 = vor.u32 %v6458_v33, %v5267_v34  ;;  %v5249_v33 = vld [vmem:[%s9879_s5 + $0x150] sm:$0xf]  ;;  %v6455_v34 = vld [vmem:[%s9879_s5 + $0x154] sm:$0xf0] }
  0xb1   :  { %v234_v41 = vpop.f32.mrf.mxu3  ;;  %v273_v50 = vmax.f32 %v191_v40, 0.0  ;;  %v7362_v51 = vpop.f32.mrf.mxu1 }
  0xb2   :  { %v235_v47 = vadd.f32 %v234_v41, %v7260_v44  ;;  %1657 = vmatpush.bf16.msrb.mxu0 %v5270_v35  ;;  %v5313_v35 = vld [vmem:[%s9879_s5 + $0x1d0] sm:$0xf] }
  0xb3   :  { %739 = vmatmul.bf16.gmra.mxu0 %v7247_v36  ;;  %v7366_v53 = vpack.c.bf16 %v273_v50, %v271_v38  ;;  %v5257_v50 = vld [vmem:[%s9879_s5 + $0x160] sm:$0xf] }
  0xb4   :  { %v270_v52 = vmax.f32 %v235_v47, 0.0  ;;  %651 = vmatmul.bf16.gmra.mxu2 %v7357_v43  ;;  %793 = vmatmul.bf16.gmra.mxu1 %v4821_v49  ;;  %v166_v47 = vadd.f32 %v7333_v27, %v7277_v55  ;;  %v210_v27 = vadd.f32 %v7279_v56, %v7260_v44 }
  0xb6   :  { %v7368_v57 = vpack.c.bf16 %v270_v52, %v268_v46  ;;  %695 = vmatmul.bf16.gmra.mxu3 %v4821_v49  ;;  %v6457_v52 = vld [vmem:[%s9879_s5 + $0x164] sm:$0xf0]  ;;  %v253_v0 = vmax.f32 %v166_v47, 0.0 }
  0xb7   :  { %v193_v61 = vpop.f32.mrf.mxu2  ;;  %v5258_v60 = vor.u32 %v6457_v52, %v5257_v50 }
  0xb8   :  { %v7377_v63 = vpop.f32.mrf.mxu0  ;;  %v194_v3 = vadd.f32 %v193_v61, %v7277_v55  ;;  %v6473_v61 = vld [vmem:[%s9879_s5 + $0x1e4] sm:$0xf0] }
  0xb9   :  { %v237_v62 = vpop.f32.mrf.mxu3  ;;  %v7381_v1 = vpop.f32.mrf.mxu1  ;;  %1560 = vmatpush.bf16.msrb.mxu2 %v5258_v60 }
  0xba   :  { %v238_v36 = vadd.f32 %v237_v62, %v7260_v44  ;;  %v275_v18 = vmax.f32 %v194_v3, 0.0  ;;  %v164_v62 = vadd.f32 %v7310_v11, %v7277_v55  ;;  %v250_v3 = vmax.f32 %v210_v27, 0.0 }
  0xbc   :  { %v272_v22 = vmax.f32 %v238_v36, 0.0  ;;  %v5322_v36 = vor.u32 %v6473_v61, %v5321_v58  ;;  %v251_v5 = vmax.f32 %v164_v62, 0.0  ;;  %v280_v9 = vpack.c.bf16 %v250_v3, %v248_v2 }
  0xbe   :  { %1609 = vmatpush.bf16.msrb.mxu3 %v5322_v36  ;;  %v7458_v39 = vpack.c.bf16 %v253_v0, %v251_v5  ;;  %v5251_v36 = vld [vmem:[%s9879_s5 + $0x158] sm:$0xf0]  ;;  %v6470_v0 = vld [vmem:[%s9879_s5 + $0x1d4] sm:$0xf] }
  0xbf   :  { %v195_v13 = vpop.f32.mrf.mxu2 }
  0xc0   :  { %v196_v19 = vadd.f32 %v195_v13, %v7277_v55  ;;  %v7406_v23 = vpop.f32.mrf.mxu0  ;;  %v5259_v13 = vld [vmem:[%s9879_s5 + $0x168] sm:$0xf0] }
  0xc1   :  { %v239_v20 = vpop.f32.mrf.mxu3  ;;  %v7410_v29 = vpop.f32.mrf.mxu1  ;;  %v5262_v15 = vor.u32 %v6456_v12, %v5259_v13  ;;  %v6453_v12 = vld [vmem:[%s9879_s5 + $0x144] sm:$0xf0]  ;;  %v5305_v13 = vld [vmem:[%s9879_s5 + $0x1c0] sm:$0xf] }
  0xc2   :  { %v240_v21 = vadd.f32 %v239_v20, %v7260_v44  ;;  %v277_v26 = vmax.f32 %v196_v19, 0.0 }
  0xc3   :  { %744 = vmatmul.bf16.gmra.mxu0 %v7307_v7  ;;  %v6474_v7 = vld [vmem:[%s9879_s5 + $0x1f4] sm:$0xf] }
  0xc4   :  { %v274_v30 = vmax.f32 %v240_v21, 0.0  ;;  %969 = vmatmul.bf16.vlgmr.msra.gmra.mxu2 %v7408_v25  ;;  %v7414_v31 = vpack.c.bf16 %v277_v26, %v275_v18  ;;  %798 = vmatmul.bf16.gmra.mxu1 %v4829_v24  ;;  %v5334_v40 = vor.u32 %v6474_v7, %v5331_v37  ;;  %v5323_v18 = vld [vmem:[%s9879_s5 + $0x1e8] sm:$0xf0]  ;;  %v171_v26 = vadd.f32 %v7377_v63, %v7277_v55 }
  0xc5   :  { %1658 = vmatpush.bf16.msrb.mxu0 %v5262_v15  ;;  %v213_v7 = vadd.f32 %v7312_v14, %v7260_v44  ;;  %v215_v37 = vadd.f32 %v7335_v28, %v7260_v44  ;;  %v5250_v63 = vor.u32 %v6455_v34, %v5249_v33 }
  0xc6   :  { %v7416_v32 = vpack.c.bf16 %v274_v30, %v272_v22  ;;  %700 = vmatmul.bf16.gmra.mxu3 %v4829_v24  ;;  %1706 = vmatpush.bf16.msrb.mxu1 %v5334_v40  ;;  %v169_v40 = vadd.f32 %v7360_v48, %v7277_v55  ;;  %v6454_v48 = vld [vmem:[%s9879_s5 + $0x154] sm:$0xf] }
  0xc7   :  { %v617_v38 = vpop.f32.mrf.mxu2  ;;  %1561 = vmatpush.bf16.msrb.mxu2 %v5250_v63  ;;  %v252_v47 = vmax.f32 %v213_v7, 0.0  ;;  %v254_v50 = vmax.f32 %v215_v37, 0.0  ;;  %v5254_v2 = vor.u32 %v6454_v48, %v5251_v36  ;;  %v5233_v48 = vld [vmem:[%s9879_s5 + $0x130] sm:$0xf]  ;;  %v6451_v36 = vld [vmem:[%s9879_s5 + $0x134] sm:$0xf0] }
  0xc8   :  { %v7431_v46 = vpop.f32.mrf.mxu0  ;;  %v255_v58 = vmax.f32 %v169_v40, 0.0  ;;  %v5243_v40 = vld [vmem:[%s9879_s5 + $0x148] sm:$0xf0] }
  0xc9   :  { %v242_v41 = vpop.f32.mrf.mxu3  ;;  %v7435_v49 = vpop.f32.mrf.mxu1  ;;  %v282_v62 = vpack.c.bf16 %v254_v50, %v252_v47  ;;  %1659 = vmatpush.bf16.msrb.mxu0 %v5254_v2  ;;  %v223_v2 = vadd.f32 %v7410_v29, %v7260_v44 }
  0xca   :  { %v243_v45 = vadd.f32 %v242_v41, %v7260_v44 }
  0xcc   :  { %v276_v6 = vmax.f32 %v243_v45, 0.0  ;;  %v257_v45 = vmax.f32 %v171_v26, 0.0 }
  0xce   :  { %v7506_v61 = vpack.c.bf16 %v257_v45, %v255_v58 }
  0xcf   :  { %v619_v4 = vpop.f32.mrf.mxu2 }
  0xd0   :  { %v7456_v54 = vpop.f32.mrf.mxu0 }
  0xd1   :  { %v244_v42 = vpop.f32.mrf.mxu3  ;;  %v764_v8 = vpop.f32.mrf.mxu1 }
  0xd2   :  { %v245_v56 = vadd.f32 %v244_v42, %v7260_v44 }
  0xd3   :  { %749 = vmatmul.bf16.gmra.mxu0 %v7357_v43  ;;  %v6472_v43 = vld [vmem:[%s9879_s5 + $0x1e4] sm:$0xf] }
  0xd4   :  { %v278_v11 = vmax.f32 %v245_v56, 0.0  ;;  %974 = vmatmul.bf16.gmra.mxu2 %v7458_v39  ;;  %5062 = vmatmul.msk.bf16.vlgmr.msra.gmra.mxu1 %vm929_vm2, %v280_v9  ;;  %v5326_v20 = vor.u32 %v6472_v43, %v5323_v18  ;;  %v176_v56 = vadd.f32 %v7431_v46, %v7277_v55  ;;  %v218_v43 = vadd.f32 %v7362_v51, %v7260_v44  ;;  %v6469_v18 = vld [vmem:[%s9879_s5 + $0x1c4] sm:$0xf0] }
  0xd5   :  { %v220_v46 = vadd.f32 %v7381_v1, %v7260_v44 }
  0xd6   :  { %v7462_v10 = vpack.c.bf16 %v278_v11, %v276_v6  ;;  %5054 = vmatmul.msk.bf16.vlgmr.msra.gmra.mxu3 %vm929_vm2, %v280_v9  ;;  %1707 = vmatpush.bf16.msrb.mxu1 %v5326_v20  ;;  %v5241_v11 = vld [vmem:[%s9879_s5 + $0x140] sm:$0xf]  ;;  %v5306_v20 = vor.u32 %v6469_v18, %v5305_v13  ;;  %v256_v26 = vmax.f32 %v218_v43, 0.0  ;;  %v6466_v18 = vld [vmem:[%s9879_s5 + $0x1b4] sm:$0xf] }
  0xd7   :  { %v622_v19 = vpop.f32.mrf.mxu2  ;;  %v5242_v15 = vor.u32 %v6453_v12, %v5241_v11 }
  0xd8   :  { %v7480_v24 = vpop.f32.mrf.mxu0 }
  0xd9   :  { %v666_v22 = vpop.f32.mrf.mxu3  ;;  %v766_v30 = vpop.f32.mrf.mxu1  ;;  %1562 = vmatpush.bf16.msrb.mxu2 %v5242_v15 }
  0xda   :  { %v7478_v21 = vadd.f32 %v666_v22, %v617_v38  ;;  %v6471_v38 = vld [vmem:[%s9879_s5 + $0x1d4] sm:$0xf0]  ;;  %v261_v22 = vmax.f32 %v176_v56, 0.0  ;;  %v260_v56 = vmax.f32 %v223_v2, 0.0 }
  0xdb   :  { %v5314_v41 = vor.u32 %v6471_v38, %v5313_v35 }
  0xdd   :  { %1610 = vmatpush.bf16.msrb.mxu3 %v5314_v41  ;;  %v6468_v41 = vld [vmem:[%s9879_s5 + $0x1c4] sm:$0xf] }
  0xdf   :  { %v624_v52 = vpop.f32.mrf.mxu2 }
  0xe0   :  { %v715_v28 = vpop.f32.mrf.mxu0 }
  0xe1   :  { %v668_v14 = vpop.f32.mrf.mxu3  ;;  %v7504_v27 = vadd.f32 %v764_v8, %v715_v28  ;;  %v769_v60 = vpop.f32.mrf.mxu1  ;;  %1611 = vmatpush.bf16.msrb.mxu3 %v5306_v20  ;;  %v181_v28 = vadd.f32 %v7480_v24, %v7277_v55  ;;  %v225_v24 = vadd.f32 %v7435_v49, %v7260_v44 }
  0xe2   :  { %v7502_v59 = vadd.f32 %v668_v14, %v619_v4 }
  0xe3   :  { %1067 = vmatmul.bf16.vlgmr.msra.gmra.mxu0 %v7408_v25  ;;  %v5315_v25 = vld [vmem:[%s9879_s5 + $0x1d8] sm:$0xf0] }
  0xe4   :  { %979 = vmatmul.bf16.gmra.mxu2 %v7506_v61  ;;  %5063 = vmatmul.msk.bf16.gmra.mxu1 %vm929_vm2, %v282_v62  ;;  %v5318_v4 = vor.u32 %v6470_v0, %v5315_v25  ;;  %v5297_v0 = vld [vmem:[%s9879_s5 + $0x1b0] sm:$0xf]  ;;  %v5234_v25 = vor.u32 %v6451_v36, %v5233_v48  ;;  %v6464_v48 = vld [vmem:[%s9879_s5 + $0x1a4] sm:$0xf] }
  0xe6   :  { %5055 = vmatmul.msk.bf16.gmra.mxu3 %vm929_vm2, %v282_v62  ;;  %1708 = vmatpush.bf16.msrb.mxu1 %v5318_v4  ;;  %v179_v4 = vadd.f32 %v7456_v54, %v7277_v55  ;;  %v5235_v54 = vld [vmem:[%s9879_s5 + $0x138] sm:$0xf0] }
  0xe7   :  { %v627_v3 = vpop.f32.mrf.mxu2  ;;  %1563 = vmatpush.bf16.msrb.mxu2 %v5234_v25 }
  0xe8   :  { %v717_v6 = vpop.f32.mrf.mxu0  ;;  %v263_v12 = vmax.f32 %v179_v4, 0.0 }
  0xe9   :  { %v671_v5 = vpop.f32.mrf.mxu3  ;;  %v7528_v8 = vadd.f32 %v766_v30, %v717_v6  ;;  %v771_v9 = vpop.f32.mrf.mxu1  ;;  %v258_v30 = vmax.f32 %v220_v46, 0.0  ;;  %v265_v6 = vmax.f32 %v181_v28, 0.0  ;;  %v6448_v28 = vld [vmem:[%s9879_s5 + $0x124] sm:$0xf] }
  0xea   :  { %v7524_v42 = vadd.f32 %v671_v5, %v622_v19  ;;  %v174_v19 = vadd.f32 %v7406_v23, %v7277_v55  ;;  %v6452_v23 = vld [vmem:[%s9879_s5 + $0x144] sm:$0xf]  ;;  %v6450_v55 = vld [vmem:[%s9879_s5 + $0x134] sm:$0xf] }
  0xeb   :  { %v284_v38 = vpack.c.bf16 %v258_v30, %v256_v26  ;;  %v5246_v45 = vor.u32 %v6452_v23, %v5243_v40  ;;  %v7598_v46 = vpack.c.bf16 %v265_v6, %v263_v12  ;;  %v6465_v40 = vld [vmem:[%s9879_s5 + $0x1a4] sm:$0xf0]  ;;  %v6447_v6 = vld [vmem:[%s9879_s5 + $0x114] sm:$0xf0] }
  0xec   :  { %v259_v34 = vmax.f32 %v174_v19, 0.0  ;;  %v5238_v19 = vor.u32 %v6450_v55, %v5235_v54 }
  0xed   :  { %1660 = vmatpush.bf16.msrb.mxu0 %v5246_v45 }
  0xee   :  { %v7552_v63 = vpack.c.bf16 %v261_v22, %v259_v34 }
  0xef   :  { %v629_v33 = vpop.f32.mrf.mxu2 }
  0xf0   :  { %v720_v1 = vpop.f32.mrf.mxu0 }
  0xf1   :  { %v673_v51 = vpop.f32.mrf.mxu3  ;;  %v7550_v7 = vadd.f32 %v769_v60, %v720_v1  ;;  %v774_v37 = vpop.f32.mrf.mxu1  ;;  %1661 = vmatpush.bf16.msrb.mxu0 %v5238_v19  ;;  %v5225_v1 = vld [vmem:[%s9879_s5 + $0x120] sm:$0xf] }
  0xf2   :  { %v7548_v35 = vadd.f32 %v673_v51, %v624_v52 }
  0xf3   :  { %1072 = vmatmul.bf16.gmra.mxu0 %v7458_v39  ;;  %v5307_v39 = vld [vmem:[%s9879_s5 + $0x1c8] sm:$0xf0] }
  0xf4   :  { %984 = vmatmul.bf16.gmra.mxu2 %v7552_v63  ;;  %5064 = vmatmul.msk.bf16.gmra.mxu1 %vm929_vm2, %v284_v38  ;;  %v5310_v50 = vor.u32 %v6468_v41, %v5307_v39 }
  0xf6   :  { %5056 = vmatmul.msk.bf16.gmra.mxu3 %vm929_vm2, %v284_v38  ;;  %1709 = vmatpush.bf16.msrb.mxu1 %v5310_v50  ;;  %v5289_v38 = vld [vmem:[%s9879_s5 + $0x1a0] sm:$0xf] }
  0xf7   :  { %v632_v47 = vpop.f32.mrf.mxu2  ;;  %v5290_v41 = vor.u32 %v6465_v40, %v5289_v38 }
  0xf8   :  { %v722_v14 = vpop.f32.mrf.mxu0 }
  0xf9   :  { %v676_v52 = vpop.f32.mrf.mxu3  ;;  %v7574_v60 = vadd.f32 %v771_v9, %v722_v14  ;;  %v776_v62 = vpop.f32.mrf.mxu1  ;;  %v262_v9 = vmax.f32 %v225_v24, 0.0 }
  0xfa   :  { %v7570_v58 = vadd.f32 %v676_v52, %v627_v3  ;;  %v6467_v3 = vld [vmem:[%s9879_s5 + $0x1b4] sm:$0xf0] }
  0xfb   :  { %v5298_v5 = vor.u32 %v6467_v3, %v5297_v0  ;;  %v286_v15 = vpack.c.bf16 %v262_v9, %v260_v56  ;;  %v5281_v56 = vld [vmem:[%s9879_s5 + $0x190] sm:$0xf] }
  0xfd   :  { %1612 = vmatpush.bf16.msrb.mxu3 %v5298_v5  ;;  %v5217_v5 = vld [vmem:[%s9879_s5 + $0x110] sm:$0xf] }
  0xfe   :  { %v5218_v9 = vor.u32 %v6447_v6, %v5217_v5 }
  0xff   :  { %v634_v11 = vpop.f32.mrf.mxu2 }
 0x100   :  { %v725_v44 = vpop.f32.mrf.mxu0 }
 0x101   :  { %v678_v29 = vpop.f32.mrf.mxu3  ;;  %v7596_v49 = vadd.f32 %v774_v37, %v725_v44  ;;  %v779_v43 = vpop.f32.mrf.mxu1  ;;  %v6449_v37 = vld [vmem:[%s9879_s5 + $0x124] sm:$0xf0]  ;;  %1613 = vmatpush.bf16.msrb.mxu3 %v5290_v41  ;;  %v5209_v44 = vld [vmem:[%s9879_s5 + $0x100] sm:$0xf] }
 0x102   :  { %v7594_v13 = vadd.f32 %v678_v29, %v629_v33  ;;  %v5226_v23 = vor.u32 %v6449_v37, %v5225_v1  ;;  %v5273_v41 = vld [vmem:[%s9879_s5 + $0x180] sm:$0xf] }
 0x103   :  { %1077 = vmatmul.bf16.gmra.mxu0 %v7506_v61  ;;  %v5299_v61 = vld [vmem:[%s9879_s5 + $0x1b8] sm:$0xf0] }
 0x104   :  { %989 = vmatmul.bf16.gmra.mxu2 %v7598_v46  ;;  %5065 = vmatmul.msk.bf16.gmra.mxu1 %vm929_vm2, %v286_v15  ;;  %v5302_v22 = vor.u32 %v6466_v18, %v5299_v61 }
 0x105   :  { %1564 = vmatpush.bf16.msrb.mxu2 %v5226_v23 }
 0x106   :  { %5057 = vmatmul.msk.bf16.gmra.mxu3 %vm929_vm2, %v286_v15  ;;  %1710 = vmatpush.bf16.msrb.mxu1 %v5302_v22  ;;  %v5219_v22 = vld [vmem:[%s9879_s5 + $0x118] sm:$0xf0] }
 0x107   :  { %v637_v20 = vpop.f32.mrf.mxu2 }
 0x108   :  { %v727_v33 = vpop.f32.mrf.mxu0 }
 0x109   :  { %v681_v26 = vpop.f32.mrf.mxu3  ;;  %v7618_v34 = vadd.f32 %v776_v62, %v727_v33  ;;  %v781_v51 = vpop.f32.mrf.mxu1  ;;  %v5227_v62 = vld [vmem:[%s9879_s5 + $0x128] sm:$0xf0]  ;;  %1565 = vmatpush.bf16.msrb.mxu2 %v5218_v9 }
 0x10a   :  { %v7616_v30 = vadd.f32 %v681_v26, %v632_v47  ;;  %v5230_v36 = vor.u32 %v6448_v28, %v5227_v62  ;;  %v6462_v26 = vld [vmem:[%s9879_s5 + $0x194] sm:$0xf]  ;;  %v5275_v28 = vld [vmem:[%s9879_s5 + $0x188] sm:$0xf0] }
 0x10c   :  { %1662 = vmatpush.bf16.msrb.mxu0 %v5230_v36 }
 0x10f   :  { %v639_v45 = vpop.f32.mrf.mxu2 }
 0x110   :  { %v730_v50 = vpop.f32.mrf.mxu0 }
 0x111   :  { %v683_v39 = vpop.f32.mrf.mxu3  ;;  %v7634_v52 = vadd.f32 %v779_v43, %v730_v50  ;;  %v784_v14 = vpop.f32.mrf.mxu1  ;;  %v6445_v43 = vld [vmem:[%s9879_s5 + $0x104] sm:$0xf0] }
 0x112   :  { %v7632_v47 = vadd.f32 %v683_v39, %v634_v11  ;;  %v6463_v11 = vld [vmem:[%s9879_s5 + $0x194] sm:$0xf0]  ;;  %v5210_v55 = vor.u32 %v6445_v43, %v5209_v44  ;;  %v6419_v44 = vld [vmem:[%s9878_s4 + $0x13c] sm:$0xf0]  ;;  %v5094_v43 = vld [vmem:[%s9878_s4 + $0x188] sm:$0xff] }
 0x113   :  { %1082 = vmatmul.bf16.gmra.mxu0 %v7552_v63  ;;  %v5291_v63 = vld [vmem:[%s9879_s5 + $0x1a8] sm:$0xf0]  ;;  %v5282_v12 = vor.u32 %v6463_v11, %v5281_v56 }
 0x114   :  { %994 = vmatmul.bf16.gmra.mxu2 %v7316_v16  ;;  %5066 = vmatmul.msk.bf16.gmra.mxu1 %vm929_vm2, %v7318_v17  ;;  %v5294_v2 = vor.u32 %v6464_v48, %v5291_v63 }
 0x115   :  { %1614 = vmatpush.bf16.msrb.mxu3 %v5282_v12  ;;  %1566 = vmatpush.bf16.msrb.mxu2 %v5210_v55  ;;  %v6429_v12 = vld [vmem:[%s9875_s1 + $0x84] sm:$0xf0]  ;;  %v1828_v55 = vunpack.c.l.b16 %v5094_v43 }
 0x116   :  { %5058 = vmatmul.msk.bf16.gmra.mxu3 %vm929_vm2, %v7318_v17  ;;  %1711 = vmatpush.bf16.msrb.mxu1 %v5294_v2 }
 0x117   :  { %v642_v0 = vpop.f32.mrf.mxu2 }
 0x118   :  { %v732_v25 = vpop.f32.mrf.mxu0 }
 0x119   :  { %v686_v17 = vpop.f32.mrf.mxu3  ;;  %v7656_v3 = vadd.f32 %v781_v51, %v732_v25  ;;  %v786_v4 = vpop.f32.mrf.mxu1  ;;  %v5211_v25 = vld [vmem:[%s9879_s5 + $0x108] sm:$0xf0] }
 0x11a   :  { %v7654_v24 = vadd.f32 %v686_v17, %v637_v20  ;;  %v6446_v20 = vld [vmem:[%s9879_s5 + $0x114] sm:$0xf]  ;;  %v6444_v17 = vld [vmem:[%s9879_s5 + $0x104] sm:$0xf] }
 0x11b   :  { %v5222_v33 = vor.u32 %v6446_v20, %v5219_v22  ;;  %v1854_v22 = vpack.c.b16 %v1828_v55, %v1828_v55 }
 0x11d   :  { %1663 = vmatpush.bf16.msrb.mxu0 %v5222_v33 }
 0x11f   :  { %v644_v29 = vpop.f32.mrf.mxu2 }
 0x120   :  { %v735_v18 = vpop.f32.mrf.mxu0 }
 0x121   :  { %v688_v15 = vpop.f32.mrf.mxu3  ;;  %v7678_v19 = vadd.f32 %v784_v14, %v735_v18  ;;  %v789_v61 = vpop.f32.mrf.mxu1  ;;  %v6460_v14 = vld [vmem:[%s9879_s5 + $0x184] sm:$0xf] }
 0x122   :  { %v7676_v54 = vadd.f32 %v688_v15, %v639_v45  ;;  %v6461_v45 = vld [vmem:[%s9879_s5 + $0x184] sm:$0xf0]  ;;  %v5278_v48 = vor.u32 %v6460_v14, %v5275_v28 }
 0x123   :  { %1087 = vmatmul.bf16.gmra.mxu0 %v7598_v46  ;;  %v5283_v46 = vld [vmem:[%s9879_s5 + $0x198] sm:$0xf0]  ;;  %v5274_v39 = vor.u32 %v6461_v45, %v5273_v41  ;;  %v1829_v45 = vunpack.c.h.b16 %v5094_v43  ;;  %v6417_v43 = vld [vmem:[%s9878_s4 + $0x12c] sm:$0xf0] }
 0x124   :  { %999 = vmatmul.bf16.gmra.mxu2 %v7366_v53  ;;  %5067 = vmatmul.msk.bf16.gmra.mxu1 %vm929_vm2, %v7368_v57  ;;  %v5286_v1 = vor.u32 %v6462_v26, %v5283_v46  ;;  %v6418_v41 = vld [vmem:[%s9878_s4 + $0x13c] sm:$0xf] }
 0x125   :  { %1615 = vmatpush.bf16.msrb.mxu3 %v5274_v39 }
 0x126   :  { %5059 = vmatmul.msk.bf16.gmra.mxu3 %vm929_vm2, %v7368_v57  ;;  %1712 = vmatpush.bf16.msrb.mxu1 %v5286_v1  ;;  %v1905_v1 = vsel %vm954_vm1, %v1854_v22, 0  ;;  %v5387_v22 = vld [vmem:[%s9878_s4 + $0x130] sm:$0xf0] }
 0x127   :  { %v647_v51 = vpop.f32.mrf.mxu2 }
 0x128   :  { %v737_v38 = vpop.f32.mrf.mxu0 }
 0x129   :  { %v691_v57 = vpop.f32.mrf.mxu3  ;;  %v7700_v23 = vadd.f32 %v786_v4, %v737_v38  ;;  %v791_v40 = vpop.f32.mrf.mxu1  ;;  %v5214_v4 = vor.u32 %v6444_v17, %v5211_v25  ;;  %1962 = vmatpush.bf16.msra.mxu3 %v1905_v1  ;;  %v5147_v17 = vld [vmem:[%s9875_s1 + $0x88] sm:$0xf0] }
 0x12a   :  { %v7698_v37 = vadd.f32 %v691_v57, %v642_v0  ;;  %1713 = vmatpush.bf16.msrb.mxu1 %v5278_v48  ;;  %v5153_v48 = vld [vmem:[%s9875_s1 + $0x90] sm:$0xf] }
 0x12b   :  { %1664 = vmatpush.bf16.msrb.mxu0 %v5214_v4 }
 0x12f   :  { %v649_v50 = vpop.f32.mrf.mxu2 }
 0x130   :  { %v740_v63 = vpop.f32.mrf.mxu0 }
 0x131   :  { %v693_v62 = vpop.f32.mrf.mxu3  ;;  %v7716_v0 = vadd.f32 %v789_v61, %v740_v63  ;;  %v794_v2 = vpop.f32.mrf.mxu1  ;;  %v6431_v63 = vld [vmem:[%s9875_s1 + $0x94] sm:$0xf0] }
 0x132   :  { %v7714_v36 = vadd.f32 %v693_v62, %v644_v29  ;;  %v5393_v29 = vld [vmem:[%s9878_s4 + $0x138] sm:$0xf]  ;;  %v1855_v62 = vpack.c.b16 %v1829_v45, %v1829_v45  ;;  %v6427_v45 = vld [vmem:[%s9878_s4 + $0x17c] sm:$0xf0] }
 0x133   :  { %1092 = vmatmul.bf16.gmra.mxu0 %v7316_v16  ;;  %v5394_v15 = vor.u32 %v6419_v44, %v5393_v29  ;;  %v5385_v44 = vld [vmem:[%s9878_s4 + $0x128] sm:$0xf] }
 0x134   :  { %1004 = vmatmul.bf16.gmra.mxu2 %v7414_v31  ;;  %5068 = vmatmul.msk.bf16.gmra.mxu1 %vm929_vm2, %v7416_v32 }
 0x135   :  { %1910 = vmatpush.bf16.msra.mxu2 %v5394_v15  ;;  %v5386_v15 = vor.u32 %v6417_v43, %v5385_v44 }
 0x136   :  { %5060 = vmatmul.msk.bf16.gmra.mxu3 %vm929_vm2, %v7416_v32  ;;  %v5145_v32 = vld [vmem:[%s9875_s1 + $0x80] sm:$0xf] }
 0x137   :  { %v652_v5 = vpop.f32.mrf.mxu2  ;;  %v7749_v20 = vor.u32 %v6429_v12, %v5145_v32 }
 0x138   :  { %v742_v16 = vpop.f32.mrf.mxu0 }
 0x139   :  { %v696_v6 = vpop.f32.mrf.mxu3  ;;  %v7732_v9 = vadd.f32 %v791_v40, %v742_v16  ;;  %v796_v11 = vpop.f32.mrf.mxu1  ;;  %1911 = vmatpush.bf16.msra.mxu2 %v5386_v15 }
 0x13a   :  { %v7730_v56 = vadd.f32 %v696_v6, %v647_v51  ;;  %v7787_v6 = vor.u32 %v6431_v63, %v5153_v48 }
 0x13f   :  { %v654_v18 = vpop.f32.mrf.mxu2 }
 0x140   :  { %v745_v33 = vpop.f32.mrf.mxu0 }
 0x141   :  { %v698_v61 = vpop.f32.mrf.mxu3  ;;  %v7753_v46 = vadd.f32 %v794_v2, %v745_v33  ;;  %v799_v51 = vpop.f32.mrf.mxu1  ;;  %v6428_v2 = vld [vmem:[%s9875_s1 + $0x84] sm:$0xf] }
 0x142   :  { %v7751_v26 = vadd.f32 %v698_v61, %v649_v50  ;;  %v5150_v32 = vor.u32 %v6428_v2, %v5147_v17  ;;  %v6416_v61 = vld [vmem:[%s9878_s4 + $0x12c] sm:$0xf]  ;;  %v5377_v2 = vld [vmem:[%s9878_s4 + $0x118] sm:$0xf]  ;;  %v6415_v17 = vld [vmem:[%s9878_s4 + $0x11c] sm:$0xf0] }
 0x143   :  { %1097 = vmatmul.bf16.gmra.mxu0 %v7366_v53  ;;  %v5395_v53 = vld [vmem:[%s9878_s4 + $0x140] sm:$0xf0]  ;;  %v5390_v1 = vor.u32 %v6416_v61, %v5387_v22  ;;  %v5378_v44 = vor.u32 %v6415_v17, %v5377_v2 }
 0x144   :  { %1567 = vmatmul.bf16.vlgmr.msrb.gmra.mxu2 %v7749_v20  ;;  %5069 = vmatmul.msk.bf16.gmra.mxu1 %vm929_vm2, %v7462_v10  ;;  %v5398_v14 = vor.u32 %v6418_v41, %v5395_v53  ;;  %v5161_v41 = vld [vmem:[%s9875_s1 + $0xa0] sm:$0xf]  ;;  %v5425_v53 = vld [vmem:[%s9878_s4 + $0x178] sm:$0xf] }
 0x145   :  { %1912 = vmatpush.bf16.msra.mxu2 %v5378_v44  ;;  %v5369_v44 = vld [vmem:[%s9878_s4 + $0x108] sm:$0xf] }
 0x146   :  { %5061 = vmatmul.msk.bf16.gmra.mxu3 %vm929_vm2, %v7462_v10  ;;  %2008 = vmatpush.bf16.msra.mxu0 %v5398_v14  ;;  %v5155_v14 = vld [vmem:[%s9875_s1 + $0x98] sm:$0xf0] }
 0x147   :  { %v970_v57 = vpop.f32.mrf.mxu2 }
 0x148   :  { %v971_v40 = vadd.f32 %v970_v57, %v7478_v21  ;;  %v747_v50 = vpop.f32.mrf.mxu0  ;;  %v1908_v21 = vsel %vm954_vm1, %v1855_v62, 0 }
 0x149   :  { %v701_v38 = vpop.f32.mrf.mxu3  ;;  %v7771_v28 = vadd.f32 %v796_v11, %v747_v50  ;;  %v801_v10 = vpop.f32.mrf.mxu1  ;;  %2060 = vmatpush.bf16.msra.mxu1 %v1908_v21  ;;  %v6430_v50 = vld [vmem:[%s9875_s1 + $0x94] sm:$0xf] }
 0x14a   :  { %v7769_v39 = vadd.f32 %v701_v38, %v652_v5  ;;  %2009 = vmatpush.bf16.msra.mxu0 %v5390_v1 }
 0x14f   :  { %v972_v25 = vpop.f32.mrf.mxu2 }
 0x150   :  { %v973_v5 = vadd.f32 %v972_v25, %v7502_v59  ;;  %v750_v11 = vpop.f32.mrf.mxu0 }
 0x151   :  { %v703_v4 = vpop.f32.mrf.mxu3  ;;  %v7791_v12 = vadd.f32 %v799_v51, %v750_v11  ;;  %v1117_v29 = vpop.f32.mrf.mxu1 }
 0x152   :  { %v7789_v16 = vadd.f32 %v703_v4, %v654_v18 }
 0x153   :  { %1102 = vmatmul.bf16.gmra.mxu0 %v7414_v31  ;;  %v1157_v31 = vld [vmem:[%s9880_s6] sm:$0x3] }
 0x154   :  { %1572 = vmatmul.bf16.gmra.mxu2 %v7787_v6  ;;  %1714 = vmatmul.bf16.vlgmr.msrb.gmra.mxu1 %v5150_v32 }
 0x156   :  { %1616 = vmatmul.bf16.vlgmr.msrb.gmra.mxu3 %v5150_v32  ;;  %v5158_v32 = vor.u32 %v6430_v50, %v5155_v14 }
 0x157   :  { %v975_v59 = vpop.f32.mrf.mxu2 }
 0x158   :  { %v976_v55 = vadd.f32 %v975_v59, %v7524_v42  ;;  %v752_v51 = vpop.f32.mrf.mxu0  ;;  %v7813_v42 = vperm.slane %v1157_v31, 0 }
 0x159   :  { %v1019_v18 = vpop.f32.mrf.mxu3  ;;  %v7811_v57 = vadd.f32 %v801_v10, %v752_v51  ;;  %v1119_v38 = vpop.f32.mrf.mxu1  ;;  %v5426_v10 = vor.u32 %v6427_v45, %v5425_v53  ;;  %v7855_v51 = vperm.slane %v1157_v31, 1 }
 0x15a   :  { %v1020_v33 = vadd.f32 %v1019_v18, %v971_v40  ;;  %v6433_v40 = vld [vmem:[%s9875_s1 + $0xa4] sm:$0xf0] }
 0x15b   :  { %v7834_v63 = vor.u32 %v6433_v40, %v5161_v41  ;;  %1963 = vmatpush.bf16.msra.mxu3 %v5426_v10  ;;  %v6414_v41 = vld [vmem:[%s9878_s4 + $0x11c] sm:$0xf]  ;;  %v5379_v40 = vld [vmem:[%s9878_s4 + $0x120] sm:$0xf0] }
 0x15c   :  { %v1163_v25 = vadd.f32 %v7813_v42, %v1020_v33  ;;  %v5382_v50 = vor.u32 %v6414_v41, %v5379_v40 }
 0x15e   :  { %v1195_v18 = vmax.f32 %v1163_v25, 0.0  ;;  %2010 = vmatpush.bf16.msra.mxu0 %v5382_v50 }
 0x15f   :  { %v977_v62 = vpop.f32.mrf.mxu2 }
 0x160   :  { %v978_v21 = vadd.f32 %v977_v62, %v7548_v35  ;;  %v1068_v11 = vpop.f32.mrf.mxu0  ;;  %v5169_v62 = vld [vmem:[%s9875_s1 + $0xb0] sm:$0xf] }
 0x161   :  { %v1021_v48 = vpop.f32.mrf.mxu3  ;;  %v1069_v35 = vadd.f32 %v1068_v11, %v7504_v27  ;;  %v1122_v43 = vpop.f32.mrf.mxu1  ;;  %v5427_v27 = vld [vmem:[%s9878_s4 + $0x180] sm:$0xf0] }
 0x162   :  { %v1022_v4 = vadd.f32 %v1021_v48, %v973_v5  ;;  %v6426_v5 = vld [vmem:[%s9878_s4 + $0x17c] sm:$0xf]  ;;  %v6435_v48 = vld [vmem:[%s9875_s1 + $0xb4] sm:$0xf0] }
 0x163   :  { %v1118_v59 = vadd.f32 %v1117_v29, %v1069_v35  ;;  %1665 = vmatmul.bf16.vlgmr.msrb.gmra.mxu0 %v7749_v20  ;;  %v5430_v22 = vor.u32 %v6426_v5, %v5427_v27  ;;  %v6413_v35 = vld [vmem:[%s9878_s4 + $0x10c] sm:$0xf0] }
 0x164   :  { %v1165_v15 = vadd.f32 %v7813_v42, %v1022_v4  ;;  %1577 = vmatmul.bf16.gmra.mxu2 %v7834_v63  ;;  %1719 = vmatmul.bf16.gmra.mxu1 %v5158_v32  ;;  %v5370_v5 = vor.u32 %v6413_v35, %v5369_v44 }
 0x165   :  { %2061 = vmatpush.bf16.msra.mxu1 %v5430_v22  ;;  %v1164_v31 = vadd.f32 %v7855_v51, %v1118_v59 }
 0x166   :  { %v1197_v61 = vmax.f32 %v1165_v15, 0.0  ;;  %1621 = vmatmul.bf16.gmra.mxu3 %v5158_v32  ;;  %v7880_v32 = vor.u32 %v6435_v48, %v5169_v62  ;;  %1913 = vmatpush.bf16.msra.mxu2 %v5370_v5 }
 0x167   :  { %v980_v29 = vpop.f32.mrf.mxu2 }
 0x168   :  { %v7853_v33 = vpack.c.bf16 %v1197_v61, %v1195_v18  ;;  %v981_v20 = vadd.f32 %v980_v29, %v7570_v58  ;;  %v1070_v45 = vpop.f32.mrf.mxu0 }
 0x169   :  { %v1024_v1 = vpop.f32.mrf.mxu3  ;;  %v1071_v14 = vadd.f32 %v1070_v45, %v7528_v8  ;;  %v1124_v10 = vpop.f32.mrf.mxu1  ;;  %v5163_v8 = vld [vmem:[%s9875_s1 + $0xa8] sm:$0xf0] }
 0x16a   :  { %v1025_v53 = vadd.f32 %v1024_v1, %v976_v55  ;;  %v6432_v55 = vld [vmem:[%s9875_s1 + $0xa4] sm:$0xf] }
 0x16b   :  { %v1120_v58 = vadd.f32 %v1119_v38, %v1071_v14  ;;  %v1196_v38 = vmax.f32 %v1164_v31, 0.0  ;;  %v5166_v61 = vor.u32 %v6432_v55, %v5163_v8 }
 0x16c   :  { %v1167_v15 = vadd.f32 %v7813_v42, %v1025_v53 }
 0x16d   :  { %v1166_v2 = vadd.f32 %v7855_v51, %v1120_v58  ;;  %v6412_v58 = vld [vmem:[%s9878_s4 + $0x10c] sm:$0xf] }
 0x16e   :  { %v1199_v41 = vmax.f32 %v1167_v15, 0.0 }
 0x16f   :  { %v982_v17 = vpop.f32.mrf.mxu2  ;;  %v1198_v25 = vmax.f32 %v1166_v2, 0.0 }
 0x170   :  { %v983_v4 = vadd.f32 %v982_v17, %v7594_v13  ;;  %v1073_v18 = vpop.f32.mrf.mxu0  ;;  %v6437_v17 = vld [vmem:[%s9875_s1 + $0xc4] sm:$0xf0] }
 0x171   :  { %v1026_v11 = vpop.f32.mrf.mxu3  ;;  %v7889_v27 = vpack.c.bf16 %v1198_v25, %v1196_v38  ;;  %v1074_v13 = vadd.f32 %v1073_v18, %v7550_v7  ;;  %v1127_v22 = vpop.f32.mrf.mxu1  ;;  %v5417_v7 = vld [vmem:[%s9878_s4 + $0x168] sm:$0xf]  ;;  %v5171_v25 = vld [vmem:[%s9875_s1 + $0xb8] sm:$0xf0]  ;;  %v6424_v18 = vld [vmem:[%s9878_s4 + $0x16c] sm:$0xf] }
 0x172   :  { %v1027_v59 = vadd.f32 %v1026_v11, %v978_v21 }
 0x173   :  { %v1123_v1 = vadd.f32 %v1122_v43, %v1074_v13  ;;  %1670 = vmatmul.bf16.gmra.mxu0 %v7787_v6  ;;  %v6425_v43 = vld [vmem:[%s9878_s4 + $0x16c] sm:$0xf0] }
 0x174   :  { %v1169_v29 = vadd.f32 %v7813_v42, %v1027_v59  ;;  %1582 = vmatmul.bf16.gmra.mxu2 %v7880_v32  ;;  %1724 = vmatmul.bf16.gmra.mxu1 %v5166_v61  ;;  %v5418_v31 = vor.u32 %v6425_v43, %v5417_v7 }
 0x175   :  { %v1168_v55 = vadd.f32 %v7855_v51, %v1123_v1 }
 0x176   :  { %v1201_v40 = vmax.f32 %v1169_v29, 0.0  ;;  %1626 = vmatmul.bf16.gmra.mxu3 %v5166_v61  ;;  %v5419_v61 = vld [vmem:[%s9878_s4 + $0x170] sm:$0xf0] }
 0x177   :  { %v985_v21 = vpop.f32.mrf.mxu2  ;;  %1964 = vmatpush.bf16.msra.mxu3 %v5418_v31  ;;  %v1200_v11 = vmax.f32 %v1168_v55, 0.0 }
 0x178   :  { %v7895_v53 = vpack.c.bf16 %v1201_v40, %v1199_v41  ;;  %v986_v45 = vadd.f32 %v985_v21, %v7616_v30  ;;  %v1075_v6 = vpop.f32.mrf.mxu0  ;;  %v5371_v30 = vld [vmem:[%s9878_s4 + $0x110] sm:$0xf0]  ;;  %v5422_v41 = vor.u32 %v6424_v18, %v5419_v61  ;;  %v6411_v40 = vld [vmem:[%s9878_s4 + $0xfc] sm:$0xf0] }
 0x179   :  { %v1029_v50 = vpop.f32.mrf.mxu3  ;;  %v1076_v62 = vadd.f32 %v1075_v6, %v7574_v60  ;;  %v1129_v48 = vpop.f32.mrf.mxu1  ;;  %v5374_v2 = vor.u32 %v6412_v58, %v5371_v30  ;;  %v6434_v60 = vld [vmem:[%s9875_s1 + $0xb4] sm:$0xf] }
 0x17a   :  { %v1030_v14 = vadd.f32 %v1029_v50, %v981_v20  ;;  %v5177_v20 = vld [vmem:[%s9875_s1 + $0xc0] sm:$0xf]  ;;  %v5174_v1 = vor.u32 %v6434_v60, %v5171_v25  ;;  %2062 = vmatpush.bf16.msra.mxu1 %v5422_v41  ;;  %v6439_v25 = vld [vmem:[%s9875_s1 + $0xd4] sm:$0xf0] }
 0x17b   :  { %v1125_v8 = vadd.f32 %v1124_v10, %v1076_v62  ;;  %2011 = vmatpush.bf16.msra.mxu0 %v5374_v2  ;;  %v7926_v59 = vor.u32 %v6437_v17, %v5177_v20  ;;  %v6410_v2 = vld [vmem:[%s9878_s4 + $0xfc] sm:$0xf] }
 0x17c   :  { %v1171_v5 = vadd.f32 %v7813_v42, %v1030_v14 }
 0x17d   :  { %v1170_v38 = vadd.f32 %v7855_v51, %v1125_v8 }
 0x17e   :  { %v1203_v6 = vmax.f32 %v1171_v5, 0.0  ;;  %v5409_v5 = vld [vmem:[%s9878_s4 + $0x158] sm:$0xf] }
 0x17f   :  { %v987_v10 = vpop.f32.mrf.mxu2  ;;  %v1202_v44 = vmax.f32 %v1170_v38, 0.0 }
 0x180   :  { %v988_v35 = vadd.f32 %v987_v10, %v7632_v47  ;;  %v1078_v29 = vpop.f32.mrf.mxu0  ;;  %v5361_v47 = vld [vmem:[%s9878_s4 + $0xf8] sm:$0xf] }
 0x181   :  { %v1031_v15 = vpop.f32.mrf.mxu3  ;;  %v1079_v21 = vadd.f32 %v1078_v29, %v7596_v49  ;;  %v1132_v50 = vpop.f32.mrf.mxu1  ;;  %v5362_v7 = vor.u32 %v6411_v40, %v5361_v47  ;;  %v7942_v43 = vpack.c.bf16 %v1202_v44, %v1200_v11 }
 0x182   :  { %v1032_v13 = vadd.f32 %v1031_v15, %v983_v4 }
 0x183   :  { %v1128_v4 = vadd.f32 %v1127_v22, %v1079_v21  ;;  %1675 = vmatmul.bf16.gmra.mxu0 %v7834_v63  ;;  %1914 = vmatpush.bf16.msra.mxu2 %v5362_v7  ;;  %v5363_v22 = vld [vmem:[%s9878_s4 + $0x100] sm:$0xf0]  ;;  %v6409_v21 = vld [vmem:[%s9878_s4 + $0xec] sm:$0xf0] }
 0x184   :  { %v1173_v14 = vadd.f32 %v7813_v42, %v1032_v13  ;;  %1587 = vmatmul.bf16.gmra.mxu2 %v7926_v59  ;;  %1729 = vmatmul.bf16.gmra.mxu1 %v5174_v1  ;;  %v5366_v8 = vor.u32 %v6410_v2, %v5363_v22  ;;  %v6423_v13 = vld [vmem:[%s9878_s4 + $0x15c] sm:$0xf0] }
 0x185   :  { %v1172_v38 = vadd.f32 %v7855_v51, %v1128_v4  ;;  %v5410_v40 = vor.u32 %v6423_v13, %v5409_v5 }
 0x186   :  { %v1205_v31 = vmax.f32 %v1173_v14, 0.0  ;;  %1631 = vmatmul.bf16.gmra.mxu3 %v5174_v1  ;;  %2012 = vmatpush.bf16.msra.mxu0 %v5366_v8 }
 0x187   :  { %v990_v58 = vpop.f32.mrf.mxu2  ;;  %1965 = vmatpush.bf16.msra.mxu3 %v5410_v40 }
 0x188   :  { %v7947_v30 = vpack.c.bf16 %v1205_v31, %v1203_v6  ;;  %v991_v49 = vadd.f32 %v990_v58, %v7654_v24  ;;  %v1080_v55 = vpop.f32.mrf.mxu0  ;;  %v5185_v24 = vld [vmem:[%s9875_s1 + $0xd0] sm:$0xf] }
 0x189   :  { %v1034_v62 = vpop.f32.mrf.mxu3  ;;  %v1081_v20 = vadd.f32 %v1080_v55, %v7618_v34  ;;  %v1134_v17 = vpop.f32.mrf.mxu1  ;;  %v5179_v34 = vld [vmem:[%s9875_s1 + $0xc8] sm:$0xf0]  ;;  %v7974_v61 = vor.u32 %v6439_v25, %v5185_v24  ;;  %v6422_v55 = vld [vmem:[%s9878_s4 + $0x15c] sm:$0xf] }
 0x18a   :  { %v1035_v63 = vadd.f32 %v1034_v62, %v986_v45  ;;  %v6436_v45 = vld [vmem:[%s9875_s1 + $0xc4] sm:$0xf] }
 0x18b   :  { %v1130_v60 = vadd.f32 %v1129_v48, %v1081_v20  ;;  %v1204_v48 = vmax.f32 %v1172_v38, 0.0  ;;  %v5182_v47 = vor.u32 %v6436_v45, %v5179_v34  ;;  %v6408_v38 = vld [vmem:[%s9878_s4 + $0xec] sm:$0xf] }
 0x18c   :  { %v1175_v29 = vadd.f32 %v7813_v42, %v1035_v63 }
 0x18d   :  { %v1174_v10 = vadd.f32 %v7855_v51, %v1130_v60 }
 0x18e   :  { %v1207_v58 = vmax.f32 %v1175_v29, 0.0  ;;  %v5337_v29 = vld [vmem:[%s9878_s4 + $0xc8] sm:$0xf] }
 0x18f   :  { %v992_v11 = vpop.f32.mrf.mxu2  ;;  %v1206_v44 = vmax.f32 %v1174_v10, 0.0  ;;  %v5345_v10 = vld [vmem:[%s9878_s4 + $0xd8] sm:$0xf] }
 0x190   :  { %v7972_v15 = vadd.f32 %v992_v11, %v7676_v54  ;;  %v1083_v41 = vpop.f32.mrf.mxu0  ;;  %v5353_v54 = vld [vmem:[%s9878_s4 + $0xe8] sm:$0xf]  ;;  %v5193_v11 = vld [vmem:[%s9875_s1 + $0xe0] sm:$0xf] }
 0x191   :  { %v1036_v18 = vpop.f32.mrf.mxu3  ;;  %v1084_v7 = vadd.f32 %v1083_v41, %v7634_v52  ;;  %v1137_v14 = vpop.f32.mrf.mxu1  ;;  %v5354_v4 = vor.u32 %v6409_v21, %v5353_v54  ;;  %v7990_v6 = vpack.c.bf16 %v1206_v44, %v1204_v48 }
 0x192   :  { %v1037_v1 = vadd.f32 %v1036_v18, %v988_v35  ;;  %v6438_v18 = vld [vmem:[%s9875_s1 + $0xd4] sm:$0xf] }
 0x193   :  { %v1133_v35 = vadd.f32 %v1132_v50, %v1084_v7  ;;  %1680 = vmatmul.bf16.gmra.mxu0 %v7880_v32  ;;  %1915 = vmatpush.bf16.msra.mxu2 %v5354_v4  ;;  %v5411_v50 = vld [vmem:[%s9878_s4 + $0x160] sm:$0xf0] }
 0x194   :  { %v1177_v31 = vadd.f32 %v7813_v42, %v1037_v1  ;;  %1592 = vmatmul.bf16.gmra.mxu2 %v7974_v61  ;;  %1734 = vmatmul.bf16.gmra.mxu1 %v5182_v47  ;;  %v5414_v20 = vor.u32 %v6422_v55, %v5411_v50  ;;  %v6405_v1 = vld [vmem:[%s9878_s4 + $0xcc] sm:$0xf0] }
 0x195   :  { %v1176_v45 = vadd.f32 %v7855_v51, %v1133_v35  ;;  %v5338_v21 = vor.u32 %v6405_v1, %v5337_v29 }
 0x196   :  { %v1209_v62 = vmax.f32 %v1177_v31, 0.0  ;;  %1636 = vmatmul.bf16.gmra.mxu3 %v5182_v47  ;;  %2063 = vmatpush.bf16.msra.mxu1 %v5414_v20  ;;  %v6406_v20 = vld [vmem:[%s9878_s4 + $0xdc] sm:$0xf] }
 0x197   :  { %v995_v2 = vpop.f32.mrf.mxu2  ;;  %v1208_v41 = vmax.f32 %v1176_v45, 0.0 }
 0x198   :  { %v7995_v22 = vpack.c.bf16 %v1209_v62, %v1207_v58  ;;  %v996_v52 = vadd.f32 %v995_v2, %v7698_v37  ;;  %v1085_v8 = vpop.f32.mrf.mxu0  ;;  %v5355_v37 = vld [vmem:[%s9878_s4 + $0xf0] sm:$0xf0] }
 0x199   :  { %v1039_v63 = vpop.f32.mrf.mxu3  ;;  %v1086_v60 = vadd.f32 %v1085_v8, %v7656_v3  ;;  %v1139_v24 = vpop.f32.mrf.mxu1  ;;  %v5358_v25 = vor.u32 %v6408_v38, %v5355_v37  ;;  %v6441_v3 = vld [vmem:[%s9875_s1 + $0xe4] sm:$0xf0] }
 0x19a   :  { %v1040_v32 = vadd.f32 %v1039_v63, %v991_v49  ;;  %v6407_v49 = vld [vmem:[%s9878_s4 + $0xdc] sm:$0xf0]  ;;  %v8031_v13 = vor.u32 %v6441_v3, %v5193_v11  ;;  %v6443_v11 = vld [vmem:[%s9875_s1 + $0xf4] sm:$0xf0] }
 0x19b   :  { %v1135_v34 = vadd.f32 %v1134_v17, %v1086_v60  ;;  %2013 = vmatpush.bf16.msra.mxu0 %v5358_v25  ;;  %v5346_v48 = vor.u32 %v6407_v49, %v5345_v10  ;;  %v5187_v17 = vld [vmem:[%s9875_s1 + $0xd8] sm:$0xf0]  ;;  %v5401_v60 = vld [vmem:[%s9878_s4 + $0x148] sm:$0xf] }
 0x19c   :  { %v1179_v7 = vadd.f32 %v7813_v42, %v1040_v32  ;;  %v5190_v35 = vor.u32 %v6438_v18, %v5187_v17  ;;  %v6420_v18 = vld [vmem:[%s9878_s4 + $0x14c] sm:$0xf]  ;;  %v5403_v17 = vld [vmem:[%s9878_s4 + $0x150] sm:$0xf0] }
 0x19d   :  { %v1178_v44 = vadd.f32 %v7855_v51, %v1135_v34  ;;  %1916 = vmatpush.bf16.msra.mxu2 %v5346_v48  ;;  %v5195_v48 = vld [vmem:[%s9875_s1 + $0xe8] sm:$0xf0] }
 0x19f   :  { %v997_v5 = vpop.f32.mrf.mxu2  ;;  %v1210_v47 = vmax.f32 %v1178_v44, 0.0 }
 0x1a0   :  { %v998_v40 = vadd.f32 %v997_v5, %v7714_v36  ;;  %v1088_v31 = vpop.f32.mrf.mxu0  ;;  %v1211_v36 = vmax.f32 %v1179_v7, 0.0 }
 0x1a1   :  { %v1041_v54 = vpop.f32.mrf.mxu3  ;;  %v1089_v58 = vadd.f32 %v1088_v31, %v7678_v19  ;;  %v1142_v62 = vpop.f32.mrf.mxu1  ;;  %1917 = vmatpush.bf16.msra.mxu2 %v5338_v21  ;;  %v8043_v2 = vpack.c.bf16 %v1210_v47, %v1208_v41  ;;  %v5406_v47 = vor.u32 %v6420_v18, %v5403_v17  ;;  %v5707_v18 = vld [vmem:[%s9879_s5 + $0x2f0] sm:$0xf] }
 0x1a2   :  { %v1042_v4 = vadd.f32 %v1041_v54, %v7972_v15 }
 0x1a3   :  { %v1138_v55 = vadd.f32 %v1137_v14, %v1089_v58  ;;  %1685 = vmatmul.bf16.gmra.mxu0 %v7926_v59  ;;  %v5347_v14 = vld [vmem:[%s9878_s4 + $0xe0] sm:$0xf0]  ;;  %2064 = vmatpush.bf16.msra.mxu1 %v5406_v47 }
 0x1a4   :  { %v1181_v63 = vadd.f32 %v7813_v42, %v1042_v4  ;;  %1597 = vmatmul.bf16.gmra.mxu2 %v8031_v13  ;;  %1739 = vmatmul.bf16.gmra.mxu1 %v5190_v35  ;;  %v5350_v37 = vor.u32 %v6406_v20, %v5347_v14 }
 0x1a5   :  { %v1180_v45 = vadd.f32 %v7855_v51, %v1138_v55 }
 0x1a6   :  { %v1213_v50 = vmax.f32 %v1181_v63, 0.0  ;;  %1641 = vmatmul.bf16.gmra.mxu3 %v5190_v35  ;;  %2014 = vmatpush.bf16.msra.mxu0 %v5350_v37 }
 0x1a7   :  { %v1000_v15 = vpop.f32.mrf.mxu2  ;;  %v1212_v5 = vmax.f32 %v1180_v45, 0.0 }
 0x1a8   :  { %v8048_v32 = vpack.c.bf16 %v1213_v50, %v1211_v36  ;;  %v1001_v19 = vadd.f32 %v1000_v15, %v7730_v56  ;;  %v1090_v59 = vpop.f32.mrf.mxu0  ;;  %v6421_v56 = vld [vmem:[%s9878_s4 + $0x14c] sm:$0xf0] }
 0x1a9   :  { %v1044_v8 = vpop.f32.mrf.mxu3  ;;  %v1091_v25 = vadd.f32 %v1090_v59, %v7700_v23  ;;  %v1144_v10 = vpop.f32.mrf.mxu1  ;;  %v5402_v49 = vor.u32 %v6421_v56, %v5401_v60  ;;  %v6440_v23 = vld [vmem:[%s9875_s1 + $0xe4] sm:$0xf]  ;;  %v6442_v56 = vld [vmem:[%s9875_s1 + $0xf4] sm:$0xf] }
 0x1aa   :  { %v1045_v38 = vadd.f32 %v1044_v8, %v996_v52  ;;  %v5201_v52 = vld [vmem:[%s9875_s1 + $0xf0] sm:$0xf]  ;;  %v5198_v4 = vor.u32 %v6440_v23, %v5195_v48  ;;  %v6404_v8 = vld [vmem:[%s9878_s4 + $0xcc] sm:$0xf] }
 0x1ab   :  { %v1140_v34 = vadd.f32 %v1139_v24, %v1091_v25  ;;  %1966 = vmatpush.bf16.msra.mxu3 %v5402_v49  ;;  %v8078_v44 = vor.u32 %v6443_v11, %v5201_v52  ;;  %v5203_v25 = vld [vmem:[%s9875_s1 + $0xf8] sm:$0xf0]  ;;  %v6531_v52 = vld [vmem:[%s9879_s5 + $0x274] sm:$0xf0] }
 0x1ac   :  { %v1183_v54 = vadd.f32 %v7813_v42, %v1045_v38  ;;  %v5206_v48 = vor.u32 %v6442_v56, %v5203_v25 }
 0x1ad   :  { %v1182_v3 = vadd.f32 %v7855_v51, %v1140_v34 }
 0x1af   :  { %v1002_v24 = vpop.f32.mrf.mxu2  ;;  %v1214_v29 = vmax.f32 %v1182_v3, 0.0 }
 0x1b0   :  { %v1003_v1 = vadd.f32 %v1002_v24, %v7751_v26  ;;  %v1093_v7 = vpop.f32.mrf.mxu0  ;;  %v1215_v26 = vmax.f32 %v1183_v54, 0.0 }
 0x1b1   :  { %v1046_v41 = vpop.f32.mrf.mxu3  ;;  %v1094_v31 = vadd.f32 %v1093_v7, %v7716_v0  ;;  %v1147_v35 = vpop.f32.mrf.mxu1  ;;  %v8089_v58 = vpack.c.bf16 %v1214_v29, %v1212_v5  ;;  %v5645_v7 = vld [vmem:[%s9879_s5 + $0x278] sm:$0xf0] }
 0x1b2   :  { %v1047_v21 = vadd.f32 %v1046_v41, %v998_v40 }
 0x1b3   :  { %v1143_v55 = vadd.f32 %v1142_v62, %v1094_v31  ;;  %1690 = vmatmul.bf16.gmra.mxu0 %v7974_v61  ;;  %v5339_v62 = vld [vmem:[%s9878_s4 + $0xd0] sm:$0xf0]  ;;  %v5709_v31 = vld [vmem:[%s9879_s5 + $0x2f8] sm:$0xf0] }
 0x1b4   :  { %v1185_v63 = vadd.f32 %v7813_v42, %v1047_v21  ;;  %1602 = vmatmul.bf16.gmra.mxu2 %v8078_v44  ;;  %1744 = vmatmul.bf16.gmra.mxu1 %v5198_v4  ;;  %v5342_v14 = vor.u32 %v6404_v8, %v5339_v62  ;;  %v5635_v62 = vld [vmem:[%s9879_s5 + $0x260] sm:$0xf] }
 0x1b5   :  { %v1184_v37 = vadd.f32 %v7855_v51, %v1143_v55 }
 0x1b6   :  { %v1217_v36 = vmax.f32 %v1185_v63, 0.0  ;;  %1646 = vmatmul.bf16.gmra.mxu3 %v5198_v4  ;;  %2015 = vmatpush.bf16.msra.mxu0 %v5342_v14 }
 0x1b7   :  { %v1005_v40 = vpop.f32.mrf.mxu2  ;;  %v1216_v49 = vmax.f32 %v1184_v37, 0.0 }
 0x1b8   :  { %v8094_v50 = vpack.c.bf16 %v1217_v36, %v1215_v26  ;;  %v1006_v0 = vadd.f32 %v1005_v40, %v7769_v39  ;;  %v1095_v61 = vpop.f32.mrf.mxu0 }
 0x1b9   :  { %v1049_v15 = vpop.f32.mrf.mxu3  ;;  %v1096_v38 = vadd.f32 %v1095_v61, %v7732_v9  ;;  %v1149_v59 = vpop.f32.mrf.mxu1  ;;  %v5699_v61 = vld [vmem:[%s9879_s5 + $0x2e0] sm:$0xf] }
 0x1ba   :  { %v1050_v20 = vadd.f32 %v1049_v15, %v1001_v19 }
 0x1bb   :  { %v1145_v60 = vadd.f32 %v1144_v10, %v1096_v38  ;;  %v5643_v10 = vld [vmem:[%s9879_s5 + $0x270] sm:$0xf] }
 0x1bc   :  { %v1187_v11 = vadd.f32 %v7813_v42, %v1050_v20  ;;  %v5644_v24 = vor.u32 %v6531_v52, %v5643_v10  ;;  %v6529_v20 = vld [vmem:[%s9879_s5 + $0x264] sm:$0xf0] }
 0x1bd   :  { %v1186_v39 = vadd.f32 %v7855_v51, %v1145_v60  ;;  %v5636_v14 = vor.u32 %v6529_v20, %v5635_v62 }
 0x1be   :  { %2509 = vmatpush.bf16.msrb.mxu2 %v5644_v24  ;;  %v1219_v54 = vmax.f32 %v1187_v11, 0.0  ;;  %v5701_v24 = vld [vmem:[%s9879_s5 + $0x2e8] sm:$0xf0] }
 0x1bf   :  { %v1007_v19 = vpop.f32.mrf.mxu2  ;;  %v1218_v45 = vmax.f32 %v1186_v39, 0.0 }
 0x1c0   :  { %v1008_v9 = vadd.f32 %v1007_v19, %v7789_v16  ;;  %v1098_v23 = vpop.f32.mrf.mxu0  ;;  %v6547_v16 = vld [vmem:[%s9879_s5 + $0x2f4] sm:$0xf0] }
 0x1c1   :  { %v1051_v34 = vpop.f32.mrf.mxu3  ;;  %v1099_v17 = vadd.f32 %v1098_v23, %v7753_v46  ;;  %v1152_v5 = vpop.f32.mrf.mxu1  ;;  %v5708_v29 = vor.u32 %v6547_v16, %v5707_v18  ;;  %v8127_v41 = vpack.c.bf16 %v1218_v45, %v1216_v49  ;;  %v6530_v46 = vld [vmem:[%s9879_s5 + $0x274] sm:$0xf] }
 0x1c2   :  { %v1052_v3 = vadd.f32 %v1051_v34, %v1003_v1  ;;  %v5648_v4 = vor.u32 %v6530_v46, %v5645_v7  ;;  %2510 = vmatpush.bf16.msrb.mxu2 %v5636_v14  ;;  %v5691_v46 = vld [vmem:[%s9879_s5 + $0x2d0] sm:$0xf] }
 0x1c3   :  { %v1148_v1 = vadd.f32 %v1147_v35, %v1099_v17  ;;  %1695 = vmatmul.bf16.gmra.mxu0 %v8031_v13  ;;  %2558 = vmatpush.bf16.msrb.mxu3 %v5708_v29  ;;  %v6546_v13 = vld [vmem:[%s9879_s5 + $0x2f4] sm:$0xf] }
 0x1c4   :  { %v1189_v47 = vadd.f32 %v7813_v42, %v1052_v3  ;;  %1918 = vmatmul.bf16.vlgmr.msra.gmra.mxu2 %v7853_v33  ;;  %1749 = vmatmul.bf16.gmra.mxu1 %v5206_v48  ;;  %v5712_v63 = vor.u32 %v6546_v13, %v5709_v31 }
 0x1c5   :  { %2607 = vmatpush.bf16.msrb.mxu0 %v5648_v4  ;;  %v6543_v4 = vld [vmem:[%s9879_s5 + $0x2d4] sm:$0xf0] }
 0x1c6   :  { %v1221_v21 = vmax.f32 %v1189_v47, 0.0  ;;  %1651 = vmatmul.bf16.gmra.mxu3 %v5206_v48  ;;  %2656 = vmatpush.bf16.msrb.mxu1 %v5712_v63  ;;  %v5692_v31 = vor.u32 %v6543_v4, %v5691_v46  ;;  %v6523_v46 = vld [vmem:[%s9879_s5 + $0x234] sm:$0xf0] }
 0x1c7   :  { %v1568_v35 = vpop.f32.mrf.mxu2 }
 0x1c8   :  { %v8144_v55 = vpack.c.bf16 %v1221_v21, %v1219_v54  ;;  %v1100_v40 = vpop.f32.mrf.mxu0  ;;  %v5627_v54 = vld [vmem:[%s9879_s5 + $0x250] sm:$0xf]  ;;  %v6527_v21 = vld [vmem:[%s9879_s5 + $0x254] sm:$0xf0] }
 0x1c9   :  { %v1054_v26 = vpop.f32.mrf.mxu3  ;;  %v1101_v15 = vadd.f32 %v1100_v40, %v7771_v28  ;;  %v1154_v8 = vpop.f32.mrf.mxu1  ;;  %v1188_v28 = vadd.f32 %v7855_v51, %v1148_v1  ;;  %v5628_v7 = vor.u32 %v6527_v21, %v5627_v54  ;;  %v5611_v21 = vld [vmem:[%s9879_s5 + $0x230] sm:$0xf] }
 0x1ca   :  { %v1055_v36 = vadd.f32 %v1054_v26, %v1006_v0  ;;  %v6545_v0 = vld [vmem:[%s9879_s5 + $0x2e4] sm:$0xf0]  ;;  %v5612_v4 = vor.u32 %v6523_v46, %v5611_v21  ;;  %v5595_v21 = vld [vmem:[%s9879_s5 + $0x210] sm:$0xf]  ;;  %v6519_v46 = vld [vmem:[%s9879_s5 + $0x214] sm:$0xf0] }
 0x1cb   :  { %v1150_v38 = vadd.f32 %v1149_v59, %v1101_v15  ;;  %v5700_v37 = vor.u32 %v6545_v0, %v5699_v61  ;;  %v1220_v56 = vmax.f32 %v1188_v28, 0.0  ;;  %2511 = vmatpush.bf16.msrb.mxu2 %v5628_v7  ;;  %v6542_v0 = vld [vmem:[%s9879_s5 + $0x2d4] sm:$0xf]  ;;  %v5675_v7 = vld [vmem:[%s9879_s5 + $0x2b0] sm:$0xf] }
 0x1cc   :  { %v1191_v49 = vadd.f32 %v7813_v42, %v1055_v36 }
 0x1cd   :  { %v1190_v60 = vadd.f32 %v7855_v51, %v1150_v38  ;;  %2559 = vmatpush.bf16.msrb.mxu3 %v5700_v37 }
 0x1ce   :  { %v1223_v23 = vmax.f32 %v1191_v49, 0.0  ;;  %v6525_v49 = vld [vmem:[%s9879_s5 + $0x244] sm:$0xf0] }
 0x1cf   :  { %v1570_v39 = vpop.f32.mrf.mxu2  ;;  %v1222_v25 = vmax.f32 %v1190_v60, 0.0 }
 0x1d0   :  { %v1103_v34 = vpop.f32.mrf.mxu0 }
 0x1d1   :  { %v1056_v19 = vpop.f32.mrf.mxu3  ;;  %v1104_v10 = vadd.f32 %v1103_v34, %v7791_v12  ;;  %v1715_v52 = vpop.f32.mrf.mxu1  ;;  %v8163_v11 = vpack.c.bf16 %v1222_v25, %v1220_v56  ;;  %v6528_v12 = vld [vmem:[%s9879_s5 + $0x264] sm:$0xf]  ;;  %2560 = vmatpush.bf16.msrb.mxu3 %v5692_v31 }
 0x1d2   :  { %v1057_v45 = vadd.f32 %v1056_v19, %v1008_v9  ;;  %v5619_v19 = vld [vmem:[%s9879_s5 + $0x240] sm:$0xf] }
 0x1d3   :  { %v1153_v3 = vadd.f32 %v1152_v5, %v1104_v10  ;;  %1700 = vmatmul.bf16.gmra.mxu0 %v8078_v44  ;;  %v6544_v44 = vld [vmem:[%s9879_s5 + $0x2e4] sm:$0xf]  ;;  %v5620_v34 = vor.u32 %v6525_v49, %v5619_v19  ;;  %v6541_v10 = vld [vmem:[%s9879_s5 + $0x2c4] sm:$0xf0]  ;;  %v5667_v19 = vld [vmem:[%s9879_s5 + $0x2a0] sm:$0xf] }
 0x1d4   :  { %v1193_v59 = vadd.f32 %v7813_v42, %v1057_v45  ;;  %1923 = vmatmul.bf16.gmra.mxu2 %v7895_v53  ;;  %5439 = vmatmul.msk.bf16.vlgmr.msra.gmra.mxu1 %vm929_vm2, %v7889_v27  ;;  %v5637_v42 = vld [vmem:[%s9879_s5 + $0x268] sm:$0xf0]  ;;  %v5704_v16 = vor.u32 %v6544_v44, %v5701_v24  ;;  %v5683_v45 = vld [vmem:[%s9879_s5 + $0x2c0] sm:$0xf]  ;;  %v6540_v24 = vld [vmem:[%s9879_s5 + $0x2c4] sm:$0xf] }
 0x1d5   :  { %v5640_v9 = vor.u32 %v6528_v12, %v5637_v42  ;;  %2512 = vmatpush.bf16.msrb.mxu2 %v5620_v34  ;;  %v5621_v44 = vld [vmem:[%s9879_s5 + $0x248] sm:$0xf0] }
 0x1d6   :  { %v1225_v48 = vmax.f32 %v1193_v59, 0.0  ;;  %5431 = vmatmul.msk.bf16.vlgmr.msra.gmra.mxu3 %vm929_vm2, %v7889_v27  ;;  %2657 = vmatpush.bf16.msrb.mxu1 %v5704_v16 }
 0x1d7   :  { %v1573_v18 = vpop.f32.mrf.mxu2  ;;  %2608 = vmatpush.bf16.msrb.mxu0 %v5640_v9  ;;  %v6524_v9 = vld [vmem:[%s9879_s5 + $0x244] sm:$0xf] }
 0x1d8   :  { %v8184_v27 = vpack.c.bf16 %v1225_v48, %v1223_v23  ;;  %v1105_v29 = vpop.f32.mrf.mxu0 }
 0x1d9   :  { %v1617_v17 = vpop.f32.mrf.mxu3  ;;  %v1106_v47 = vadd.f32 %v1105_v29, %v7811_v57  ;;  %v1717_v1 = vpop.f32.mrf.mxu1  ;;  %v1192_v57 = vadd.f32 %v7855_v51, %v1153_v3  ;;  %2513 = vmatpush.bf16.msrb.mxu2 %v5612_v4  ;;  %v5596_v4 = vor.u32 %v6519_v46, %v5595_v21 }
 0x1da   :  { %v8186_v5 = vadd.f32 %v1617_v17, %v1568_v35 }
 0x1db   :  { %v1155_v13 = vadd.f32 %v1154_v8, %v1106_v47  ;;  %v1224_v26 = vmax.f32 %v1192_v57, 0.0  ;;  %v5629_v8 = vld [vmem:[%s9879_s5 + $0x258] sm:$0xf0]  ;;  %v6539_v57 = vld [vmem:[%s9879_s5 + $0x2b4] sm:$0xf0] }
 0x1dd   :  { %v1194_v35 = vadd.f32 %v7855_v51, %v1155_v13  ;;  %v6526_v51 = vld [vmem:[%s9879_s5 + $0x254] sm:$0xf]  ;;  %v5676_v13 = vor.u32 %v6539_v57, %v5675_v7  ;;  %v5659_v7 = vld [vmem:[%s9879_s5 + $0x290] sm:$0xf]  ;;  %v6535_v57 = vld [vmem:[%s9879_s5 + $0x294] sm:$0xf0] }
 0x1de   :  { %v5632_v28 = vor.u32 %v6526_v51, %v5629_v8  ;;  %v6538_v51 = vld [vmem:[%s9879_s5 + $0x2b4] sm:$0xf] }
 0x1df   :  { %v1575_v63 = vpop.f32.mrf.mxu2  ;;  %v1226_v36 = vmax.f32 %v1194_v35, 0.0 }
 0x1e0   :  { %v1666_v62 = vpop.f32.mrf.mxu0  ;;  %2609 = vmatpush.bf16.msrb.mxu0 %v5632_v28 }
 0x1e1   :  { %v1619_v40 = vpop.f32.mrf.mxu3  ;;  %v8205_v20 = vadd.f32 %v1715_v52, %v1666_v62  ;;  %v1720_v61 = vpop.f32.mrf.mxu1  ;;  %v8207_v14 = vpack.c.bf16 %v1226_v36, %v1224_v26  ;;  %v5684_v52 = vor.u32 %v6541_v10, %v5683_v45  ;;  %v6522_v62 = vld [vmem:[%s9879_s5 + $0x234] sm:$0xf]  ;;  %v6537_v45 = vld [vmem:[%s9879_s5 + $0x2a4] sm:$0xf0] }
 0x1e2   :  { %v8203_v15 = vadd.f32 %v1619_v40, %v1570_v39  ;;  %v5668_v34 = vor.u32 %v6537_v45, %v5667_v19 }
 0x1e3   :  { %2016 = vmatmul.bf16.vlgmr.msra.gmra.mxu0 %v7853_v33  ;;  %v5693_v33 = vld [vmem:[%s9879_s5 + $0x2d8] sm:$0xf0]  ;;  %2561 = vmatpush.bf16.msrb.mxu3 %v5684_v52 }
 0x1e4   :  { %1928 = vmatmul.bf16.gmra.mxu2 %v7947_v30  ;;  %5440 = vmatmul.msk.bf16.gmra.mxu1 %vm929_vm2, %v7942_v43  ;;  %v5696_v37 = vor.u32 %v6542_v0, %v5693_v33 }
 0x1e6   :  { %5432 = vmatmul.msk.bf16.gmra.mxu3 %vm929_vm2, %v7942_v43  ;;  %2658 = vmatpush.bf16.msrb.mxu1 %v5696_v37 }
 0x1e7   :  { %v1578_v38 = vpop.f32.mrf.mxu2  ;;  %2562 = vmatpush.bf16.msrb.mxu3 %v5676_v13  ;;  %v5660_v13 = vor.u32 %v6535_v57, %v5659_v7 }
 0x1e8   :  { %v1668_v39 = vpop.f32.mrf.mxu0 }
 0x1e9   :  { %v1622_v43 = vpop.f32.mrf.mxu3  ;;  %v8229_v56 = vadd.f32 %v1717_v1, %v1668_v39  ;;  %v1722_v25 = vpop.f32.mrf.mxu1  ;;  %v5603_v39 = vld [vmem:[%s9879_s5 + $0x220] sm:$0xf] }
 0x1ea   :  { %v8227_v60 = vadd.f32 %v1622_v43, %v1573_v18  ;;  %v5624_v18 = vor.u32 %v6524_v9, %v5621_v44  ;;  %v6520_v9 = vld [vmem:[%s9879_s5 + $0x224] sm:$0xf]  ;;  %v5605_v44 = vld [vmem:[%s9879_s5 + $0x228] sm:$0xf0] }
 0x1eb   :  { %2563 = vmatpush.bf16.msrb.mxu3 %v5668_v34  ;;  %v5651_v34 = vld [vmem:[%s9879_s5 + $0x280] sm:$0xf] }
 0x1ec   :  { %2610 = vmatpush.bf16.msrb.mxu0 %v5624_v18  ;;  %v5608_v18 = vor.u32 %v6520_v9, %v5605_v44  ;;  %v5653_v9 = vld [vmem:[%s9879_s5 + $0x288] sm:$0xf0] }
 0x1ef   :  { %v1580_v59 = vpop.f32.mrf.mxu2  ;;  %2564 = vmatpush.bf16.msrb.mxu3 %v5660_v13  ;;  %v6501_v13 = vld [vmem:[%s9875_s1 + $0x104] sm:$0xf0] }
 0x1f0   :  { %v1671_v48 = vpop.f32.mrf.mxu0 }
 0x1f1   :  { %v1624_v3 = vpop.f32.mrf.mxu3  ;;  %v8245_v12 = vadd.f32 %v1720_v61, %v1671_v48  ;;  %v1725_v42 = vpop.f32.mrf.mxu1  ;;  %v5613_v61 = vld [vmem:[%s9879_s5 + $0x238] sm:$0xf0] }
 0x1f2   :  { %v8243_v23 = vadd.f32 %v1624_v3, %v1575_v63  ;;  %v5616_v8 = vor.u32 %v6522_v62, %v5613_v61 }
 0x1f3   :  { %2021 = vmatmul.bf16.gmra.mxu0 %v7895_v53  ;;  %v5685_v53 = vld [vmem:[%s9879_s5 + $0x2c8] sm:$0xf0] }
 0x1f4   :  { %1933 = vmatmul.bf16.gmra.mxu2 %v7995_v22  ;;  %5441 = vmatmul.msk.bf16.gmra.mxu1 %vm929_vm2, %v7990_v6  ;;  %v5688_v17 = vor.u32 %v6540_v24, %v5685_v53  ;;  %v6536_v24 = vld [vmem:[%s9879_s5 + $0x2a4] sm:$0xf] }
 0x1f5   :  { %2611 = vmatpush.bf16.msrb.mxu0 %v5616_v8 }
 0x1f6   :  { %5433 = vmatmul.msk.bf16.gmra.mxu3 %vm929_vm2, %v7990_v6  ;;  %2659 = vmatpush.bf16.msrb.mxu1 %v5688_v17 }
 0x1f7   :  { %v1583_v16 = vpop.f32.mrf.mxu2 }
 0x1f8   :  { %v1673_v47 = vpop.f32.mrf.mxu0 }
 0x1f9   :  { %v1627_v6 = vpop.f32.mrf.mxu3  ;;  %v8267_v1 = vadd.f32 %v1722_v25, %v1673_v47  ;;  %v1727_v54 = vpop.f32.mrf.mxu1  ;;  %v6521_v25 = vld [vmem:[%s9879_s5 + $0x224] sm:$0xf0]  ;;  %2612 = vmatpush.bf16.msrb.mxu0 %v5608_v18 }
 0x1fa   :  { %v8265_v29 = vadd.f32 %v1627_v6, %v1578_v38  ;;  %v5604_v49 = vor.u32 %v6521_v25, %v5603_v39 }
 0x1fc   :  { %2514 = vmatpush.bf16.msrb.mxu2 %v5604_v49 }
 0x1ff   :  { %v1585_v31 = vpop.f32.mrf.mxu2 }
 0x200   :  { %v1676_v26 = vpop.f32.mrf.mxu0  ;;  %2515 = vmatpush.bf16.msrb.mxu2 %v5596_v4 }
 0x201   :  { %v1629_v35 = vpop.f32.mrf.mxu3  ;;  %v8283_v36 = vadd.f32 %v1725_v42, %v1676_v26  ;;  %v1730_v40 = vpop.f32.mrf.mxu1  ;;  %v6517_v26 = vld [vmem:[%s9879_s5 + $0x204] sm:$0xf0] }
 0x202   :  { %v8281_v63 = vadd.f32 %v1629_v35, %v1580_v59  ;;  %v5587_v35 = vld [vmem:[%s9879_s5 + $0x200] sm:$0xf] }
 0x203   :  { %2026 = vmatmul.bf16.gmra.mxu0 %v7947_v30  ;;  %v5677_v30 = vld [vmem:[%s9879_s5 + $0x2b8] sm:$0xf0]  ;;  %v5588_v62 = vor.u32 %v6517_v26, %v5587_v35  ;;  %v6491_v35 = vld [vmem:[%s9878_s4 + $0x204] sm:$0xf0]  ;;  %v5472_v26 = vld [vmem:[%s9878_s4 + $0x250] sm:$0xff] }
 0x204   :  { %1938 = vmatmul.bf16.gmra.mxu2 %v8048_v32  ;;  %5442 = vmatmul.msk.bf16.gmra.mxu1 %vm929_vm2, %v8043_v2  ;;  %v5680_v28 = vor.u32 %v6538_v51, %v5677_v30 }
 0x205   :  { %2516 = vmatpush.bf16.msrb.mxu2 %v5588_v62  ;;  %v2778_v62 = vunpack.c.l.b16 %v5472_v26 }
 0x206   :  { %5434 = vmatmul.msk.bf16.gmra.mxu3 %vm929_vm2, %v8043_v2  ;;  %2660 = vmatpush.bf16.msrb.mxu1 %v5680_v28  ;;  %v5597_v28 = vld [vmem:[%s9879_s5 + $0x218] sm:$0xf0] }
 0x207   :  { %v1588_v0 = vpop.f32.mrf.mxu2 }
 0x208   :  { %v1678_v38 = vpop.f32.mrf.mxu0 }
 0x209   :  { %v1632_v2 = vpop.f32.mrf.mxu3  ;;  %v8305_v37 = vadd.f32 %v1727_v54, %v1678_v38  ;;  %v1732_v43 = vpop.f32.mrf.mxu1 }
 0x20a   :  { %v8303_v33 = vadd.f32 %v1632_v2, %v1583_v16  ;;  %v6534_v2 = vld [vmem:[%s9879_s5 + $0x294] sm:$0xf] }
 0x20f   :  { %v1590_v10 = vpop.f32.mrf.mxu2 }
 0x210   :  { %v1681_v3 = vpop.f32.mrf.mxu0 }
 0x211   :  { %v1634_v52 = vpop.f32.mrf.mxu3  ;;  %v8321_v48 = vadd.f32 %v1730_v40, %v1681_v3  ;;  %v1735_v42 = vpop.f32.mrf.mxu1 }
 0x212   :  { %v8319_v59 = vadd.f32 %v1634_v52, %v1585_v31 }
 0x213   :  { %2031 = vmatmul.bf16.gmra.mxu0 %v7995_v22  ;;  %v5669_v22 = vld [vmem:[%s9879_s5 + $0x2a8] sm:$0xf0] }
 0x214   :  { %1943 = vmatmul.bf16.gmra.mxu2 %v8094_v50  ;;  %5443 = vmatmul.msk.bf16.gmra.mxu1 %vm929_vm2, %v8089_v58  ;;  %v5672_v16 = vor.u32 %v6536_v24, %v5669_v22 }
 0x216   :  { %5435 = vmatmul.msk.bf16.gmra.mxu3 %vm929_vm2, %v8089_v58  ;;  %2661 = vmatpush.bf16.msrb.mxu1 %v5672_v16 }
 0x217   :  { %v1593_v53 = vpop.f32.mrf.mxu2 }
 0x218   :  { %v1683_v6 = vpop.f32.mrf.mxu0 }
 0x219   :  { %v1637_v58 = vpop.f32.mrf.mxu3  ;;  %v8343_v47 = vadd.f32 %v1732_v43, %v1683_v6  ;;  %v1737_v54 = vpop.f32.mrf.mxu1  ;;  %v5589_v6 = vld [vmem:[%s9879_s5 + $0x208] sm:$0xf0] }
 0x21a   :  { %v8341_v17 = vadd.f32 %v1637_v58, %v1588_v0  ;;  %v6518_v0 = vld [vmem:[%s9879_s5 + $0x214] sm:$0xf]  ;;  %v6516_v58 = vld [vmem:[%s9879_s5 + $0x204] sm:$0xf] }
 0x21b   :  { %v5600_v38 = vor.u32 %v6518_v0, %v5597_v28  ;;  %v2804_v28 = vpack.c.b16 %v2778_v62, %v2778_v62 }
 0x21d   :  { %2613 = vmatpush.bf16.msrb.mxu0 %v5600_v38 }
 0x21f   :  { %v1595_v31 = vpop.f32.mrf.mxu2 }
 0x220   :  { %v1686_v51 = vpop.f32.mrf.mxu0 }
 0x221   :  { %v1639_v40 = vpop.f32.mrf.mxu3  ;;  %v8365_v8 = vadd.f32 %v1735_v42, %v1686_v51  ;;  %v1740_v30 = vpop.f32.mrf.mxu1  ;;  %v6532_v42 = vld [vmem:[%s9879_s5 + $0x284] sm:$0xf] }
 0x222   :  { %v8363_v61 = vadd.f32 %v1639_v40, %v1590_v10  ;;  %v6533_v10 = vld [vmem:[%s9879_s5 + $0x284] sm:$0xf0]  ;;  %v5656_v24 = vor.u32 %v6532_v42, %v5653_v9 }
 0x223   :  { %2036 = vmatmul.bf16.gmra.mxu0 %v8048_v32  ;;  %v5661_v32 = vld [vmem:[%s9879_s5 + $0x298] sm:$0xf0]  ;;  %v5652_v52 = vor.u32 %v6533_v10, %v5651_v34  ;;  %v6490_v34 = vld [vmem:[%s9878_s4 + $0x204] sm:$0xf]  ;;  %v2779_v10 = vunpack.c.h.b16 %v5472_v26  ;;  %v6489_v26 = vld [vmem:[%s9878_s4 + $0x1f4] sm:$0xf0] }
 0x224   :  { %1948 = vmatmul.bf16.gmra.mxu2 %v8144_v55  ;;  %5444 = vmatmul.msk.bf16.gmra.mxu1 %vm929_vm2, %v8127_v41  ;;  %v5664_v39 = vor.u32 %v6534_v2, %v5661_v32 }
 0x225   :  { %2565 = vmatpush.bf16.msrb.mxu3 %v5652_v52 }
 0x226   :  { %5436 = vmatmul.msk.bf16.gmra.mxu3 %vm929_vm2, %v8127_v41  ;;  %2662 = vmatpush.bf16.msrb.mxu1 %v5664_v39  ;;  %v2855_v39 = vsel %vm954_vm1, %v2804_v28, 0  ;;  %v5765_v28 = vld [vmem:[%s9878_s4 + $0x1f8] sm:$0xf0] }
 0x227   :  { %v1598_v43 = vpop.f32.mrf.mxu2 }
 0x228   :  { %v1688_v19 = vpop.f32.mrf.mxu0 }
 0x229   :  { %v1642_v41 = vpop.f32.mrf.mxu3  ;;  %v8387_v49 = vadd.f32 %v1737_v54, %v1688_v19  ;;  %v1742_v45 = vpop.f32.mrf.mxu1  ;;  %v5592_v54 = vor.u32 %v6516_v58, %v5589_v6  ;;  %2912 = vmatpush.bf16.msra.mxu3 %v2855_v39  ;;  %v5525_v58 = vld [vmem:[%s9875_s1 + $0x108] sm:$0xf0] }
 0x22a   :  { %v8385_v25 = vadd.f32 %v1642_v41, %v1593_v53  ;;  %2663 = vmatpush.bf16.msrb.mxu1 %v5656_v24  ;;  %v5531_v24 = vld [vmem:[%s9875_s1 + $0x110] sm:$0xf] }
 0x22b   :  { %2614 = vmatpush.bf16.msrb.mxu0 %v5592_v54 }
 0x22f   :  { %v1600_v3 = vpop.f32.mrf.mxu2 }
 0x230   :  { %v1691_v22 = vpop.f32.mrf.mxu0 }
 0x231   :  { %v1644_v44 = vpop.f32.mrf.mxu3  ;;  %v8403_v53 = vadd.f32 %v1740_v30, %v1691_v22  ;;  %v1745_v16 = vpop.f32.mrf.mxu1  ;;  %v6503_v22 = vld [vmem:[%s9875_s1 + $0x114] sm:$0xf0] }
 0x232   :  { %v8401_v18 = vadd.f32 %v1644_v44, %v1595_v31  ;;  %v5771_v31 = vld [vmem:[%s9878_s4 + $0x200] sm:$0xf]  ;;  %v2805_v44 = vpack.c.b16 %v2779_v10, %v2779_v10  ;;  %v6499_v10 = vld [vmem:[%s9878_s4 + $0x244] sm:$0xf0] }
 0x233   :  { %2041 = vmatmul.bf16.gmra.mxu0 %v8094_v50  ;;  %v5772_v40 = vor.u32 %v6491_v35, %v5771_v31  ;;  %v5763_v35 = vld [vmem:[%s9878_s4 + $0x1f0] sm:$0xf] }
 0x234   :  { %1953 = vmatmul.bf16.gmra.mxu2 %v8184_v27  ;;  %5445 = vmatmul.msk.bf16.gmra.mxu1 %vm929_vm2, %v8163_v11 }
 0x235   :  { %2860 = vmatpush.bf16.msra.mxu2 %v5772_v40  ;;  %v5764_v40 = vor.u32 %v6489_v26, %v5763_v35 }
 0x236   :  { %5437 = vmatmul.msk.bf16.gmra.mxu3 %vm929_vm2, %v8163_v11  ;;  %v5523_v11 = vld [vmem:[%s9875_s1 + $0x100] sm:$0xf] }
 0x237   :  { %v1603_v21 = vpop.f32.mrf.mxu2  ;;  %v8436_v0 = vor.u32 %v6501_v13, %v5523_v11 }
 0x238   :  { %v1693_v50 = vpop.f32.mrf.mxu0 }
 0x239   :  { %v1647_v46 = vpop.f32.mrf.mxu3  ;;  %v8419_v4 = vadd.f32 %v1742_v45, %v1693_v50  ;;  %v1747_v57 = vpop.f32.mrf.mxu1  ;;  %2861 = vmatpush.bf16.msra.mxu2 %v5764_v40 }
 0x23a   :  { %v8417_v7 = vadd.f32 %v1647_v46, %v1598_v43  ;;  %v8474_v46 = vor.u32 %v6503_v22, %v5531_v24 }
 0x23f   :  { %v1605_v51 = vpop.f32.mrf.mxu2 }
 0x240   :  { %v1696_v38 = vpop.f32.mrf.mxu0 }
 0x241   :  { %v1649_v30 = vpop.f32.mrf.mxu3  ;;  %v8440_v32 = vadd.f32 %v1745_v16, %v1696_v38  ;;  %v1750_v43 = vpop.f32.mrf.mxu1  ;;  %v6500_v16 = vld [vmem:[%s9875_s1 + $0x104] sm:$0xf] }
 0x242   :  { %v8438_v2 = vadd.f32 %v1649_v30, %v1600_v3  ;;  %v5528_v11 = vor.u32 %v6500_v16, %v5525_v58  ;;  %v6488_v30 = vld [vmem:[%s9878_s4 + $0x1f4] sm:$0xf]  ;;  %v5755_v16 = vld [vmem:[%s9878_s4 + $0x1e0] sm:$0xf]  ;;  %v6487_v58 = vld [vmem:[%s9878_s4 + $0x1e4] sm:$0xf0] }
 0x243   :  { %2046 = vmatmul.bf16.gmra.mxu0 %v8144_v55  ;;  %v5773_v55 = vld [vmem:[%s9878_s4 + $0x208] sm:$0xf0]  ;;  %v5768_v39 = vor.u32 %v6488_v30, %v5765_v28  ;;  %v5756_v35 = vor.u32 %v6487_v58, %v5755_v16 }
 0x244   :  { %2517 = vmatmul.bf16.vlgmr.msrb.gmra.mxu2 %v8436_v0  ;;  %5446 = vmatmul.msk.bf16.gmra.mxu1 %vm929_vm2, %v8207_v14  ;;  %v5776_v42 = vor.u32 %v6490_v34, %v5773_v55  ;;  %v5539_v34 = vld [vmem:[%s9875_s1 + $0x120] sm:$0xf] }
 0x245   :  { %v5803_v55 = vld [vmem:[%s9878_s4 + $0x240] sm:$0xf]  ;;  %2862 = vmatpush.bf16.msra.mxu2 %v5756_v35  ;;  %v5747_v35 = vld [vmem:[%s9878_s4 + $0x1d0] sm:$0xf] }
 0x246   :  { %5438 = vmatmul.msk.bf16.gmra.mxu3 %vm929_vm2, %v8207_v14  ;;  %2958 = vmatpush.bf16.msra.mxu0 %v5776_v42  ;;  %v5533_v42 = vld [vmem:[%s9875_s1 + $0x118] sm:$0xf0] }
 0x247   :  { %v1919_v41 = vpop.f32.mrf.mxu2 }
 0x248   :  { %v1920_v45 = vadd.f32 %v1919_v41, %v8186_v5  ;;  %v1698_v3 = vpop.f32.mrf.mxu0  ;;  %v2858_v5 = vsel %vm954_vm1, %v2805_v44, 0 }
 0x249   :  { %v1652_v19 = vpop.f32.mrf.mxu3  ;;  %v8458_v9 = vadd.f32 %v1747_v57, %v1698_v3  ;;  %v1752_v14 = vpop.f32.mrf.mxu1  ;;  %3010 = vmatpush.bf16.msra.mxu1 %v2858_v5  ;;  %v6502_v3 = vld [vmem:[%s9875_s1 + $0x114] sm:$0xf] }
 0x24a   :  { %v8456_v52 = vadd.f32 %v1652_v19, %v1603_v21  ;;  %2959 = vmatpush.bf16.msra.mxu0 %v5768_v39 }
 0x24f   :  { %v1921_v6 = vpop.f32.mrf.mxu2 }
 0x250   :  { %v1922_v21 = vadd.f32 %v1921_v6, %v8203_v15  ;;  %v1701_v57 = vpop.f32.mrf.mxu0 }
 0x251   :  { %v1654_v54 = vpop.f32.mrf.mxu3  ;;  %v8478_v13 = vadd.f32 %v1750_v43, %v1701_v57  ;;  %v2066_v31 = vpop.f32.mrf.mxu1 }
 0x252   :  { %v8476_v50 = vadd.f32 %v1654_v54, %v1605_v51 }
 0x253   :  { %2051 = vmatmul.bf16.gmra.mxu0 %v8184_v27  ;;  %v5447_v27 = vld [vmem:[%s9880_s6 + $0x2] sm:$0x3] }
 0x254   :  { %2522 = vmatmul.bf16.gmra.mxu2 %v8474_v46  ;;  %2664 = vmatmul.bf16.vlgmr.msrb.gmra.mxu1 %v5528_v11 }
 0x256   :  { %2566 = vmatmul.bf16.vlgmr.msrb.gmra.mxu3 %v5528_v11  ;;  %v5536_v11 = vor.u32 %v6502_v3, %v5533_v42 }
 0x257   :  { %v1924_v15 = vpop.f32.mrf.mxu2 }
 0x258   :  { %v1925_v62 = vadd.f32 %v1924_v15, %v8227_v60  ;;  %v1703_v43 = vpop.f32.mrf.mxu0  ;;  %v8500_v60 = vperm.slane %v5447_v27, 0 }
 0x259   :  { %v1968_v51 = vpop.f32.mrf.mxu3  ;;  %v8498_v41 = vadd.f32 %v1752_v14, %v1703_v43  ;;  %v2068_v19 = vpop.f32.mrf.mxu1  ;;  %v5804_v14 = vor.u32 %v6499_v10, %v5803_v55  ;;  %v8542_v43 = vperm.slane %v5447_v27, 1 }
 0x25a   :  { %v1969_v38 = vadd.f32 %v1968_v51, %v1920_v45  ;;  %v6505_v45 = vld [vmem:[%s9875_s1 + $0x124] sm:$0xf0] }
 0x25b   :  { %v8521_v22 = vor.u32 %v6505_v45, %v5539_v34  ;;  %2913 = vmatpush.bf16.msra.mxu3 %v5804_v14  ;;  %v6486_v34 = vld [vmem:[%s9878_s4 + $0x1e4] sm:$0xf]  ;;  %v5757_v45 = vld [vmem:[%s9878_s4 + $0x1e8] sm:$0xf0] }
 0x25c   :  { %v2113_v6 = vadd.f32 %v8500_v60, %v1969_v38  ;;  %v5760_v3 = vor.u32 %v6486_v34, %v5757_v45 }
 0x25e   :  { %v2145_v51 = vmax.f32 %v2113_v6, 0.0  ;;  %2960 = vmatpush.bf16.msra.mxu0 %v5760_v3 }
 0x25f   :  { %v1926_v44 = vpop.f32.mrf.mxu2 }
 0x260   :  { %v1927_v5 = vadd.f32 %v1926_v44, %v8243_v23  ;;  %v2017_v57 = vpop.f32.mrf.mxu0  ;;  %v5547_v44 = vld [vmem:[%s9875_s1 + $0x130] sm:$0xf] }
 0x261   :  { %v1970_v24 = vpop.f32.mrf.mxu3  ;;  %v2018_v23 = vadd.f32 %v2017_v57, %v8205_v20  ;;  %v2071_v26 = vpop.f32.mrf.mxu1  ;;  %v5805_v20 = vld [vmem:[%s9878_s4 + $0x248] sm:$0xf0] }
 0x262   :  { %v1971_v54 = vadd.f32 %v1970_v24, %v1922_v21  ;;  %v6498_v21 = vld [vmem:[%s9878_s4 + $0x244] sm:$0xf]  ;;  %v6507_v24 = vld [vmem:[%s9875_s1 + $0x134] sm:$0xf0] }
 0x263   :  { %v2067_v15 = vadd.f32 %v2066_v31, %v2018_v23  ;;  %2615 = vmatmul.bf16.vlgmr.msrb.gmra.mxu0 %v8436_v0  ;;  %v5808_v28 = vor.u32 %v6498_v21, %v5805_v20  ;;  %v6485_v23 = vld [vmem:[%s9878_s4 + $0x1d4] sm:$0xf0] }
 0x264   :  { %v2115_v40 = vadd.f32 %v8500_v60, %v1971_v54  ;;  %2527 = vmatmul.bf16.gmra.mxu2 %v8521_v22  ;;  %2669 = vmatmul.bf16.gmra.mxu1 %v5536_v11  ;;  %v5748_v21 = vor.u32 %v6485_v23, %v5747_v35 }
 0x265   :  { %3011 = vmatpush.bf16.msra.mxu1 %v5808_v28  ;;  %v2114_v27 = vadd.f32 %v8542_v43, %v2067_v15 }
 0x266   :  { %v2147_v30 = vmax.f32 %v2115_v40, 0.0  ;;  %2571 = vmatmul.bf16.gmra.mxu3 %v5536_v11  ;;  %v8567_v11 = vor.u32 %v6507_v24, %v5547_v44  ;;  %2863 = vmatpush.bf16.msra.mxu2 %v5748_v21 }
 0x267   :  { %v1929_v31 = vpop.f32.mrf.mxu2 }
 0x268   :  { %v8540_v38 = vpack.c.bf16 %v2147_v30, %v2145_v51  ;;  %v1930_v0 = vadd.f32 %v1929_v31, %v8265_v29  ;;  %v2019_v10 = vpop.f32.mrf.mxu0 }
 0x269   :  { %v1973_v39 = vpop.f32.mrf.mxu3  ;;  %v2020_v42 = vadd.f32 %v2019_v10, %v8229_v56  ;;  %v2073_v14 = vpop.f32.mrf.mxu1  ;;  %v5541_v56 = vld [vmem:[%s9875_s1 + $0x128] sm:$0xf0] }
 0x26a   :  { %v1974_v55 = vadd.f32 %v1973_v39, %v1925_v62  ;;  %v6504_v62 = vld [vmem:[%s9875_s1 + $0x124] sm:$0xf] }
 0x26b   :  { %v2069_v29 = vadd.f32 %v2068_v19, %v2020_v42  ;;  %v2146_v19 = vmax.f32 %v2114_v27, 0.0  ;;  %v5544_v30 = vor.u32 %v6504_v62, %v5541_v56 }
 0x26c   :  { %v2117_v40 = vadd.f32 %v8500_v60, %v1974_v55 }
 0x26d   :  { %v2116_v16 = vadd.f32 %v8542_v43, %v2069_v29  ;;  %v6484_v29 = vld [vmem:[%s9878_s4 + $0x1d4] sm:$0xf] }
 0x26e   :  { %v2149_v34 = vmax.f32 %v2117_v40, 0.0 }
 0x26f   :  { %v1931_v58 = vpop.f32.mrf.mxu2  ;;  %v2148_v6 = vmax.f32 %v2116_v16, 0.0 }
 0x270   :  { %v1932_v54 = vadd.f32 %v1931_v58, %v8281_v63  ;;  %v2022_v51 = vpop.f32.mrf.mxu0  ;;  %v6509_v58 = vld [vmem:[%s9875_s1 + $0x144] sm:$0xf0] }
 0x271   :  { %v1975_v57 = vpop.f32.mrf.mxu3  ;;  %v8576_v20 = vpack.c.bf16 %v2148_v6, %v2146_v19  ;;  %v2023_v63 = vadd.f32 %v2022_v51, %v8245_v12  ;;  %v2076_v28 = vpop.f32.mrf.mxu1  ;;  %v5795_v12 = vld [vmem:[%s9878_s4 + $0x230] sm:$0xf]  ;;  %v5549_v6 = vld [vmem:[%s9875_s1 + $0x138] sm:$0xf0]  ;;  %v6496_v51 = vld [vmem:[%s9878_s4 + $0x234] sm:$0xf] }
 0x272   :  { %v1976_v15 = vadd.f32 %v1975_v57, %v1927_v5 }
 0x273   :  { %v2072_v39 = vadd.f32 %v2071_v26, %v2023_v63  ;;  %2620 = vmatmul.bf16.gmra.mxu0 %v8474_v46  ;;  %v6497_v26 = vld [vmem:[%s9878_s4 + $0x234] sm:$0xf0] }
 0x274   :  { %v2119_v31 = vadd.f32 %v8500_v60, %v1976_v15  ;;  %2532 = vmatmul.bf16.gmra.mxu2 %v8567_v11  ;;  %2674 = vmatmul.bf16.gmra.mxu1 %v5544_v30  ;;  %v5796_v27 = vor.u32 %v6497_v26, %v5795_v12 }
 0x275   :  { %v2118_v62 = vadd.f32 %v8542_v43, %v2072_v39 }
 0x276   :  { %v2151_v45 = vmax.f32 %v2119_v31, 0.0  ;;  %2576 = vmatmul.bf16.gmra.mxu3 %v5544_v30  ;;  %v5797_v30 = vld [vmem:[%s9878_s4 + $0x238] sm:$0xf0] }
 0x277   :  { %v1934_v5 = vpop.f32.mrf.mxu2  ;;  %2914 = vmatpush.bf16.msra.mxu3 %v5796_v27  ;;  %v2150_v57 = vmax.f32 %v2118_v62, 0.0 }
 0x278   :  { %v8582_v55 = vpack.c.bf16 %v2151_v45, %v2149_v34  ;;  %v1935_v10 = vadd.f32 %v1934_v5, %v8303_v33  ;;  %v2024_v46 = vpop.f32.mrf.mxu0  ;;  %v5749_v33 = vld [vmem:[%s9878_s4 + $0x1d8] sm:$0xf0]  ;;  %v5800_v34 = vor.u32 %v6496_v51, %v5797_v30  ;;  %v6483_v45 = vld [vmem:[%s9878_s4 + $0x1c4] sm:$0xf0] }
 0x279   :  { %v1978_v3 = vpop.f32.mrf.mxu3  ;;  %v2025_v44 = vadd.f32 %v2024_v46, %v8267_v1  ;;  %v2078_v24 = vpop.f32.mrf.mxu1  ;;  %v5752_v16 = vor.u32 %v6484_v29, %v5749_v33  ;;  %v6506_v1 = vld [vmem:[%s9875_s1 + $0x134] sm:$0xf] }
 0x27a   :  { %v1979_v42 = vadd.f32 %v1978_v3, %v1930_v0  ;;  %v5555_v0 = vld [vmem:[%s9875_s1 + $0x140] sm:$0xf]  ;;  %v5552_v39 = vor.u32 %v6506_v1, %v5549_v6  ;;  %3012 = vmatpush.bf16.msra.mxu1 %v5800_v34  ;;  %v6511_v6 = vld [vmem:[%s9875_s1 + $0x154] sm:$0xf0] }
 0x27b   :  { %v2074_v56 = vadd.f32 %v2073_v14, %v2025_v44  ;;  %2961 = vmatpush.bf16.msra.mxu0 %v5752_v16  ;;  %v8613_v15 = vor.u32 %v6509_v58, %v5555_v0  ;;  %v6482_v16 = vld [vmem:[%s9878_s4 + $0x1c4] sm:$0xf] }
 0x27c   :  { %v2121_v21 = vadd.f32 %v8500_v60, %v1979_v42 }
 0x27d   :  { %v2120_v19 = vadd.f32 %v8542_v43, %v2074_v56 }
 0x27e   :  { %v2153_v46 = vmax.f32 %v2121_v21, 0.0  ;;  %v5787_v21 = vld [vmem:[%s9878_s4 + $0x220] sm:$0xf] }
 0x27f   :  { %v1936_v14 = vpop.f32.mrf.mxu2  ;;  %v2152_v35 = vmax.f32 %v2120_v19, 0.0 }
 0x280   :  { %v1937_v23 = vadd.f32 %v1936_v14, %v8319_v59  ;;  %v2027_v31 = vpop.f32.mrf.mxu0  ;;  %v5739_v59 = vld [vmem:[%s9878_s4 + $0x1c0] sm:$0xf] }
 0x281   :  { %v1980_v40 = vpop.f32.mrf.mxu3  ;;  %v2028_v5 = vadd.f32 %v2027_v31, %v8283_v36  ;;  %v2081_v3 = vpop.f32.mrf.mxu1  ;;  %v5740_v12 = vor.u32 %v6483_v45, %v5739_v59  ;;  %v8629_v26 = vpack.c.bf16 %v2152_v35, %v2150_v57 }
 0x282   :  { %v1981_v63 = vadd.f32 %v1980_v40, %v1932_v54 }
 0x283   :  { %v2077_v54 = vadd.f32 %v2076_v28, %v2028_v5  ;;  %2625 = vmatmul.bf16.gmra.mxu0 %v8521_v22  ;;  %2864 = vmatpush.bf16.msra.mxu2 %v5740_v12  ;;  %v5741_v28 = vld [vmem:[%s9878_s4 + $0x1c8] sm:$0xf0]  ;;  %v6481_v5 = vld [vmem:[%s9878_s4 + $0x1b4] sm:$0xf0] }
 0x284   :  { %v2123_v42 = vadd.f32 %v8500_v60, %v1981_v63  ;;  %2537 = vmatmul.bf16.gmra.mxu2 %v8613_v15  ;;  %2679 = vmatmul.bf16.gmra.mxu1 %v5552_v39  ;;  %v5744_v56 = vor.u32 %v6482_v16, %v5741_v28  ;;  %v6495_v63 = vld [vmem:[%s9878_s4 + $0x224] sm:$0xf0] }
 0x285   :  { %v2122_v19 = vadd.f32 %v8542_v43, %v2077_v54  ;;  %v5788_v45 = vor.u32 %v6495_v63, %v5787_v21 }
 0x286   :  { %v2155_v27 = vmax.f32 %v2123_v42, 0.0  ;;  %2581 = vmatmul.bf16.gmra.mxu3 %v5552_v39  ;;  %2962 = vmatpush.bf16.msra.mxu0 %v5744_v56 }
 0x287   :  { %v1939_v29 = vpop.f32.mrf.mxu2  ;;  %2915 = vmatpush.bf16.msra.mxu3 %v5788_v45 }
 0x288   :  { %v8634_v33 = vpack.c.bf16 %v2155_v27, %v2153_v46  ;;  %v1940_v36 = vadd.f32 %v1939_v29, %v8341_v17  ;;  %v2029_v62 = vpop.f32.mrf.mxu0  ;;  %v5563_v17 = vld [vmem:[%s9875_s1 + $0x150] sm:$0xf] }
 0x289   :  { %v1983_v44 = vpop.f32.mrf.mxu3  ;;  %v2030_v0 = vadd.f32 %v2029_v62, %v8305_v37  ;;  %v2083_v58 = vpop.f32.mrf.mxu1  ;;  %v5557_v37 = vld [vmem:[%s9875_s1 + $0x148] sm:$0xf0]  ;;  %v8661_v30 = vor.u32 %v6511_v6, %v5563_v17  ;;  %v6494_v62 = vld [vmem:[%s9878_s4 + $0x224] sm:$0xf] }
 0x28a   :  { %v1984_v22 = vadd.f32 %v1983_v44, %v1935_v10  ;;  %v6508_v10 = vld [vmem:[%s9875_s1 + $0x144] sm:$0xf] }
 0x28b   :  { %v2079_v1 = vadd.f32 %v2078_v24, %v2030_v0  ;;  %v2154_v24 = vmax.f32 %v2122_v19, 0.0  ;;  %v5560_v59 = vor.u32 %v6508_v10, %v5557_v37  ;;  %v6480_v19 = vld [vmem:[%s9878_s4 + $0x1b4] sm:$0xf] }
 0x28c   :  { %v2125_v31 = vadd.f32 %v8500_v60, %v1984_v22 }
 0x28d   :  { %v2124_v14 = vadd.f32 %v8542_v43, %v2079_v1 }
 0x28e   :  { %v2157_v29 = vmax.f32 %v2125_v31, 0.0  ;;  %v5715_v31 = vld [vmem:[%s9878_s4 + $0x190] sm:$0xf] }
 0x28f   :  { %v1941_v57 = vpop.f32.mrf.mxu2  ;;  %v2156_v35 = vmax.f32 %v2124_v14, 0.0  ;;  %v5723_v14 = vld [vmem:[%s9878_s4 + $0x1a0] sm:$0xf] }
 0x290   :  { %v8659_v40 = vadd.f32 %v1941_v57, %v8363_v61  ;;  %v2032_v34 = vpop.f32.mrf.mxu0  ;;  %v5731_v61 = vld [vmem:[%s9878_s4 + $0x1b0] sm:$0xf]  ;;  %v5571_v57 = vld [vmem:[%s9875_s1 + $0x160] sm:$0xf] }
 0x291   :  { %v1985_v51 = vpop.f32.mrf.mxu3  ;;  %v2033_v12 = vadd.f32 %v2032_v34, %v8321_v48  ;;  %v2086_v42 = vpop.f32.mrf.mxu1  ;;  %v5732_v54 = vor.u32 %v6481_v5, %v5731_v61  ;;  %v8677_v46 = vpack.c.bf16 %v2156_v35, %v2154_v24 }
 0x292   :  { %v1986_v39 = vadd.f32 %v1985_v51, %v1937_v23  ;;  %v6510_v51 = vld [vmem:[%s9875_s1 + $0x154] sm:$0xf] }
 0x293   :  { %v2082_v23 = vadd.f32 %v2081_v3, %v2033_v12  ;;  %2630 = vmatmul.bf16.gmra.mxu0 %v8567_v11  ;;  %2865 = vmatpush.bf16.msra.mxu2 %v5732_v54  ;;  %v5789_v3 = vld [vmem:[%s9878_s4 + $0x228] sm:$0xf0] }
 0x294   :  { %v2127_v27 = vadd.f32 %v8500_v60, %v1986_v39  ;;  %2542 = vmatmul.bf16.gmra.mxu2 %v8661_v30  ;;  %2684 = vmatmul.bf16.gmra.mxu1 %v5560_v59  ;;  %v5792_v0 = vor.u32 %v6494_v62, %v5789_v3  ;;  %v6477_v39 = vld [vmem:[%s9878_s4 + $0x194] sm:$0xf0] }
 0x295   :  { %v2126_v10 = vadd.f32 %v8542_v43, %v2082_v23  ;;  %v5716_v5 = vor.u32 %v6477_v39, %v5715_v31 }
 0x296   :  { %v2159_v44 = vmax.f32 %v2127_v27, 0.0  ;;  %2586 = vmatmul.bf16.gmra.mxu3 %v5560_v59  ;;  %3013 = vmatpush.bf16.msra.mxu1 %v5792_v0  ;;  %v6478_v0 = vld [vmem:[%s9878_s4 + $0x1a4] sm:$0xf] }
 0x297   :  { %v1944_v16 = vpop.f32.mrf.mxu2  ;;  %v2158_v34 = vmax.f32 %v2126_v10, 0.0 }
 0x298   :  { %v8682_v28 = vpack.c.bf16 %v2159_v44, %v2157_v29  ;;  %v1945_v48 = vadd.f32 %v1944_v16, %v8385_v25  ;;  %v2034_v56 = vpop.f32.mrf.mxu0  ;;  %v5733_v25 = vld [vmem:[%s9878_s4 + $0x1b8] sm:$0xf0] }
 0x299   :  { %v1988_v22 = vpop.f32.mrf.mxu3  ;;  %v2035_v1 = vadd.f32 %v2034_v56, %v8343_v47  ;;  %v2088_v17 = vpop.f32.mrf.mxu1  ;;  %v5736_v6 = vor.u32 %v6480_v19, %v5733_v25  ;;  %v6513_v47 = vld [vmem:[%s9875_s1 + $0x164] sm:$0xf0] }
 0x29a   :  { %v1989_v11 = vadd.f32 %v1988_v22, %v1940_v36  ;;  %v6479_v36 = vld [vmem:[%s9878_s4 + $0x1a4] sm:$0xf0]  ;;  %v8718_v63 = vor.u32 %v6513_v47, %v5571_v57  ;;  %v6515_v57 = vld [vmem:[%s9875_s1 + $0x174] sm:$0xf0] }
 0x29b   :  { %v2084_v37 = vadd.f32 %v2083_v58, %v2035_v1  ;;  %2963 = vmatpush.bf16.msra.mxu0 %v5736_v6  ;;  %v5724_v24 = vor.u32 %v6479_v36, %v5723_v14  ;;  %v5565_v58 = vld [vmem:[%s9875_s1 + $0x158] sm:$0xf0]  ;;  %v5779_v1 = vld [vmem:[%s9878_s4 + $0x210] sm:$0xf] }
 0x29c   :  { %v2129_v12 = vadd.f32 %v8500_v60, %v1989_v11  ;;  %v5568_v23 = vor.u32 %v6510_v51, %v5565_v58  ;;  %v6492_v51 = vld [vmem:[%s9878_s4 + $0x214] sm:$0xf]  ;;  %v5781_v58 = vld [vmem:[%s9878_s4 + $0x218] sm:$0xf0] }
 0x29d   :  { %v2128_v35 = vadd.f32 %v8542_v43, %v2084_v37  ;;  %2866 = vmatpush.bf16.msra.mxu2 %v5724_v24  ;;  %v5573_v24 = vld [vmem:[%s9875_s1 + $0x168] sm:$0xf0] }
 0x29f   :  { %v1946_v21 = vpop.f32.mrf.mxu2  ;;  %v2160_v59 = vmax.f32 %v2128_v35, 0.0 }
 0x2a0   :  { %v1947_v45 = vadd.f32 %v1946_v21, %v8401_v18  ;;  %v2037_v27 = vpop.f32.mrf.mxu0  ;;  %v2161_v18 = vmax.f32 %v2129_v12, 0.0 }
 0x2a1   :  { %v1990_v61 = vpop.f32.mrf.mxu3  ;;  %v2038_v29 = vadd.f32 %v2037_v27, %v8365_v8  ;;  %v2091_v44 = vpop.f32.mrf.mxu1  ;;  %2867 = vmatpush.bf16.msra.mxu2 %v5716_v5  ;;  %v8730_v16 = vpack.c.bf16 %v2160_v59, %v2158_v34  ;;  %v5784_v59 = vor.u32 %v6492_v51, %v5781_v58  ;;  %v6085_v51 = vld [vmem:[%s9879_s5 + $0x3f0] sm:$0xf] }
 0x2a2   :  { %v1991_v54 = vadd.f32 %v1990_v61, %v8659_v40 }
 0x2a3   :  { %v2087_v62 = vadd.f32 %v2086_v42, %v2038_v29  ;;  %2635 = vmatmul.bf16.gmra.mxu0 %v8613_v15  ;;  %v5725_v42 = vld [vmem:[%s9878_s4 + $0x1a8] sm:$0xf0]  ;;  %3014 = vmatpush.bf16.msra.mxu1 %v5784_v59 }
 0x2a4   :  { %v2131_v22 = vadd.f32 %v8500_v60, %v1991_v54  ;;  %2547 = vmatmul.bf16.gmra.mxu2 %v8718_v63  ;;  %2689 = vmatmul.bf16.gmra.mxu1 %v5568_v23  ;;  %v5728_v25 = vor.u32 %v6478_v0, %v5725_v42 }
 0x2a5   :  { %v2130_v10 = vadd.f32 %v8542_v43, %v2087_v62 }
 0x2a6   :  { %v2163_v3 = vmax.f32 %v2131_v22, 0.0  ;;  %2591 = vmatmul.bf16.gmra.mxu3 %v5568_v23  ;;  %2964 = vmatpush.bf16.msra.mxu0 %v5728_v25 }
 0x2a7   :  { %v1949_v40 = vpop.f32.mrf.mxu2  ;;  %v2162_v21 = vmax.f32 %v2130_v10, 0.0 }
 0x2a8   :  { %v8735_v11 = vpack.c.bf16 %v2163_v3, %v2161_v18  ;;  %v1950_v8 = vadd.f32 %v1949_v40, %v8417_v7  ;;  %v2039_v15 = vpop.f32.mrf.mxu0  ;;  %v6493_v7 = vld [vmem:[%s9878_s4 + $0x214] sm:$0xf0] }
 0x2a9   :  { %v1993_v56 = vpop.f32.mrf.mxu3  ;;  %v2040_v6 = vadd.f32 %v2039_v15, %v8387_v49  ;;  %v2093_v14 = vpop.f32.mrf.mxu1  ;;  %v5780_v36 = vor.u32 %v6493_v7, %v5779_v1  ;;  %v6512_v49 = vld [vmem:[%s9875_s1 + $0x164] sm:$0xf]  ;;  %v6514_v7 = vld [vmem:[%s9875_s1 + $0x174] sm:$0xf] }
 0x2aa   :  { %v1994_v19 = vadd.f32 %v1993_v56, %v1945_v48  ;;  %v5579_v48 = vld [vmem:[%s9875_s1 + $0x170] sm:$0xf]  ;;  %v5576_v54 = vor.u32 %v6512_v49, %v5573_v24  ;;  %v6476_v56 = vld [vmem:[%s9878_s4 + $0x194] sm:$0xf] }
 0x2ab   :  { %v2089_v37 = vadd.f32 %v2088_v17, %v2040_v6  ;;  %2916 = vmatpush.bf16.msra.mxu3 %v5780_v36  ;;  %v8765_v35 = vor.u32 %v6515_v57, %v5579_v48  ;;  %v5581_v6 = vld [vmem:[%s9875_s1 + $0x178] sm:$0xf0]  ;;  %v6603_v48 = vld [vmem:[%s9879_s5 + $0x374] sm:$0xf0] }
 0x2ac   :  { %v2133_v61 = vadd.f32 %v8500_v60, %v1994_v19  ;;  %v5584_v24 = vor.u32 %v6514_v7, %v5581_v6 }
 0x2ad   :  { %v2132_v47 = vadd.f32 %v8542_v43, %v2089_v37 }
 0x2af   :  { %v1951_v17 = vpop.f32.mrf.mxu2  ;;  %v2164_v31 = vmax.f32 %v2132_v47, 0.0 }
 0x2b0   :  { %v1952_v39 = vadd.f32 %v1951_v17, %v8438_v2  ;;  %v2042_v12 = vpop.f32.mrf.mxu0  ;;  %v2165_v2 = vmax.f32 %v2133_v61, 0.0 }
 0x2b1   :  { %v1995_v34 = vpop.f32.mrf.mxu3  ;;  %v2043_v27 = vadd.f32 %v2042_v12, %v8403_v53  ;;  %v2096_v23 = vpop.f32.mrf.mxu1  ;;  %v8776_v29 = vpack.c.bf16 %v2164_v31, %v2162_v21  ;;  %v6023_v12 = vld [vmem:[%s9879_s5 + $0x378] sm:$0xf0] }
 0x2b2   :  { %v1996_v5 = vadd.f32 %v1995_v34, %v1947_v45 }
 0x2b3   :  { %v2092_v62 = vadd.f32 %v2091_v44, %v2043_v27  ;;  %2640 = vmatmul.bf16.gmra.mxu0 %v8661_v30  ;;  %v5717_v44 = vld [vmem:[%s9878_s4 + $0x198] sm:$0xf0] }
 0x2b4   :  { %v2135_v22 = vadd.f32 %v8500_v60, %v1996_v5  ;;  %2552 = vmatmul.bf16.gmra.mxu2 %v8765_v35  ;;  %2694 = vmatmul.bf16.gmra.mxu1 %v5576_v54  ;;  %v5720_v42 = vor.u32 %v6476_v56, %v5717_v44  ;;  %v6087_v27 = vld [vmem:[%s9879_s5 + $0x3f8] sm:$0xf0]  ;;  %v6013_v44 = vld [vmem:[%s9879_s5 + $0x360] sm:$0xf] }
 0x2b5   :  { %v2134_v25 = vadd.f32 %v8542_v43, %v2092_v62 }
 0x2b6   :  { %v2167_v18 = vmax.f32 %v2135_v22, 0.0  ;;  %2596 = vmatmul.bf16.gmra.mxu3 %v5576_v54  ;;  %2965 = vmatpush.bf16.msra.mxu0 %v5720_v42 }
 0x2b7   :  { %v1954_v45 = vpop.f32.mrf.mxu2  ;;  %v2166_v36 = vmax.f32 %v2134_v25, 0.0 }
 0x2b8   :  { %v8781_v3 = vpack.c.bf16 %v2167_v18, %v2165_v2  ;;  %v1955_v53 = vadd.f32 %v1954_v45, %v8456_v52  ;;  %v2044_v30 = vpop.f32.mrf.mxu0 }
 0x2b9   :  { %v1998_v40 = vpop.f32.mrf.mxu3  ;;  %v2045_v19 = vadd.f32 %v2044_v30, %v8419_v4  ;;  %v2098_v15 = vpop.f32.mrf.mxu1  ;;  %v6077_v30 = vld [vmem:[%s9879_s5 + $0x3e0] sm:$0xf] }
 0x2ba   :  { %v1999_v0 = vadd.f32 %v1998_v40, %v1950_v8 }
 0x2bb   :  { %v2094_v1 = vadd.f32 %v2093_v14, %v2045_v19  ;;  %v6021_v14 = vld [vmem:[%s9879_s5 + $0x370] sm:$0xf] }
 0x2bc   :  { %v2137_v57 = vadd.f32 %v8500_v60, %v1999_v0  ;;  %v6022_v17 = vor.u32 %v6603_v48, %v6021_v14  ;;  %v6601_v0 = vld [vmem:[%s9879_s5 + $0x364] sm:$0xf0] }
 0x2bd   :  { %v2136_v52 = vadd.f32 %v8542_v43, %v2094_v1  ;;  %v6014_v42 = vor.u32 %v6601_v0, %v6013_v44 }
 0x2be   :  { %3459 = vmatpush.bf16.msrb.mxu2 %v6022_v17  ;;  %v2169_v61 = vmax.f32 %v2137_v57, 0.0  ;;  %v6079_v17 = vld [vmem:[%s9879_s5 + $0x3e8] sm:$0xf0] }
 0x2bf   :  { %v1956_v8 = vpop.f32.mrf.mxu2  ;;  %v2168_v10 = vmax.f32 %v2136_v52, 0.0 }
 0x2c0   :  { %v1957_v4 = vadd.f32 %v1956_v8, %v8476_v50  ;;  %v2047_v49 = vpop.f32.mrf.mxu0  ;;  %v6619_v50 = vld [vmem:[%s9879_s5 + $0x3f4] sm:$0xf0] }
 0x2c1   :  { %v2000_v37 = vpop.f32.mrf.mxu3  ;;  %v2048_v58 = vadd.f32 %v2047_v49, %v8440_v32  ;;  %v2101_v21 = vpop.f32.mrf.mxu1  ;;  %v6086_v31 = vor.u32 %v6619_v50, %v6085_v51  ;;  %v8814_v34 = vpack.c.bf16 %v2168_v10, %v2166_v36  ;;  %v6602_v32 = vld [vmem:[%s9879_s5 + $0x374] sm:$0xf] }
 0x2c2   :  { %v2001_v47 = vadd.f32 %v2000_v37, %v1952_v39  ;;  %v6026_v54 = vor.u32 %v6602_v32, %v6023_v12  ;;  %3460 = vmatpush.bf16.msrb.mxu2 %v6014_v42  ;;  %v6069_v32 = vld [vmem:[%s9879_s5 + $0x3d0] sm:$0xf] }
 0x2c3   :  { %v2097_v39 = vadd.f32 %v2096_v23, %v2048_v58  ;;  %2645 = vmatmul.bf16.gmra.mxu0 %v8718_v63  ;;  %3508 = vmatpush.bf16.msrb.mxu3 %v6086_v31  ;;  %v6618_v63 = vld [vmem:[%s9879_s5 + $0x3f4] sm:$0xf] }
 0x2c4   :  { %v2139_v59 = vadd.f32 %v8500_v60, %v2001_v47  ;;  %2868 = vmatmul.bf16.vlgmr.msra.gmra.mxu2 %v8540_v38  ;;  %2699 = vmatmul.bf16.gmra.mxu1 %v5584_v24  ;;  %v6090_v22 = vor.u32 %v6618_v63, %v6087_v27 }
 0x2c5   :  { %3557 = vmatpush.bf16.msrb.mxu0 %v6026_v54  ;;  %v6615_v54 = vld [vmem:[%s9879_s5 + $0x3d4] sm:$0xf0] }
 0x2c6   :  { %v2171_v5 = vmax.f32 %v2139_v59, 0.0  ;;  %2601 = vmatmul.bf16.gmra.mxu3 %v5584_v24  ;;  %3606 = vmatpush.bf16.msrb.mxu1 %v6090_v22  ;;  %v6070_v27 = vor.u32 %v6615_v54, %v6069_v32  ;;  %v6595_v32 = vld [vmem:[%s9879_s5 + $0x334] sm:$0xf0] }
 0x2c7   :  { %v2518_v23 = vpop.f32.mrf.mxu2 }
 0x2c8   :  { %v8831_v62 = vpack.c.bf16 %v2171_v5, %v2169_v61  ;;  %v2049_v45 = vpop.f32.mrf.mxu0  ;;  %v6005_v61 = vld [vmem:[%s9879_s5 + $0x350] sm:$0xf]  ;;  %v6599_v5 = vld [vmem:[%s9879_s5 + $0x354] sm:$0xf0] }
 0x2c9   :  { %v2003_v2 = vpop.f32.mrf.mxu3  ;;  %v2050_v40 = vadd.f32 %v2049_v45, %v8458_v9  ;;  %v2103_v56 = vpop.f32.mrf.mxu1  ;;  %v2138_v9 = vadd.f32 %v8542_v43, %v2097_v39  ;;  %v6006_v12 = vor.u32 %v6599_v5, %v6005_v61  ;;  %v5989_v5 = vld [vmem:[%s9879_s5 + $0x330] sm:$0xf] }
 0x2ca   :  { %v2004_v18 = vadd.f32 %v2003_v2, %v1955_v53  ;;  %v6617_v53 = vld [vmem:[%s9879_s5 + $0x3e4] sm:$0xf0]  ;;  %v5990_v54 = vor.u32 %v6595_v32, %v5989_v5  ;;  %v5973_v5 = vld [vmem:[%s9879_s5 + $0x310] sm:$0xf]  ;;  %v6591_v32 = vld [vmem:[%s9879_s5 + $0x314] sm:$0xf0] }
 0x2cb   :  { %v2099_v19 = vadd.f32 %v2098_v15, %v2050_v40  ;;  %v6078_v25 = vor.u32 %v6617_v53, %v6077_v30  ;;  %v2170_v7 = vmax.f32 %v2138_v9, 0.0  ;;  %3461 = vmatpush.bf16.msrb.mxu2 %v6006_v12  ;;  %v6614_v53 = vld [vmem:[%s9879_s5 + $0x3d4] sm:$0xf]  ;;  %v6053_v12 = vld [vmem:[%s9879_s5 + $0x3b0] sm:$0xf] }
 0x2cc   :  { %v2141_v36 = vadd.f32 %v8500_v60, %v2004_v18 }
 0x2cd   :  { %v2140_v1 = vadd.f32 %v8542_v43, %v2099_v19  ;;  %3509 = vmatpush.bf16.msrb.mxu3 %v6078_v25 }
 0x2ce   :  { %v2173_v49 = vmax.f32 %v2141_v36, 0.0  ;;  %v6597_v36 = vld [vmem:[%s9879_s5 + $0x344] sm:$0xf0] }
 0x2cf   :  { %v2520_v52 = vpop.f32.mrf.mxu2  ;;  %v2172_v6 = vmax.f32 %v2140_v1, 0.0 }
 0x2d0   :  { %v2052_v37 = vpop.f32.mrf.mxu0 }
 0x2d1   :  { %v2005_v8 = vpop.f32.mrf.mxu3  ;;  %v2053_v14 = vadd.f32 %v2052_v37, %v8478_v13  ;;  %v2665_v48 = vpop.f32.mrf.mxu1  ;;  %v8850_v57 = vpack.c.bf16 %v2172_v6, %v2170_v7  ;;  %v6600_v13 = vld [vmem:[%s9879_s5 + $0x364] sm:$0xf]  ;;  %3510 = vmatpush.bf16.msrb.mxu3 %v6070_v27 }
 0x2d2   :  { %v2006_v10 = vadd.f32 %v2005_v8, %v1957_v4  ;;  %v5997_v8 = vld [vmem:[%s9879_s5 + $0x340] sm:$0xf] }
 0x2d3   :  { %v2102_v47 = vadd.f32 %v2101_v21, %v2053_v14  ;;  %2650 = vmatmul.bf16.gmra.mxu0 %v8765_v35  ;;  %v6616_v35 = vld [vmem:[%s9879_s5 + $0x3e4] sm:$0xf]  ;;  %v5998_v37 = vor.u32 %v6597_v36, %v5997_v8  ;;  %v6613_v14 = vld [vmem:[%s9879_s5 + $0x3c4] sm:$0xf0]  ;;  %v6045_v8 = vld [vmem:[%s9879_s5 + $0x3a0] sm:$0xf] }
 0x2d4   :  { %v2143_v15 = vadd.f32 %v8500_v60, %v2006_v10  ;;  %2873 = vmatmul.bf16.gmra.mxu2 %v8582_v55  ;;  %5817 = vmatmul.msk.bf16.vlgmr.msra.gmra.mxu1 %vm929_vm2, %v8576_v20  ;;  %v6015_v60 = vld [vmem:[%s9879_s5 + $0x368] sm:$0xf0]  ;;  %v6082_v50 = vor.u32 %v6616_v35, %v6079_v17  ;;  %v6061_v10 = vld [vmem:[%s9879_s5 + $0x3c0] sm:$0xf]  ;;  %v6612_v17 = vld [vmem:[%s9879_s5 + $0x3c4] sm:$0xf] }
 0x2d5   :  { %v6018_v4 = vor.u32 %v6600_v13, %v6015_v60  ;;  %3462 = vmatpush.bf16.msrb.mxu2 %v5998_v37  ;;  %v5999_v35 = vld [vmem:[%s9879_s5 + $0x348] sm:$0xf0] }
 0x2d6   :  { %v2175_v24 = vmax.f32 %v2143_v15, 0.0  ;;  %5809 = vmatmul.msk.bf16.vlgmr.msra.gmra.mxu3 %vm929_vm2, %v8576_v20  ;;  %3607 = vmatpush.bf16.msrb.mxu1 %v6082_v50 }
 0x2d7   :  { %v2523_v51 = vpop.f32.mrf.mxu2  ;;  %3558 = vmatpush.bf16.msrb.mxu0 %v6018_v4  ;;  %v6596_v4 = vld [vmem:[%s9879_s5 + $0x344] sm:$0xf] }
 0x2d8   :  { %v8871_v20 = vpack.c.bf16 %v2175_v24, %v2173_v49  ;;  %v2054_v31 = vpop.f32.mrf.mxu0 }
 0x2d9   :  { %v2567_v58 = vpop.f32.mrf.mxu3  ;;  %v2055_v59 = vadd.f32 %v2054_v31, %v8498_v41  ;;  %v2667_v39 = vpop.f32.mrf.mxu1  ;;  %v2142_v41 = vadd.f32 %v8542_v43, %v2102_v47  ;;  %3463 = vmatpush.bf16.msrb.mxu2 %v5990_v54  ;;  %v5974_v54 = vor.u32 %v6591_v32, %v5973_v5 }
 0x2da   :  { %v8873_v21 = vadd.f32 %v2567_v58, %v2518_v23 }
 0x2db   :  { %v2104_v63 = vadd.f32 %v2103_v56, %v2055_v59  ;;  %v2174_v2 = vmax.f32 %v2142_v41, 0.0  ;;  %v6007_v56 = vld [vmem:[%s9879_s5 + $0x358] sm:$0xf0]  ;;  %v6611_v41 = vld [vmem:[%s9879_s5 + $0x3b4] sm:$0xf0] }
 0x2dd   :  { %v2144_v23 = vadd.f32 %v8542_v43, %v2104_v63  ;;  %v6598_v43 = vld [vmem:[%s9879_s5 + $0x354] sm:$0xf]  ;;  %v6054_v63 = vor.u32 %v6611_v41, %v6053_v12  ;;  %v6037_v12 = vld [vmem:[%s9879_s5 + $0x390] sm:$0xf]  ;;  %v6607_v41 = vld [vmem:[%s9879_s5 + $0x394] sm:$0xf0] }
 0x2de   :  { %v6010_v9 = vor.u32 %v6598_v43, %v6007_v56  ;;  %v6610_v43 = vld [vmem:[%s9879_s5 + $0x3b4] sm:$0xf] }
 0x2df   :  { %v2525_v22 = vpop.f32.mrf.mxu2  ;;  %v2176_v18 = vmax.f32 %v2144_v23, 0.0 }
 0x2e0   :  { %v2616_v44 = vpop.f32.mrf.mxu0  ;;  %3559 = vmatpush.bf16.msrb.mxu0 %v6010_v9 }
 0x2e1   :  { %v2569_v45 = vpop.f32.mrf.mxu3  ;;  %v8892_v0 = vadd.f32 %v2665_v48, %v2616_v44  ;;  %v2670_v30 = vpop.f32.mrf.mxu1  ;;  %v8894_v42 = vpack.c.bf16 %v2176_v18, %v2174_v2  ;;  %v6062_v48 = vor.u32 %v6613_v14, %v6061_v10  ;;  %v6594_v44 = vld [vmem:[%s9879_s5 + $0x334] sm:$0xf]  ;;  %v6609_v10 = vld [vmem:[%s9879_s5 + $0x3a4] sm:$0xf0] }
 0x2e2   :  { %v8890_v40 = vadd.f32 %v2569_v45, %v2520_v52  ;;  %v6046_v37 = vor.u32 %v6609_v10, %v6045_v8 }
 0x2e3   :  { %2966 = vmatmul.bf16.vlgmr.msra.gmra.mxu0 %v8540_v38  ;;  %v6071_v38 = vld [vmem:[%s9879_s5 + $0x3d8] sm:$0xf0]  ;;  %3511 = vmatpush.bf16.msrb.mxu3 %v6062_v48 }
 0x2e4   :  { %2878 = vmatmul.bf16.gmra.mxu2 %v8634_v33  ;;  %5818 = vmatmul.msk.bf16.gmra.mxu1 %vm929_vm2, %v8629_v26  ;;  %v6074_v25 = vor.u32 %v6614_v53, %v6071_v38 }
 0x2e6   :  { %5810 = vmatmul.msk.bf16.gmra.mxu3 %vm929_vm2, %v8629_v26  ;;  %3608 = vmatpush.bf16.msrb.mxu1 %v6074_v25 }
 0x2e7   :  { %v2528_v19 = vpop.f32.mrf.mxu2  ;;  %3512 = vmatpush.bf16.msrb.mxu3 %v6054_v63  ;;  %v6038_v63 = vor.u32 %v6607_v41, %v6037_v12 }
 0x2e8   :  { %v2618_v52 = vpop.f32.mrf.mxu0 }
 0x2e9   :  { %v2572_v26 = vpop.f32.mrf.mxu3  ;;  %v8916_v7 = vadd.f32 %v2667_v39, %v2618_v52  ;;  %v2672_v6 = vpop.f32.mrf.mxu1  ;;  %v5981_v52 = vld [vmem:[%s9879_s5 + $0x320] sm:$0xf] }
 0x2ea   :  { %v8914_v1 = vadd.f32 %v2572_v26, %v2523_v51  ;;  %v6002_v51 = vor.u32 %v6596_v4, %v5999_v35  ;;  %v6592_v4 = vld [vmem:[%s9879_s5 + $0x324] sm:$0xf]  ;;  %v5983_v35 = vld [vmem:[%s9879_s5 + $0x328] sm:$0xf0] }
 0x2eb   :  { %3513 = vmatpush.bf16.msrb.mxu3 %v6046_v37  ;;  %v6029_v37 = vld [vmem:[%s9879_s5 + $0x380] sm:$0xf] }
 0x2ec   :  { %3560 = vmatpush.bf16.msrb.mxu0 %v6002_v51  ;;  %v5986_v51 = vor.u32 %v6592_v4, %v5983_v35  ;;  %v6031_v4 = vld [vmem:[%s9879_s5 + $0x388] sm:$0xf0] }
 0x2ef   :  { %v2530_v15 = vpop.f32.mrf.mxu2  ;;  %3514 = vmatpush.bf16.msrb.mxu3 %v6038_v63  ;;  %v6573_v63 = vld [vmem:[%s9875_s1 + $0x184] sm:$0xf0] }
 0x2f0   :  { %v2621_v24 = vpop.f32.mrf.mxu0 }
 0x2f1   :  { %v2574_v47 = vpop.f32.mrf.mxu3  ;;  %v8932_v13 = vadd.f32 %v2670_v30, %v2621_v24  ;;  %v2675_v60 = vpop.f32.mrf.mxu1  ;;  %v5991_v30 = vld [vmem:[%s9879_s5 + $0x338] sm:$0xf0] }
 0x2f2   :  { %v8930_v49 = vadd.f32 %v2574_v47, %v2525_v22  ;;  %v5994_v56 = vor.u32 %v6594_v44, %v5991_v30 }
 0x2f3   :  { %2971 = vmatmul.bf16.gmra.mxu0 %v8582_v55  ;;  %v6063_v55 = vld [vmem:[%s9879_s5 + $0x3c8] sm:$0xf0] }
 0x2f4   :  { %2883 = vmatmul.bf16.gmra.mxu2 %v8682_v28  ;;  %5819 = vmatmul.msk.bf16.gmra.mxu1 %vm929_vm2, %v8677_v46  ;;  %v6066_v58 = vor.u32 %v6612_v17, %v6063_v55  ;;  %v6608_v17 = vld [vmem:[%s9879_s5 + $0x3a4] sm:$0xf] }
 0x2f5   :  { %3561 = vmatpush.bf16.msrb.mxu0 %v5994_v56 }
 0x2f6   :  { %5811 = vmatmul.msk.bf16.gmra.mxu3 %vm929_vm2, %v8677_v46  ;;  %3609 = vmatpush.bf16.msrb.mxu1 %v6066_v58 }
 0x2f7   :  { %v2533_v50 = vpop.f32.mrf.mxu2 }
 0x2f8   :  { %v2623_v59 = vpop.f32.mrf.mxu0 }
 0x2f9   :  { %v2577_v46 = vpop.f32.mrf.mxu3  ;;  %v8954_v39 = vadd.f32 %v2672_v6, %v2623_v59  ;;  %v2677_v61 = vpop.f32.mrf.mxu1  ;;  %v6593_v6 = vld [vmem:[%s9879_s5 + $0x324] sm:$0xf0]  ;;  %3562 = vmatpush.bf16.msrb.mxu0 %v5986_v51 }
 0x2fa   :  { %v8952_v31 = vadd.f32 %v2577_v46, %v2528_v19  ;;  %v5982_v36 = vor.u32 %v6593_v6, %v5981_v52 }
 0x2fc   :  { %3464 = vmatpush.bf16.msrb.mxu2 %v5982_v36 }
 0x2ff   :  { %v2535_v27 = vpop.f32.mrf.mxu2 }
 0x300   :  { %v2626_v2 = vpop.f32.mrf.mxu0  ;;  %3465 = vmatpush.bf16.msrb.mxu2 %v5974_v54 }
 0x301   :  { %v2579_v23 = vpop.f32.mrf.mxu3  ;;  %v8970_v18 = vadd.f32 %v2675_v60, %v2626_v2  ;;  %v2680_v45 = vpop.f32.mrf.mxu1  ;;  %v6589_v2 = vld [vmem:[%s9879_s5 + $0x304] sm:$0xf0] }
 0x302   :  { %v8968_v22 = vadd.f32 %v2579_v23, %v2530_v15  ;;  %v5965_v23 = vld [vmem:[%s9879_s5 + $0x300] sm:$0xf] }
 0x303   :  { %2976 = vmatmul.bf16.gmra.mxu0 %v8634_v33  ;;  %v6055_v33 = vld [vmem:[%s9879_s5 + $0x3b8] sm:$0xf0]  ;;  %v5966_v44 = vor.u32 %v6589_v2, %v5965_v23  ;;  %v6563_v23 = vld [vmem:[%s9878_s4 + $0x2cc] sm:$0xf0] }
 0x304   :  { %2888 = vmatmul.bf16.gmra.mxu2 %v8735_v11  ;;  %5820 = vmatmul.msk.bf16.gmra.mxu1 %vm929_vm2, %v8730_v16  ;;  %v6058_v9 = vor.u32 %v6610_v43, %v6055_v33  ;;  %v5850_v2 = vld [vmem:[%s9878_s4 + $0x318] sm:$0xff] }
 0x305   :  { %3466 = vmatpush.bf16.msrb.mxu2 %v5966_v44  ;;  %v3728_v44 = vunpack.c.l.b16 %v5850_v2 }
 0x306   :  { %5812 = vmatmul.msk.bf16.gmra.mxu3 %vm929_vm2, %v8730_v16  ;;  %3610 = vmatpush.bf16.msrb.mxu1 %v6058_v9  ;;  %v5975_v9 = vld [vmem:[%s9879_s5 + $0x318] sm:$0xf0] }
 0x307   :  { %v2538_v53 = vpop.f32.mrf.mxu2 }
 0x308   :  { %v2628_v19 = vpop.f32.mrf.mxu0 }
 0x309   :  { %v2582_v16 = vpop.f32.mrf.mxu3  ;;  %v8992_v25 = vadd.f32 %v2677_v61, %v2628_v19  ;;  %v2682_v26 = vpop.f32.mrf.mxu1 }
 0x30a   :  { %v8990_v38 = vadd.f32 %v2582_v16, %v2533_v50  ;;  %v6606_v16 = vld [vmem:[%s9879_s5 + $0x394] sm:$0xf] }
 0x30f   :  { %v2540_v14 = vpop.f32.mrf.mxu2 }
 0x310   :  { %v2631_v47 = vpop.f32.mrf.mxu0 }
 0x311   :  { %v2584_v48 = vpop.f32.mrf.mxu3  ;;  %v9008_v24 = vadd.f32 %v2680_v45, %v2631_v47  ;;  %v2685_v60 = vpop.f32.mrf.mxu1 }
 0x312   :  { %v9006_v15 = vadd.f32 %v2584_v48, %v2535_v27 }
 0x313   :  { %2981 = vmatmul.bf16.gmra.mxu0 %v8682_v28  ;;  %v6047_v28 = vld [vmem:[%s9879_s5 + $0x3a8] sm:$0xf0] }
 0x314   :  { %2893 = vmatmul.bf16.gmra.mxu2 %v8781_v3  ;;  %5821 = vmatmul.msk.bf16.gmra.mxu1 %vm929_vm2, %v8776_v29  ;;  %v6050_v50 = vor.u32 %v6608_v17, %v6047_v28 }
 0x316   :  { %5813 = vmatmul.msk.bf16.gmra.mxu3 %vm929_vm2, %v8776_v29  ;;  %3611 = vmatpush.bf16.msrb.mxu1 %v6050_v50 }
 0x317   :  { %v2543_v55 = vpop.f32.mrf.mxu2 }
 0x318   :  { %v2633_v46 = vpop.f32.mrf.mxu0 }
 0x319   :  { %v2587_v29 = vpop.f32.mrf.mxu3  ;;  %v9030_v59 = vadd.f32 %v2682_v26, %v2633_v46  ;;  %v2687_v61 = vpop.f32.mrf.mxu1  ;;  %v5967_v46 = vld [vmem:[%s9879_s5 + $0x308] sm:$0xf0] }
 0x31a   :  { %v9028_v58 = vadd.f32 %v2587_v29, %v2538_v53  ;;  %v6590_v53 = vld [vmem:[%s9879_s5 + $0x314] sm:$0xf]  ;;  %v6588_v29 = vld [vmem:[%s9879_s5 + $0x304] sm:$0xf] }
 0x31b   :  { %v5978_v19 = vor.u32 %v6590_v53, %v5975_v9  ;;  %v3754_v9 = vpack.c.b16 %v3728_v44, %v3728_v44 }
 0x31d   :  { %3563 = vmatpush.bf16.msrb.mxu0 %v5978_v19 }
 0x31f   :  { %v2545_v27 = vpop.f32.mrf.mxu2 }
 0x320   :  { %v2636_v43 = vpop.f32.mrf.mxu0 }
 0x321   :  { %v2589_v45 = vpop.f32.mrf.mxu3  ;;  %v9052_v56 = vadd.f32 %v2685_v60, %v2636_v43  ;;  %v2690_v33 = vpop.f32.mrf.mxu1  ;;  %v6604_v60 = vld [vmem:[%s9879_s5 + $0x384] sm:$0xf] }
 0x322   :  { %v9050_v30 = vadd.f32 %v2589_v45, %v2540_v14  ;;  %v6605_v14 = vld [vmem:[%s9879_s5 + $0x384] sm:$0xf0]  ;;  %v6034_v17 = vor.u32 %v6604_v60, %v6031_v4 }
 0x323   :  { %2986 = vmatmul.bf16.gmra.mxu0 %v8735_v11  ;;  %v6039_v11 = vld [vmem:[%s9879_s5 + $0x398] sm:$0xf0]  ;;  %v6030_v48 = vor.u32 %v6605_v14, %v6029_v37  ;;  %v6562_v37 = vld [vmem:[%s9878_s4 + $0x2cc] sm:$0xf]  ;;  %v3729_v14 = vunpack.c.h.b16 %v5850_v2  ;;  %v6561_v2 = vld [vmem:[%s9878_s4 + $0x2bc] sm:$0xf0] }
 0x324   :  { %2898 = vmatmul.bf16.gmra.mxu2 %v8831_v62  ;;  %5822 = vmatmul.msk.bf16.gmra.mxu1 %vm929_vm2, %v8814_v34  ;;  %v6042_v52 = vor.u32 %v6606_v16, %v6039_v11  ;;  %s4706_s5 = sshll.u32 %s9887_s13, 4  ;;  %s4707_s5 = int_to_ptr.hbm [resolvable:$true] %s4706_s5 }
 0x325   :  { %3515 = vmatpush.bf16.msrb.mxu3 %v6030_v48 }
 0x326   :  { %5814 = vmatmul.msk.bf16.gmra.mxu3 %vm929_vm2, %v8814_v34  ;;  %3612 = vmatpush.bf16.msrb.mxu1 %v6042_v52  ;;  %v3805_v52 = vsel %vm954_vm1, %v3754_v9, 0  ;;  %v6143_v9 = vld [vmem:[%s9878_s4 + $0x2c0] sm:$0xf0] }
 0x327   :  { %v2548_v26 = vpop.f32.mrf.mxu2 }
 0x328   :  { %v2638_v8 = vpop.f32.mrf.mxu0 }
 0x329   :  { %v2592_v34 = vpop.f32.mrf.mxu3  ;;  %v9074_v36 = vadd.f32 %v2687_v61, %v2638_v8  ;;  %v2692_v10 = vpop.f32.mrf.mxu1  ;;  %v5970_v61 = vor.u32 %v6588_v29, %v5967_v46  ;;  %3862 = vmatpush.bf16.msra.mxu3 %v3805_v52  ;;  %v5903_v29 = vld [vmem:[%s9875_s1 + $0x188] sm:$0xf0] }
 0x32a   :  { %v9072_v6 = vadd.f32 %v2592_v34, %v2543_v55  ;;  %3613 = vmatpush.bf16.msrb.mxu1 %v6034_v17  ;;  %v5909_v17 = vld [vmem:[%s9875_s1 + $0x190] sm:$0xf] }
 0x32b   :  { %3564 = vmatpush.bf16.msrb.mxu0 %v5970_v61 }
 0x32f   :  { %v2550_v47 = vpop.f32.mrf.mxu2 }
 0x330   :  { %v2641_v28 = vpop.f32.mrf.mxu0 }
 0x331   :  { %v2594_v35 = vpop.f32.mrf.mxu3  ;;  %v9090_v55 = vadd.f32 %v2690_v33, %v2641_v28  ;;  %v2695_v50 = vpop.f32.mrf.mxu1  ;;  %v6575_v28 = vld [vmem:[%s9875_s1 + $0x194] sm:$0xf0] }
 0x332   :  { %v9088_v51 = vadd.f32 %v2594_v35, %v2545_v27  ;;  %v6149_v27 = vld [vmem:[%s9878_s4 + $0x2c8] sm:$0xf]  ;;  %v3755_v35 = vpack.c.b16 %v3729_v14, %v3729_v14  ;;  %v6571_v14 = vld [vmem:[%s9878_s4 + $0x30c] sm:$0xf0] }
 0x333   :  { %2991 = vmatmul.bf16.gmra.mxu0 %v8781_v3  ;;  %v6150_v45 = vor.u32 %v6563_v23, %v6149_v27  ;;  %v6141_v23 = vld [vmem:[%s9878_s4 + $0x2b8] sm:$0xf] }
 0x334   :  { %2903 = vmatmul.bf16.gmra.mxu2 %v8871_v20  ;;  %5823 = vmatmul.msk.bf16.gmra.mxu1 %vm929_vm2, %v8850_v57 }
 0x335   :  { %3810 = vmatpush.bf16.msra.mxu2 %v6150_v45  ;;  %v6142_v45 = vor.u32 %v6561_v2, %v6141_v23 }
 0x336   :  { %5815 = vmatmul.msk.bf16.gmra.mxu3 %vm929_vm2, %v8850_v57  ;;  %v5901_v57 = vld [vmem:[%s9875_s1 + $0x180] sm:$0xf] }
 0x337   :  { %v2553_v5 = vpop.f32.mrf.mxu2  ;;  %v9123_v53 = vor.u32 %v6573_v63, %v5901_v57 }
 0x338   :  { %v2643_v3 = vpop.f32.mrf.mxu0 }
 0x339   :  { %v2597_v32 = vpop.f32.mrf.mxu3  ;;  %v9106_v54 = vadd.f32 %v2692_v10, %v2643_v3  ;;  %v2697_v41 = vpop.f32.mrf.mxu1  ;;  %3811 = vmatpush.bf16.msra.mxu2 %v6142_v45 }
 0x33a   :  { %v9104_v12 = vadd.f32 %v2597_v32, %v2548_v26  ;;  %v9161_v32 = vor.u32 %v6575_v28, %v5909_v17 }
 0x33f   :  { %v2555_v43 = vpop.f32.mrf.mxu2 }
 0x340   :  { %v2646_v19 = vpop.f32.mrf.mxu0 }
 0x341   :  { %v2599_v33 = vpop.f32.mrf.mxu3  ;;  %v9127_v11 = vadd.f32 %v2695_v50, %v2646_v19  ;;  %v2700_v26 = vpop.f32.mrf.mxu1  ;;  %v6572_v50 = vld [vmem:[%s9875_s1 + $0x184] sm:$0xf] }
 0x342   :  { %v9125_v16 = vadd.f32 %v2599_v33, %v2550_v47  ;;  %v5906_v57 = vor.u32 %v6572_v50, %v5903_v29  ;;  %v6560_v33 = vld [vmem:[%s9878_s4 + $0x2bc] sm:$0xf]  ;;  %v6133_v50 = vld [vmem:[%s9878_s4 + $0x2a8] sm:$0xf]  ;;  %v6559_v29 = vld [vmem:[%s9878_s4 + $0x2ac] sm:$0xf0] }
 0x343   :  { %2996 = vmatmul.bf16.gmra.mxu0 %v8831_v62  ;;  %v6151_v62 = vld [vmem:[%s9878_s4 + $0x2d0] sm:$0xf0]  ;;  %v6146_v52 = vor.u32 %v6560_v33, %v6143_v9  ;;  %v6134_v23 = vor.u32 %v6559_v29, %v6133_v50 }
 0x344   :  { %3467 = vmatmul.bf16.vlgmr.msrb.gmra.mxu2 %v9123_v53  ;;  %5824 = vmatmul.msk.bf16.gmra.mxu1 %vm929_vm2, %v8894_v42  ;;  %v6154_v60 = vor.u32 %v6562_v37, %v6151_v62  ;;  %v5917_v37 = vld [vmem:[%s9875_s1 + $0x1a0] sm:$0xf]  ;;  %v6181_v62 = vld [vmem:[%s9878_s4 + $0x308] sm:$0xf] }
 0x345   :  { %3812 = vmatpush.bf16.msra.mxu2 %v6134_v23  ;;  %v6125_v23 = vld [vmem:[%s9878_s4 + $0x298] sm:$0xf] }
 0x346   :  { %5816 = vmatmul.msk.bf16.gmra.mxu3 %vm929_vm2, %v8894_v42  ;;  %3908 = vmatpush.bf16.msra.mxu0 %v6154_v60  ;;  %v5911_v60 = vld [vmem:[%s9875_s1 + $0x198] sm:$0xf0] }
 0x347   :  { %v2869_v34 = vpop.f32.mrf.mxu2 }
 0x348   :  { %v2870_v10 = vadd.f32 %v2869_v34, %v8873_v21  ;;  %v2648_v47 = vpop.f32.mrf.mxu0  ;;  %v3808_v21 = vsel %vm954_vm1, %v3755_v35, 0 }
 0x349   :  { %v2602_v8 = vpop.f32.mrf.mxu3  ;;  %v9145_v4 = vadd.f32 %v2697_v41, %v2648_v47  ;;  %v2702_v42 = vpop.f32.mrf.mxu1  ;;  %3960 = vmatpush.bf16.msra.mxu1 %v3808_v21  ;;  %v6574_v47 = vld [vmem:[%s9875_s1 + $0x194] sm:$0xf] }
 0x34a   :  { %v9143_v48 = vadd.f32 %v2602_v8, %v2553_v5  ;;  %3909 = vmatpush.bf16.msra.mxu0 %v6146_v52 }
 0x34f   :  { %v2871_v46 = vpop.f32.mrf.mxu2 }
 0x350   :  { %v2872_v5 = vadd.f32 %v2871_v46, %v8890_v40  ;;  %v2651_v41 = vpop.f32.mrf.mxu0 }
 0x351   :  { %v2604_v61 = vpop.f32.mrf.mxu3  ;;  %v9165_v63 = vadd.f32 %v2700_v26, %v2651_v41  ;;  %v3016_v27 = vpop.f32.mrf.mxu1 }
 0x352   :  { %v9163_v3 = vadd.f32 %v2604_v61, %v2555_v43 }
 0x353   :  { %3001 = vmatmul.bf16.gmra.mxu0 %v8871_v20  ;;  %v5825_v20 = vld [vmem:[%s9880_s6 + $0x4] sm:$0x3] }
 0x354   :  { %3472 = vmatmul.bf16.gmra.mxu2 %v9161_v32  ;;  %3614 = vmatmul.bf16.vlgmr.msrb.gmra.mxu1 %v5906_v57 }
 0x356   :  { %3516 = vmatmul.bf16.vlgmr.msrb.gmra.mxu3 %v5906_v57  ;;  %v5914_v57 = vor.u32 %v6574_v47, %v5911_v60 }
 0x357   :  { %v2874_v40 = vpop.f32.mrf.mxu2 }
 0x358   :  { %v2875_v44 = vadd.f32 %v2874_v40, %v8914_v1  ;;  %v2653_v26 = vpop.f32.mrf.mxu0  ;;  %v9187_v1 = vperm.slane %v5825_v20, 0 }
 0x359   :  { %v2918_v43 = vpop.f32.mrf.mxu3  ;;  %v9185_v34 = vadd.f32 %v2702_v42, %v2653_v26  ;;  %v3018_v8 = vpop.f32.mrf.mxu1  ;;  %v6182_v42 = vor.u32 %v6571_v14, %v6181_v62  ;;  %v9229_v26 = vperm.slane %v5825_v20, 1 }
 0x35a   :  { %v2919_v19 = vadd.f32 %v2918_v43, %v2870_v10  ;;  %v6577_v10 = vld [vmem:[%s9875_s1 + $0x1a4] sm:$0xf0] }
 0x35b   :  { %v9208_v28 = vor.u32 %v6577_v10, %v5917_v37  ;;  %3863 = vmatpush.bf16.msra.mxu3 %v6182_v42  ;;  %v6558_v37 = vld [vmem:[%s9878_s4 + $0x2ac] sm:$0xf]  ;;  %v6135_v10 = vld [vmem:[%s9878_s4 + $0x2b0] sm:$0xf0] }
 0x35c   :  { %v3063_v46 = vadd.f32 %v9187_v1, %v2919_v19  ;;  %v6138_v47 = vor.u32 %v6558_v37, %v6135_v10 }
 0x35e   :  { %v3095_v43 = vmax.f32 %v3063_v46, 0.0  ;;  %3910 = vmatpush.bf16.msra.mxu0 %v6138_v47 }
 0x35f   :  { %v2876_v35 = vpop.f32.mrf.mxu2 }
 0x360   :  { %v2877_v21 = vadd.f32 %v2876_v35, %v8930_v49  ;;  %v2967_v41 = vpop.f32.mrf.mxu0  ;;  %v5925_v35 = vld [vmem:[%s9875_s1 + $0x1b0] sm:$0xf] }
 0x361   :  { %v2920_v17 = vpop.f32.mrf.mxu3  ;;  %v2968_v49 = vadd.f32 %v2967_v41, %v8892_v0  ;;  %v3021_v2 = vpop.f32.mrf.mxu1  ;;  %v6183_v0 = vld [vmem:[%s9878_s4 + $0x310] sm:$0xf0] }
 0x362   :  { %v2921_v61 = vadd.f32 %v2920_v17, %v2872_v5  ;;  %v6570_v5 = vld [vmem:[%s9878_s4 + $0x30c] sm:$0xf]  ;;  %v6579_v17 = vld [vmem:[%s9875_s1 + $0x1b4] sm:$0xf0] }
 0x363   :  { %v3017_v40 = vadd.f32 %v3016_v27, %v2968_v49  ;;  %3565 = vmatmul.bf16.vlgmr.msrb.gmra.mxu0 %v9123_v53  ;;  %v6186_v9 = vor.u32 %v6570_v5, %v6183_v0  ;;  %v6557_v49 = vld [vmem:[%s9878_s4 + $0x29c] sm:$0xf0] }
 0x364   :  { %v3065_v45 = vadd.f32 %v9187_v1, %v2921_v61  ;;  %3477 = vmatmul.bf16.gmra.mxu2 %v9208_v28  ;;  %3619 = vmatmul.bf16.gmra.mxu1 %v5914_v57  ;;  %v6126_v5 = vor.u32 %v6557_v49, %v6125_v23 }
 0x365   :  { %3961 = vmatpush.bf16.msra.mxu1 %v6186_v9  ;;  %v3064_v20 = vadd.f32 %v9229_v26, %v3017_v40 }
 0x366   :  { %v3097_v33 = vmax.f32 %v3065_v45, 0.0  ;;  %3521 = vmatmul.bf16.gmra.mxu3 %v5914_v57  ;;  %v9254_v57 = vor.u32 %v6579_v17, %v5925_v35  ;;  %3813 = vmatpush.bf16.msra.mxu2 %v6126_v5 }
 0x367   :  { %v2879_v27 = vpop.f32.mrf.mxu2 }
 0x368   :  { %v9227_v19 = vpack.c.bf16 %v3097_v33, %v3095_v43  ;;  %v2880_v53 = vadd.f32 %v2879_v27, %v8952_v31  ;;  %v2969_v14 = vpop.f32.mrf.mxu0 }
 0x369   :  { %v2923_v52 = vpop.f32.mrf.mxu3  ;;  %v2970_v60 = vadd.f32 %v2969_v14, %v8916_v7  ;;  %v3023_v42 = vpop.f32.mrf.mxu1  ;;  %v5919_v7 = vld [vmem:[%s9875_s1 + $0x1a8] sm:$0xf0] }
 0x36a   :  { %v2924_v62 = vadd.f32 %v2923_v52, %v2875_v44  ;;  %v6576_v44 = vld [vmem:[%s9875_s1 + $0x1a4] sm:$0xf] }
 0x36b   :  { %v3019_v31 = vadd.f32 %v3018_v8, %v2970_v60  ;;  %v3096_v8 = vmax.f32 %v3064_v20, 0.0  ;;  %v5922_v33 = vor.u32 %v6576_v44, %v5919_v7 }
 0x36c   :  { %v3067_v45 = vadd.f32 %v9187_v1, %v2924_v62 }
 0x36d   :  { %v3066_v50 = vadd.f32 %v9229_v26, %v3019_v31  ;;  %v6556_v31 = vld [vmem:[%s9878_s4 + $0x29c] sm:$0xf] }
 0x36e   :  { %v3099_v37 = vmax.f32 %v3067_v45, 0.0 }
 0x36f   :  { %v2881_v29 = vpop.f32.mrf.mxu2  ;;  %v3098_v46 = vmax.f32 %v3066_v50, 0.0 }
 0x370   :  { %v2882_v61 = vadd.f32 %v2881_v29, %v8968_v22  ;;  %v2972_v43 = vpop.f32.mrf.mxu0  ;;  %v6581_v29 = vld [vmem:[%s9875_s1 + $0x1c4] sm:$0xf0] }
 0x371   :  { %v2925_v41 = vpop.f32.mrf.mxu3  ;;  %v9263_v0 = vpack.c.bf16 %v3098_v46, %v3096_v8  ;;  %v2973_v22 = vadd.f32 %v2972_v43, %v8932_v13  ;;  %v3026_v9 = vpop.f32.mrf.mxu1  ;;  %v6173_v13 = vld [vmem:[%s9878_s4 + $0x2f8] sm:$0xf]  ;;  %v5927_v46 = vld [vmem:[%s9875_s1 + $0x1b8] sm:$0xf0] }
 0x372   :  { %v2926_v40 = vadd.f32 %v2925_v41, %v2877_v21  ;;  %v6568_v43 = vld [vmem:[%s9878_s4 + $0x2fc] sm:$0xf] }
 0x373   :  { %v3022_v52 = vadd.f32 %v3021_v2, %v2973_v22  ;;  %3570 = vmatmul.bf16.gmra.mxu0 %v9161_v32  ;;  %v6569_v2 = vld [vmem:[%s9878_s4 + $0x2fc] sm:$0xf0] }
 0x374   :  { %v3069_v27 = vadd.f32 %v9187_v1, %v2926_v40  ;;  %3482 = vmatmul.bf16.gmra.mxu2 %v9254_v57  ;;  %3624 = vmatmul.bf16.gmra.mxu1 %v5922_v33  ;;  %v6174_v20 = vor.u32 %v6569_v2, %v6173_v13 }
 0x375   :  { %v3068_v44 = vadd.f32 %v9229_v26, %v3022_v52 }
 0x376   :  { %v3101_v10 = vmax.f32 %v3069_v27, 0.0  ;;  %3526 = vmatmul.bf16.gmra.mxu3 %v5922_v33  ;;  %v6175_v33 = vld [vmem:[%s9878_s4 + $0x300] sm:$0xf0] }
 0x377   :  { %v2884_v21 = vpop.f32.mrf.mxu2  ;;  %3864 = vmatpush.bf16.msra.mxu3 %v6174_v20  ;;  %v3100_v41 = vmax.f32 %v3068_v44, 0.0 }
 0x378   :  { %v9269_v62 = vpack.c.bf16 %v3101_v10, %v3099_v37  ;;  %v2885_v14 = vadd.f32 %v2884_v21, %v8990_v38  ;;  %v2974_v32 = vpop.f32.mrf.mxu0  ;;  %v6127_v38 = vld [vmem:[%s9878_s4 + $0x2a0] sm:$0xf0]  ;;  %v6178_v37 = vor.u32 %v6568_v43, %v6175_v33  ;;  %v6555_v10 = vld [vmem:[%s9878_s4 + $0x28c] sm:$0xf0] }
 0x379   :  { %v2928_v47 = vpop.f32.mrf.mxu3  ;;  %v2975_v35 = vadd.f32 %v2974_v32, %v8954_v39  ;;  %v3028_v17 = vpop.f32.mrf.mxu1  ;;  %v6130_v50 = vor.u32 %v6556_v31, %v6127_v38  ;;  %v6578_v39 = vld [vmem:[%s9875_s1 + $0x1b4] sm:$0xf] }
 0x37a   :  { %v2929_v60 = vadd.f32 %v2928_v47, %v2880_v53  ;;  %v5933_v53 = vld [vmem:[%s9875_s1 + $0x1c0] sm:$0xf]  ;;  %v5930_v52 = vor.u32 %v6578_v39, %v5927_v46  ;;  %3962 = vmatpush.bf16.msra.mxu1 %v6178_v37  ;;  %v6583_v46 = vld [vmem:[%s9875_s1 + $0x1d4] sm:$0xf0] }
 0x37b   :  { %v3024_v7 = vadd.f32 %v3023_v42, %v2975_v35  ;;  %3911 = vmatpush.bf16.msra.mxu0 %v6130_v50  ;;  %v9300_v40 = vor.u32 %v6581_v29, %v5933_v53  ;;  %v6554_v50 = vld [vmem:[%s9878_s4 + $0x28c] sm:$0xf] }
 0x37c   :  { %v3071_v5 = vadd.f32 %v9187_v1, %v2929_v60 }
 0x37d   :  { %v3070_v8 = vadd.f32 %v9229_v26, %v3024_v7 }
 0x37e   :  { %v3103_v32 = vmax.f32 %v3071_v5, 0.0  ;;  %v6165_v5 = vld [vmem:[%s9878_s4 + $0x2e8] sm:$0xf] }
 0x37f   :  { %v2886_v42 = vpop.f32.mrf.mxu2  ;;  %v3102_v23 = vmax.f32 %v3070_v8, 0.0 }
 0x380   :  { %v2887_v49 = vadd.f32 %v2886_v42, %v9006_v15  ;;  %v2977_v27 = vpop.f32.mrf.mxu0  ;;  %v6117_v15 = vld [vmem:[%s9878_s4 + $0x288] sm:$0xf] }
 0x381   :  { %v2930_v45 = vpop.f32.mrf.mxu3  ;;  %v2978_v21 = vadd.f32 %v2977_v27, %v8970_v18  ;;  %v3031_v47 = vpop.f32.mrf.mxu1  ;;  %v6118_v13 = vor.u32 %v6555_v10, %v6117_v15  ;;  %v9316_v2 = vpack.c.bf16 %v3102_v23, %v3100_v41 }
 0x382   :  { %v2931_v22 = vadd.f32 %v2930_v45, %v2882_v61 }
 0x383   :  { %v3027_v61 = vadd.f32 %v3026_v9, %v2978_v21  ;;  %3575 = vmatmul.bf16.gmra.mxu0 %v9208_v28  ;;  %3814 = vmatpush.bf16.msra.mxu2 %v6118_v13  ;;  %v6119_v9 = vld [vmem:[%s9878_s4 + $0x290] sm:$0xf0]  ;;  %v6553_v21 = vld [vmem:[%s9878_s4 + $0x27c] sm:$0xf0] }
 0x384   :  { %v3073_v60 = vadd.f32 %v9187_v1, %v2931_v22  ;;  %3487 = vmatmul.bf16.gmra.mxu2 %v9300_v40  ;;  %3629 = vmatmul.bf16.gmra.mxu1 %v5930_v52  ;;  %v6122_v7 = vor.u32 %v6554_v50, %v6119_v9  ;;  %v6567_v22 = vld [vmem:[%s9878_s4 + $0x2ec] sm:$0xf0] }
 0x385   :  { %v3072_v8 = vadd.f32 %v9229_v26, %v3027_v61  ;;  %v6166_v10 = vor.u32 %v6567_v22, %v6165_v5 }
 0x386   :  { %v3105_v20 = vmax.f32 %v3073_v60, 0.0  ;;  %3531 = vmatmul.bf16.gmra.mxu3 %v5930_v52  ;;  %3912 = vmatpush.bf16.msra.mxu0 %v6122_v7 }
 0x387   :  { %v2889_v31 = vpop.f32.mrf.mxu2  ;;  %3865 = vmatpush.bf16.msra.mxu3 %v6166_v10 }
 0x388   :  { %v9321_v38 = vpack.c.bf16 %v3105_v20, %v3103_v32  ;;  %v2890_v18 = vadd.f32 %v2889_v31, %v9028_v58  ;;  %v2979_v44 = vpop.f32.mrf.mxu0  ;;  %v5941_v58 = vld [vmem:[%s9875_s1 + $0x1d0] sm:$0xf] }
 0x389   :  { %v2933_v35 = vpop.f32.mrf.mxu3  ;;  %v2980_v53 = vadd.f32 %v2979_v44, %v8992_v25  ;;  %v3033_v29 = vpop.f32.mrf.mxu1  ;;  %v5935_v25 = vld [vmem:[%s9875_s1 + $0x1c8] sm:$0xf0]  ;;  %v9348_v33 = vor.u32 %v6583_v46, %v5941_v58 }
 0x38a   :  { %v2934_v28 = vadd.f32 %v2933_v35, %v2885_v14  ;;  %v6580_v14 = vld [vmem:[%s9875_s1 + $0x1c4] sm:$0xf]  ;;  %v6566_v44 = vld [vmem:[%s9878_s4 + $0x2ec] sm:$0xf] }
 0x38b   :  { %v3029_v39 = vadd.f32 %v3028_v17, %v2980_v53  ;;  %v3104_v17 = vmax.f32 %v3072_v8, 0.0  ;;  %v5938_v15 = vor.u32 %v6580_v14, %v5935_v25  ;;  %v6552_v8 = vld [vmem:[%s9878_s4 + $0x27c] sm:$0xf] }
 0x38c   :  { %v3075_v27 = vadd.f32 %v9187_v1, %v2934_v28 }
 0x38d   :  { %v3074_v42 = vadd.f32 %v9229_v26, %v3029_v39 }
 0x38e   :  { %v3107_v31 = vmax.f32 %v3075_v27, 0.0  ;;  %v6093_v27 = vld [vmem:[%s9878_s4 + $0x258] sm:$0xf] }
 0x38f   :  { %v2891_v41 = vpop.f32.mrf.mxu2  ;;  %v3106_v23 = vmax.f32 %v3074_v42, 0.0  ;;  %v6101_v42 = vld [vmem:[%s9878_s4 + $0x268] sm:$0xf] }
 0x390   :  { %v9346_v45 = vadd.f32 %v2891_v41, %v9050_v30  ;;  %v2982_v37 = vpop.f32.mrf.mxu0  ;;  %v6109_v30 = vld [vmem:[%s9878_s4 + $0x278] sm:$0xf]  ;;  %v5949_v41 = vld [vmem:[%s9875_s1 + $0x1e0] sm:$0xf] }
 0x391   :  { %v2935_v43 = vpop.f32.mrf.mxu3  ;;  %v2983_v13 = vadd.f32 %v2982_v37, %v9008_v24  ;;  %v3036_v60 = vpop.f32.mrf.mxu1  ;;  %v6110_v61 = vor.u32 %v6553_v21, %v6109_v30  ;;  %v9364_v32 = vpack.c.bf16 %v3106_v23, %v3104_v17 }
 0x392   :  { %v2936_v52 = vadd.f32 %v2935_v43, %v2887_v49  ;;  %v6582_v43 = vld [vmem:[%s9875_s1 + $0x1d4] sm:$0xf] }
 0x393   :  { %v3032_v49 = vadd.f32 %v3031_v47, %v2983_v13  ;;  %3580 = vmatmul.bf16.gmra.mxu0 %v9254_v57  ;;  %3815 = vmatpush.bf16.msra.mxu2 %v6110_v61  ;;  %v6167_v47 = vld [vmem:[%s9878_s4 + $0x2f0] sm:$0xf0] }
 0x394   :  { %v3077_v20 = vadd.f32 %v9187_v1, %v2936_v52  ;;  %3492 = vmatmul.bf16.gmra.mxu2 %v9348_v33  ;;  %3634 = vmatmul.bf16.gmra.mxu1 %v5938_v15  ;;  %v6170_v53 = vor.u32 %v6566_v44, %v6167_v47  ;;  %v6549_v52 = vld [vmem:[%s9878_s4 + $0x25c] sm:$0xf0] }
 0x395   :  { %v3076_v14 = vadd.f32 %v9229_v26, %v3032_v49  ;;  %v6094_v21 = vor.u32 %v6549_v52, %v6093_v27 }
 0x396   :  { %v3109_v35 = vmax.f32 %v3077_v20, 0.0  ;;  %3536 = vmatmul.bf16.gmra.mxu3 %v5938_v15  ;;  %3963 = vmatpush.bf16.msra.mxu1 %v6170_v53  ;;  %v6550_v53 = vld [vmem:[%s9878_s4 + $0x26c] sm:$0xf] }
 0x397   :  { %v2894_v50 = vpop.f32.mrf.mxu2  ;;  %v3108_v37 = vmax.f32 %v3076_v14, 0.0 }
 0x398   :  { %v9369_v9 = vpack.c.bf16 %v3109_v35, %v3107_v31  ;;  %v2895_v24 = vadd.f32 %v2894_v50, %v9072_v6  ;;  %v2984_v7 = vpop.f32.mrf.mxu0  ;;  %v6111_v6 = vld [vmem:[%s9878_s4 + $0x280] sm:$0xf0] }
 0x399   :  { %v2938_v28 = vpop.f32.mrf.mxu3  ;;  %v2985_v39 = vadd.f32 %v2984_v7, %v9030_v59  ;;  %v3038_v58 = vpop.f32.mrf.mxu1  ;;  %v6114_v46 = vor.u32 %v6552_v8, %v6111_v6  ;;  %v6585_v59 = vld [vmem:[%s9875_s1 + $0x1e4] sm:$0xf0] }
 0x39a   :  { %v2939_v57 = vadd.f32 %v2938_v28, %v2890_v18  ;;  %v6551_v18 = vld [vmem:[%s9878_s4 + $0x26c] sm:$0xf0]  ;;  %v9405_v22 = vor.u32 %v6585_v59, %v5949_v41  ;;  %v6587_v41 = vld [vmem:[%s9875_s1 + $0x1f4] sm:$0xf0] }
 0x39b   :  { %v3034_v25 = vadd.f32 %v3033_v29, %v2985_v39  ;;  %3913 = vmatpush.bf16.msra.mxu0 %v6114_v46  ;;  %v6102_v17 = vor.u32 %v6551_v18, %v6101_v42  ;;  %v5943_v29 = vld [vmem:[%s9875_s1 + $0x1d8] sm:$0xf0]  ;;  %v6157_v39 = vld [vmem:[%s9878_s4 + $0x2d8] sm:$0xf] }
 0x39c   :  { %v3079_v13 = vadd.f32 %v9187_v1, %v2939_v57  ;;  %v5946_v49 = vor.u32 %v6582_v43, %v5943_v29  ;;  %v6564_v43 = vld [vmem:[%s9878_s4 + $0x2dc] sm:$0xf]  ;;  %v6159_v29 = vld [vmem:[%s9878_s4 + $0x2e0] sm:$0xf0] }
 0x39d   :  { %v3078_v23 = vadd.f32 %v9229_v26, %v3034_v25  ;;  %3816 = vmatpush.bf16.msra.mxu2 %v6102_v17  ;;  %v5951_v17 = vld [vmem:[%s9875_s1 + $0x1e8] sm:$0xf0] }
 0x39f   :  { %v2896_v5 = vpop.f32.mrf.mxu2  ;;  %v3110_v15 = vmax.f32 %v3078_v23, 0.0 }
 0x3a0   :  { %v2897_v10 = vadd.f32 %v2896_v5, %v9088_v51  ;;  %v2987_v20 = vpop.f32.mrf.mxu0  ;;  %v3111_v51 = vmax.f32 %v3079_v13, 0.0 }
 0x3a1   :  { %v2940_v30 = vpop.f32.mrf.mxu3  ;;  %v2988_v31 = vadd.f32 %v2987_v20, %v9052_v56  ;;  %v3041_v35 = vpop.f32.mrf.mxu1  ;;  %3817 = vmatpush.bf16.msra.mxu2 %v6094_v21  ;;  %v9417_v50 = vpack.c.bf16 %v3110_v15, %v3108_v37  ;;  %v6162_v15 = vor.u32 %v6564_v43, %v6159_v29 }
 0x3a2   :  { %v2941_v61 = vadd.f32 %v2940_v30, %v9346_v45 }
 0x3a3   :  { %v3037_v44 = vadd.f32 %v3036_v60, %v2988_v31  ;;  %3585 = vmatmul.bf16.gmra.mxu0 %v9300_v40  ;;  %v6103_v60 = vld [vmem:[%s9878_s4 + $0x270] sm:$0xf0]  ;;  %3964 = vmatpush.bf16.msra.mxu1 %v6162_v15 }
 0x3a4   :  { %v3081_v28 = vadd.f32 %v9187_v1, %v2941_v61  ;;  %3497 = vmatmul.bf16.gmra.mxu2 %v9405_v22  ;;  %3639 = vmatmul.bf16.gmra.mxu1 %v5946_v49  ;;  %v6106_v6 = vor.u32 %v6550_v53, %v6103_v60 }
 0x3a5   :  { %v3080_v14 = vadd.f32 %v9229_v26, %v3037_v44 }
 0x3a6   :  { %v3113_v47 = vmax.f32 %v3081_v28, 0.0  ;;  %3541 = vmatmul.bf16.gmra.mxu3 %v5946_v49  ;;  %3914 = vmatpush.bf16.msra.mxu0 %v6106_v6 }
 0x3a7   :  { %v2899_v45 = vpop.f32.mrf.mxu2  ;;  %v3112_v5 = vmax.f32 %v3080_v14, 0.0 }
 0x3a8   :  { %v9422_v57 = vpack.c.bf16 %v3113_v47, %v3111_v51  ;;  %v2900_v56 = vadd.f32 %v2899_v45, %v9104_v12  ;;  %v2989_v40 = vpop.f32.mrf.mxu0  ;;  %v6565_v12 = vld [vmem:[%s9878_s4 + $0x2dc] sm:$0xf0] }
 0x3a9   :  { %v2943_v7 = vpop.f32.mrf.mxu3  ;;  %v2990_v46 = vadd.f32 %v2989_v40, %v9074_v36  ;;  %v3043_v42 = vpop.f32.mrf.mxu1  ;;  %v6158_v18 = vor.u32 %v6565_v12, %v6157_v39  ;;  %v6584_v36 = vld [vmem:[%s9875_s1 + $0x1e4] sm:$0xf]  ;;  %v6586_v12 = vld [vmem:[%s9875_s1 + $0x1f4] sm:$0xf] }
 0x3aa   :  { %v2944_v8 = vadd.f32 %v2943_v7, %v2895_v24  ;;  %v5957_v24 = vld [vmem:[%s9875_s1 + $0x1f0] sm:$0xf]  ;;  %v5954_v61 = vor.u32 %v6584_v36, %v5951_v17  ;;  %v6548_v7 = vld [vmem:[%s9878_s4 + $0x25c] sm:$0xf] }
 0x3ab   :  { %v3039_v25 = vadd.f32 %v3038_v58, %v2990_v46  ;;  %3866 = vmatpush.bf16.msra.mxu3 %v6158_v18  ;;  %v9452_v23 = vor.u32 %v6587_v41, %v5957_v24  ;;  %v5959_v46 = vld [vmem:[%s9875_s1 + $0x1f8] sm:$0xf0] }
 0x3ac   :  { %v3083_v30 = vadd.f32 %v9187_v1, %v2944_v8 }
 0x3ad   :  { %v3082_v59 = vadd.f32 %v9229_v26, %v3039_v25 }
 0x3af   :  { %v2901_v58 = vpop.f32.mrf.mxu2  ;;  %v3114_v27 = vmax.f32 %v3082_v59, 0.0  ;;  %v5962_v59 = vor.u32 %v6586_v12, %v5959_v46 }
 0x3b0   :  { %v2902_v52 = vadd.f32 %v2901_v58, %v9125_v16  ;;  %v2992_v13 = vpop.f32.mrf.mxu0  ;;  %v3115_v16 = vmax.f32 %v3083_v30, 0.0 }
 0x3b1   :  { %v2945_v37 = vpop.f32.mrf.mxu3  ;;  %v2993_v20 = vadd.f32 %v2992_v13, %v9090_v55  ;;  %v3046_v49 = vpop.f32.mrf.mxu1  ;;  %v9463_v31 = vpack.c.bf16 %v3114_v27, %v3112_v5 }
 0x3b2   :  { %v2946_v21 = vadd.f32 %v2945_v37, %v2897_v10 }
 0x3b3   :  { %v3042_v44 = vadd.f32 %v3041_v35, %v2993_v20  ;;  %3590 = vmatmul.bf16.gmra.mxu0 %v9348_v33  ;;  %v6095_v35 = vld [vmem:[%s9878_s4 + $0x260] sm:$0xf0] }
 0x3b4   :  { %v3085_v28 = vadd.f32 %v9187_v1, %v2946_v21  ;;  %3502 = vmatmul.bf16.gmra.mxu2 %v9452_v23  ;;  %3644 = vmatmul.bf16.gmra.mxu1 %v5954_v61  ;;  %v6098_v60 = vor.u32 %v6548_v7, %v6095_v35 }
 0x3b5   :  { %v3084_v6 = vadd.f32 %v9229_v26, %v3042_v44 }
 0x3b6   :  { %v3117_v51 = vmax.f32 %v3085_v28, 0.0  ;;  %3546 = vmatmul.bf16.gmra.mxu3 %v5954_v61  ;;  %3915 = vmatpush.bf16.msra.mxu0 %v6098_v60 }
 0x3b7   :  { %v2904_v10 = vpop.f32.mrf.mxu2  ;;  %v3116_v18 = vmax.f32 %v3084_v6, 0.0 }
 0x3b8   :  { %v9468_v47 = vpack.c.bf16 %v3117_v51, %v3115_v16  ;;  %v2905_v55 = vadd.f32 %v2904_v10, %v9143_v48  ;;  %v2994_v33 = vpop.f32.mrf.mxu0 }
 0x3b9   :  { %v2948_v45 = vpop.f32.mrf.mxu3  ;;  %v2995_v8 = vadd.f32 %v2994_v33, %v9106_v54  ;;  %v3048_v40 = vpop.f32.mrf.mxu1 }
 0x3ba   :  { %v2949_v53 = vadd.f32 %v2948_v45, %v2900_v56 }
 0x3bb   :  { %v3044_v39 = vadd.f32 %v3043_v42, %v2995_v8 }
 0x3bc   :  { %v3087_v24 = vadd.f32 %v9187_v1, %v2949_v53 }
 0x3bd   :  { %v3086_v48 = vadd.f32 %v9229_v26, %v3044_v39 }
 0x3be   :  { %v3119_v5 = vmax.f32 %v3087_v24, 0.0 }
 0x3bf   :  { %v2906_v56 = vpop.f32.mrf.mxu2  ;;  %v3118_v14 = vmax.f32 %v3086_v48, 0.0 }
 0x3c0   :  { %v2907_v54 = vadd.f32 %v2906_v56, %v9163_v3  ;;  %v2997_v42 = vpop.f32.mrf.mxu0 }
 0x3c1   :  { %v2950_v25 = vpop.f32.mrf.mxu3  ;;  %v2998_v36 = vadd.f32 %v2997_v42, %v9127_v11  ;;  %v3051_v17 = vpop.f32.mrf.mxu1  ;;  %v9489_v58 = vpack.c.bf16 %v3118_v14, %v3116_v18 }
 0x3c2   :  { %v2951_v41 = vadd.f32 %v2950_v25, %v2902_v52 }
 0x3c3   :  { %v3047_v29 = vadd.f32 %v3046_v49, %v2998_v36  ;;  %3595 = vmatmul.bf16.gmra.mxu0 %v9405_v22 }
 0x3c4   :  { %v3089_v43 = vadd.f32 %v9187_v1, %v2951_v41  ;;  %3818 = vmatmul.bf16.vlgmr.msra.gmra.mxu2 %v9227_v19  ;;  %3649 = vmatmul.bf16.gmra.mxu1 %v5962_v59 }
 0x3c5   :  { %v3088_v13 = vadd.f32 %v9229_v26, %v3047_v29 }
 0x3c6   :  { %v3121_v3 = vmax.f32 %v3089_v43, 0.0  ;;  %3551 = vmatmul.bf16.gmra.mxu3 %v5962_v59 }
 0x3c7   :  { %v3468_v27 = vpop.f32.mrf.mxu2  ;;  %v3120_v49 = vmax.f32 %v3088_v13, 0.0 }
 0x3c8   :  { %v9494_v52 = vpack.c.bf16 %v3121_v3, %v3119_v5  ;;  %v2999_v11 = vpop.f32.mrf.mxu0 }
 0x3c9   :  { %v2953_v37 = vpop.f32.mrf.mxu3  ;;  %v3000_v30 = vadd.f32 %v2999_v11, %v9145_v4  ;;  %v3053_v21 = vpop.f32.mrf.mxu1  ;;  %v6627_v4 = vld [vmem:[%s9881_s7 + $0x38] sm:$0xff] }
 0x3ca   :  { %v2954_v15 = vadd.f32 %v2953_v37, %v2905_v55  ;;  %4224 = vmatpush.bf16.msrb.mxu2 %v6627_v4 }
 0x3cb   :  { %v3049_v61 = vadd.f32 %v3048_v40, %v3000_v30 }
 0x3cc   :  { %v3091_v16 = vadd.f32 %v9187_v1, %v2954_v15  ;;  %v6631_v15 = vld [vmem:[%s9881_s7 + $0x58] sm:$0xff] }
 0x3cd   :  { %v3090_v22 = vadd.f32 %v9229_v26, %v3049_v61  ;;  %v6625_v61 = vld [vmem:[%s9881_s7 + $0x28] sm:$0xff] }
 0x3ce   :  { %v3123_v33 = vmax.f32 %v3091_v16, 0.0 }
 0x3cf   :  { %v3470_v20 = vpop.f32.mrf.mxu2  ;;  %v3122_v28 = vmax.f32 %v3090_v22, 0.0 }
 0x3d0   :  { %v3002_v10 = vpop.f32.mrf.mxu0 }
 0x3d1   :  { %v2955_v44 = vpop.f32.mrf.mxu3  ;;  %v3003_v45 = vadd.f32 %v3002_v10, %v9165_v63  ;;  %v3615_v55 = vpop.f32.mrf.mxu1  ;;  %v9504_v7 = vpack.c.bf16 %v3122_v28, %v3120_v49  ;;  %v4117_v63 = vld [vmem:[%s9881_s7 + $0x60] sm:$0xf] }
 0x3d2   :  { %v2956_v51 = vadd.f32 %v2955_v44, %v2907_v54  ;;  %v4171_v8 = vunpack.c.l.b16 %v4117_v63  ;;  %v6630_v63 = vld [vmem:[%s9881_s7 + $0x50] sm:$0xff] }
 0x3d3   :  { %v3052_v53 = vadd.f32 %v3051_v17, %v3003_v45  ;;  %3600 = vmatmul.bf16.gmra.mxu0 %v9452_v23 }
 0x3d4   :  { %v3093_v35 = vadd.f32 %v9187_v1, %v2956_v51  ;;  %3823 = vmatmul.bf16.gmra.mxu2 %v9269_v62  ;;  %6195 = vmatmul.msk.bf16.vlgmr.msra.gmra.mxu1 %vm929_vm2, %v9263_v0  ;;  %v4184_v6 = vpack.c.b16 %v4171_v8, %v4171_v8 }
 0x3d6   :  { %v3125_v60 = vmax.f32 %v3093_v35, 0.0  ;;  %6187 = vmatmul.msk.bf16.vlgmr.msra.gmra.mxu3 %vm929_vm2, %v9263_v0  ;;  %v4222_v56 = vsel %vm954_vm1, %v4184_v6, 0  ;;  %v3092_v0 = vadd.f32 %v9229_v26, %v3052_v53 }
 0x3d7   :  { %v3473_v1 = vpop.f32.mrf.mxu2  ;;  %4276 = vmatpush.bf16.msrb.mxu3 %v4222_v56 }
 0x3d8   :  { %v9516_v40 = vpack.c.bf16 %v3125_v60, %v3123_v33  ;;  %v3004_v48 = vpop.f32.mrf.mxu0  ;;  %v3124_v25 = vmax.f32 %v3092_v0, 0.0 }
 0x3d9   :  { %v3517_v23 = vpop.f32.mrf.mxu3  ;;  %v3005_v12 = vadd.f32 %v3004_v48, %v9185_v34  ;;  %v3617_v46 = vpop.f32.mrf.mxu1  ;;  %v6626_v34 = vld [vmem:[%s9881_s7 + $0x30] sm:$0xff] }
 0x3da   :  { %v9518_v39 = vadd.f32 %v3517_v23, %v3468_v27  ;;  %4225 = vmatpush.bf16.msrb.mxu2 %v6626_v34  ;;  %v6622_v34 = vld [vmem:[%s9881_s7 + $0x10] sm:$0xff] }
 0x3db   :  { %v3054_v18 = vadd.f32 %v3053_v21, %v3005_v12  ;;  %4277 = vmatpush.bf16.msrb.mxu3 %v6631_v15 }
 0x3dd   :  { %v3094_v14 = vadd.f32 %v9229_v26, %v3054_v18 }
 0x3de   :  { %4226 = vmatpush.bf16.msrb.mxu2 %v6625_v61 }
 0x3df   :  { %v3475_v54 = vpop.f32.mrf.mxu2  ;;  %v3126_v24 = vmax.f32 %v3094_v14, 0.0  ;;  %4278 = vmatpush.bf16.msrb.mxu3 %v6630_v63 }
 0x3e0   :  { %v3566_v59 = vpop.f32.mrf.mxu0 }
 0x3e1   :  { %v3519_v41 = vpop.f32.mrf.mxu3  ;;  %v9526_v36 = vadd.f32 %v3615_v55, %v3566_v59  ;;  %v3620_v17 = vpop.f32.mrf.mxu1  ;;  %v9531_v43 = vpack.c.bf16 %v3126_v24, %v3124_v25 }
 0x3e2   :  { %v9524_v42 = vadd.f32 %v3519_v41, %v3470_v20 }
 0x3e3   :  { %3916 = vmatmul.bf16.vlgmr.msra.gmra.mxu0 %v9227_v19 }
 0x3e4   :  { %3828 = vmatmul.bf16.gmra.mxu2 %v9321_v38  ;;  %6196 = vmatmul.msk.bf16.gmra.mxu1 %vm929_vm2, %v9316_v2 }
 0x3e6   :  { %6188 = vmatmul.msk.bf16.gmra.mxu3 %vm929_vm2, %v9316_v2 }
 0x3e7   :  { %v3478_v26 = vpop.f32.mrf.mxu2 }
 0x3e8   :  { %v3568_v3 = vpop.f32.mrf.mxu0 }
 0x3e9   :  { %v3522_v29 = vpop.f32.mrf.mxu3  ;;  %v9541_v27 = vadd.f32 %v3617_v46, %v3568_v3  ;;  %v3622_v37 = vpop.f32.mrf.mxu1  ;;  %v6623_v46 = vld [vmem:[%s9881_s7 + $0x18] sm:$0xff] }
 0x3ea   :  { %v9539_v5 = vadd.f32 %v3522_v29, %v3473_v1 }
 0x3ef   :  { %v3480_v19 = vpop.f32.mrf.mxu2 }
 0x3f0   :  { %v3571_v21 = vpop.f32.mrf.mxu0 }
 0x3f1   :  { %v3524_v11 = vpop.f32.mrf.mxu3  ;;  %v9548_v2 = vadd.f32 %v3620_v17, %v3571_v21  ;;  %v3625_v13 = vpop.f32.mrf.mxu1 }
 0x3f2   :  { %v9546_v30 = vadd.f32 %v3524_v11, %v3475_v54 }
 0x3f3   :  { %3921 = vmatmul.bf16.gmra.mxu0 %v9269_v62 }
 0x3f4   :  { %3833 = vmatmul.bf16.gmra.mxu2 %v9369_v9  ;;  %6197 = vmatmul.msk.bf16.gmra.mxu1 %vm929_vm2, %v9364_v32 }
 0x3f6   :  { %6189 = vmatmul.msk.bf16.gmra.mxu3 %vm929_vm2, %v9364_v32  ;;  %v6624_v32 = vld [vmem:[%s9881_s7 + $0x20] sm:$0xff] }
 0x3f7   :  { %v3483_v22 = vpop.f32.mrf.mxu2  ;;  %4227 = vmatpush.bf16.msrb.mxu2 %v6624_v32  ;;  %v6620_v32 = vld [vmem:[%s9881_s7] sm:$0xff] }
 0x3f8   :  { %v3573_v28 = vpop.f32.mrf.mxu0 }
 0x3f9   :  { %v3527_v20 = vpop.f32.mrf.mxu3  ;;  %v9561_v44 = vadd.f32 %v3622_v37, %v3573_v28  ;;  %v3627_v16 = vpop.f32.mrf.mxu1 }
 0x3fa   :  { %v9559_v49 = vadd.f32 %v3527_v20, %v3478_v26 }
 0x3fb   :  { %4228 = vmatpush.bf16.msrb.mxu2 %v6623_v46 }
 0x3ff   :  { %v3485_v51 = vpop.f32.mrf.mxu2  ;;  %4229 = vmatpush.bf16.msrb.mxu2 %v6622_v34 }
 0x400   :  { %v3576_v62 = vpop.f32.mrf.mxu0 }
 0x401   :  { %v3529_v10 = vpop.f32.mrf.mxu3  ;;  %v9565_v55 = vadd.f32 %v3625_v13, %v3576_v62  ;;  %v3630_v4 = vpop.f32.mrf.mxu1 }
 0x402   :  { %v9563_v45 = vadd.f32 %v3529_v10, %v3480_v19 }
 0x403   :  { %3926 = vmatmul.bf16.gmra.mxu0 %v9321_v38 }
 0x404   :  { %3838 = vmatmul.bf16.gmra.mxu2 %v9422_v57  ;;  %6198 = vmatmul.msk.bf16.gmra.mxu1 %vm929_vm2, %v9417_v50 }
 0x406   :  { %6190 = vmatmul.msk.bf16.gmra.mxu3 %vm929_vm2, %v9417_v50 }
 0x407   :  { %v3488_v35 = vpop.f32.mrf.mxu2 }
 0x408   :  { %v3578_v60 = vpop.f32.mrf.mxu0 }
 0x409   :  { %v3532_v53 = vpop.f32.mrf.mxu3  ;;  %v9581_v8 = vadd.f32 %v3627_v16, %v3578_v60  ;;  %v3632_v1 = vpop.f32.mrf.mxu1 }
 0x40a   :  { %v9576_v33 = vadd.f32 %v3532_v53, %v3483_v22 }
 0x40f   :  { %v9583_v38 = vpop.f32.mrf.mxu2 }
 0x410   :  { %v3581_v50 = vpop.f32.mrf.mxu0 }
 0x411   :  { %v3534_v23 = vpop.f32.mrf.mxu3  ;;  %v9587_v48 = vadd.f32 %v3630_v4, %v3581_v50  ;;  %v3635_v12 = vpop.f32.mrf.mxu1 }
 0x412   :  { %v9585_v6 = vadd.f32 %v3534_v23, %v3485_v51  ;;  %v6628_v51 = vld [vmem:[%s9881_s7 + $0x40] sm:$0xff] }
 0x413   :  { %3931 = vmatmul.bf16.gmra.mxu0 %v9369_v9 }
 0x414   :  { %3843 = vmatmul.bf16.gmra.mxu2 %v9468_v47  ;;  %6199 = vmatmul.msk.bf16.gmra.mxu1 %vm929_vm2, %v9463_v31 }
 0x416   :  { %6191 = vmatmul.msk.bf16.gmra.mxu3 %vm929_vm2, %v9463_v31  ;;  %v6629_v31 = vld [vmem:[%s9881_s7 + $0x48] sm:$0xff] }
 0x417   :  { %v3493_v56 = vpop.f32.mrf.mxu2  ;;  %4279 = vmatpush.bf16.msrb.mxu3 %v6629_v31 }
 0x418   :  { %v3583_v14 = vpop.f32.mrf.mxu0 }
 0x419   :  { %v3537_v0 = vpop.f32.mrf.mxu3  ;;  %v9600_v54 = vadd.f32 %v3632_v1, %v3583_v14  ;;  %v9602_v25 = vpop.f32.mrf.mxu1  ;;  %v6203_v14 = vld [vmem:[%s9880_s6 + $0x6] sm:$0x3] }
 0x41a   :  { %v9598_v18 = vadd.f32 %v3537_v0, %v3488_v35  ;;  %v9683_v34 = vperm.slane %v6203_v14, 0 }
 0x41b   :  { %4280 = vmatpush.bf16.msrb.mxu3 %v6628_v51 }
 0x41f   :  { %v9604_v24 = vpop.f32.mrf.mxu2 }
 0x420   :  { %v3586_v9 = vpop.f32.mrf.mxu0 }
 0x421   :  { %v9606_v41 = vpop.f32.mrf.mxu3  ;;  %v9608_v59 = vadd.f32 %v3635_v12, %v3586_v9  ;;  %v3640_v17 = vpop.f32.mrf.mxu1 }
 0x423   :  { %3936 = vmatmul.bf16.gmra.mxu0 %v9422_v57 }
 0x424   :  { %3848 = vmatmul.bf16.gmra.mxu2 %v9494_v52  ;;  %6200 = vmatmul.msk.bf16.gmra.mxu1 %vm929_vm2, %v9489_v58 }
 0x426   :  { %6192 = vmatmul.msk.bf16.gmra.mxu3 %vm929_vm2, %v9489_v58  ;;  %v6621_v58 = vld [vmem:[%s9881_s7 + $0x8] sm:$0xff] }
 0x427   :  { %v3498_v26 = vpop.f32.mrf.mxu2  ;;  %4230 = vmatpush.bf16.msrb.mxu2 %v6621_v58 }
 0x428   :  { %v9624_v37 = vpop.f32.mrf.mxu0 }
 0x429   :  { %v3542_v29 = vpop.f32.mrf.mxu3  ;;  %v9626_v15 = vpop.f32.mrf.mxu1 }
 0x42a   :  { %v9622_v3 = vadd.f32 %v3542_v29, %v3493_v56 }
 0x42b   :  { %4231 = vmatpush.bf16.msrb.mxu2 %v6620_v32 }
 0x42f   :  { %v9628_v19 = vpop.f32.mrf.mxu2 }
 0x430   :  { %v3591_v57 = vpop.f32.mrf.mxu0 }
 0x431   :  { %v9630_v11 = vpop.f32.mrf.mxu3  ;;  %v9632_v21 = vadd.f32 %v3640_v17, %v3591_v57  ;;  %v3645_v13 = vpop.f32.mrf.mxu1 }
 0x433   :  { %3941 = vmatmul.bf16.gmra.mxu0 %v9468_v47 }
 0x434   :  { %3853 = vmatmul.bf16.gmra.mxu2 %v9516_v40  ;;  %6201 = vmatmul.msk.bf16.gmra.mxu1 %vm929_vm2, %v9504_v7 }
 0x436   :  { %6193 = vmatmul.msk.bf16.gmra.mxu3 %vm929_vm2, %v9504_v7 }
 0x437   :  { %v3503_v61 = vpop.f32.mrf.mxu2 }
 0x438   :  { %v9645_v28 = vpop.f32.mrf.mxu0 }
 0x439   :  { %v3547_v22 = vpop.f32.mrf.mxu3  ;;  %v9647_v16 = vpop.f32.mrf.mxu1 }
 0x43a   :  { %v9643_v20 = vadd.f32 %v3547_v22, %v3498_v26 }
 0x43f   :  { %v9652_v47 = vpop.f32.mrf.mxu2 }
 0x440   :  { %v3596_v62 = vpop.f32.mrf.mxu0 }
 0x441   :  { %v9654_v10 = vpop.f32.mrf.mxu3  ;;  %v9656_v7 = vadd.f32 %v3645_v13, %v3596_v62  ;;  %v3650_v4 = vpop.f32.mrf.mxu1 }
 0x443   :  { %3946 = vmatmul.bf16.gmra.mxu0 %v9494_v52 }
 0x444   :  { %6202 = vmatmul.msk.bf16.gmra.mxu1 %vm929_vm2, %v9531_v43 }
 0x446   :  { %6194 = vmatmul.msk.bf16.gmra.mxu3 %vm929_vm2, %v9531_v43 }
 0x447   :  { %v3819_v35 = vpop.f32.mrf.mxu2 }
 0x448   :  { %v9668_v63 = vpop.f32.mrf.mxu0  ;;  %v3820_v17 = vadd.f32 %v3819_v35, %v9518_v39 }
 0x449   :  { %v3552_v53 = vpop.f32.mrf.mxu3  ;;  %v9670_v1 = vpop.f32.mrf.mxu1 }
 0x44a   :  { %v9666_v60 = vadd.f32 %v3552_v53, %v3503_v61  ;;  %v9689_v53 = vperm.slane %v6203_v14, 1 }
 0x44f   :  { %v3821_v52 = vpop.f32.mrf.mxu2 }
 0x450   :  { %v3601_v50 = vpop.f32.mrf.mxu0  ;;  %v3822_v26 = vadd.f32 %v3821_v52, %v9524_v42 }
 0x451   :  { %v9672_v23 = vpop.f32.mrf.mxu3  ;;  %v9674_v12 = vadd.f32 %v3650_v4, %v3601_v50  ;;  %v3966_v46 = vpop.f32.mrf.mxu1 }
 0x453   :  { %3951 = vmatmul.bf16.gmra.mxu0 %v9516_v40 }
 0x457   :  { %v3824_v56 = vpop.f32.mrf.mxu2 }
 0x458   :  { %v9677_v0 = vpop.f32.mrf.mxu0 }
 0x459   :  { %v3868_v43 = vpop.f32.mrf.mxu3  ;;  %v3968_v9 = vpop.f32.mrf.mxu1 }
 0x45a   :  { %v3869_v31 = vadd.f32 %v3868_v43, %v3820_v17  ;;  %v3825_v17 = vadd.f32 %v3824_v56, %v9539_v5 }
 0x45c   :  { %v4013_v40 = vadd.f32 %v9683_v34, %v3869_v31 }
 0x45e   :  { %v4045_v62 = vmax.f32 %v4013_v40, 0.0 }
 0x45f   :  { %v3826_v29 = vpop.f32.mrf.mxu2 }
 0x460   :  { %v3917_v58 = vpop.f32.mrf.mxu0  ;;  %v3827_v40 = vadd.f32 %v3826_v29, %v9546_v30 }
 0x461   :  { %v3870_v57 = vpop.f32.mrf.mxu3  ;;  %v3971_v61 = vpop.f32.mrf.mxu1  ;;  %v3918_v51 = vadd.f32 %v3917_v58, %v9526_v36 }
 0x462   :  { %v3871_v13 = vadd.f32 %v3870_v57, %v3822_v26 }
 0x463   :  { %v3967_v35 = vadd.f32 %v3966_v46, %v3918_v51 }
 0x464   :  { %v4015_v22 = vadd.f32 %v9683_v34, %v3871_v13 }
 0x465   :  { %v4014_v31 = vadd.f32 %v9689_v53, %v3967_v35 }
 0x466   :  { %v4047_v4 = vmax.f32 %v4015_v22, 0.0  ;;  %v4358_v22 = vld [vmem:[%s9883_s9 + $0x30] sm:$0x3] }
 0x467   :  { %v3829_v39 = vpop.f32.mrf.mxu2  ;;  %v4046_v46 = vmax.f32 %v4014_v31, 0.0  ;;  %v4388_v56 = vunpack.c.l.b16 %v4358_v22 }
 0x468   :  { %v4077_v32 = vpack.c.bf16 %v4047_v4, %v4045_v62  ;;  %v3919_v42 = vpop.f32.mrf.mxu0 }
 0x469   :  { %v3873_v50 = vpop.f32.mrf.mxu3  ;;  %v3920_v52 = vadd.f32 %v3919_v42, %v9541_v27  ;;  %v3973_v43 = vpop.f32.mrf.mxu1 }
 0x46a   :  { %4232 = vmatmul.bf16.vlgmr.msrb.gmra.mxu2 %v4077_v32  ;;  %v3874_v57 = vadd.f32 %v3873_v50, %v3825_v17  ;;  %v4395_v32 = vpack.c.b16 %v4388_v56, %v4388_v56 }
 0x46b   :  { %v3969_v26 = vadd.f32 %v3968_v9, %v3920_v52 }
 0x46c   :  { %v4017_v27 = vadd.f32 %v9683_v34, %v3874_v57  ;;  %v4429_v50 = vsel %vm4427_vm3, %v4395_v32, 0 }
 0x46d   :  { %v4016_v36 = vadd.f32 %v9689_v53, %v3969_v26  ;;  %4432 = vmatpush.bf16.msrb.mxu0 %v4429_v50  ;;  %6652 = vmatpush.bf16.msra.mxu2 %v4429_v50 }
 0x46e   :  { %v4049_v29 = vmax.f32 %v4017_v27, 0.0 }
 0x46f   :  { %v3831_v13 = vpop.f32.mrf.mxu2  ;;  %v4048_v14 = vmax.f32 %v4016_v36, 0.0 }
 0x470   :  { %v3922_v5 = vpop.f32.mrf.mxu0  ;;  %v3832_v22 = vadd.f32 %v3831_v13, %v9563_v45  ;;  %v6637_v45 = vld [vmem:[%s9883_s9 + $0x28] sm:$0xff] }
 0x471   :  { %v3875_v58 = vpop.f32.mrf.mxu3  ;;  %v4078_v62 = vpack.c.bf16 %v4048_v14, %v4046_v46  ;;  %v3976_v9 = vpop.f32.mrf.mxu1  ;;  %v3923_v30 = vadd.f32 %v3922_v5, %v9548_v2  ;;  %4433 = vmatpush.bf16.msrb.mxu0 %v6637_v45  ;;  %6653 = vmatpush.bf16.msra.mxu2 %v6637_v45 }
 0x472   :  { %v3876_v51 = vadd.f32 %v3875_v58, %v3827_v40  ;;  %v3830_v40 = vadd.f32 %v3829_v39, %v9559_v49 }
 0x473   :  { %6252 = vmatmul.msk.bf16.vlgmr.msrb.gmra.mxu3 %vm929_vm2, %v4078_v62  ;;  %v3972_v17 = vadd.f32 %v3971_v61, %v3923_v30 }
 0x474   :  { %v4019_v4 = vadd.f32 %v9683_v34, %v3876_v51 }
 0x475   :  { %v4018_v2 = vadd.f32 %v9689_v53, %v3972_v17 }
 0x476   :  { %v4051_v35 = vmax.f32 %v4019_v4, 0.0 }
 0x477   :  { %v3834_v42 = vpop.f32.mrf.mxu2  ;;  %v4050_v51 = vmax.f32 %v4018_v2, 0.0 }
 0x478   :  { %v4079_v52 = vpack.c.bf16 %v4051_v35, %v4049_v29  ;;  %v3924_v26 = vpop.f32.mrf.mxu0 }
 0x479   :  { %v3878_v31 = vpop.f32.mrf.mxu3  ;;  %v3925_v57 = vadd.f32 %v3924_v26, %v9561_v44  ;;  %v3978_v36 = vpop.f32.mrf.mxu1 }
 0x47a   :  { %4237 = vmatmul.bf16.gmra.mxu2 %v4079_v52  ;;  %v3879_v14 = vadd.f32 %v3878_v31, %v3830_v40 }
 0x47b   :  { %v3974_v46 = vadd.f32 %v3973_v43, %v3925_v57 }
 0x47c   :  { %v4021_v56 = vadd.f32 %v9683_v34, %v3879_v14 }
 0x47d   :  { %v4020_v58 = vadd.f32 %v9689_v53, %v3974_v46 }
 0x47e   :  { %v4053_v43 = vmax.f32 %v4021_v56, 0.0 }
 0x47f   :  { %v3836_v27 = vpop.f32.mrf.mxu2  ;;  %v4052_v5 = vmax.f32 %v4020_v58, 0.0 }
 0x480   :  { %v3927_v4 = vpop.f32.mrf.mxu0  ;;  %v3837_v46 = vadd.f32 %v3836_v27, %v9585_v6 }
 0x481   :  { %v3880_v61 = vpop.f32.mrf.mxu3  ;;  %v3981_v44 = vpop.f32.mrf.mxu1  ;;  %v4080_v32 = vpack.c.bf16 %v4052_v5, %v4050_v51  ;;  %v3928_v39 = vadd.f32 %v3927_v4, %v9565_v55  ;;  %v3835_v55 = vadd.f32 %v3834_v42, %v9576_v33 }
 0x482   :  { %v3881_v62 = vadd.f32 %v3880_v61, %v3832_v22 }
 0x483   :  { %6253 = vmatmul.msk.bf16.gmra.mxu3 %vm929_vm2, %v4080_v32  ;;  %v3977_v35 = vadd.f32 %v3976_v9, %v3928_v39  ;;  %v6636_v32 = vld [vmem:[%s9883_s9 + $0x20] sm:$0xff] }
 0x484   :  { %v4023_v49 = vadd.f32 %v9683_v34, %v3881_v62  ;;  %4434 = vmatpush.bf16.msrb.mxu0 %v6636_v32  ;;  %6654 = vmatpush.bf16.msra.mxu2 %v6636_v32 }
 0x485   :  { %v4022_v26 = vadd.f32 %v9689_v53, %v3977_v35 }
 0x486   :  { %v4055_v30 = vmax.f32 %v4023_v49, 0.0 }
 0x487   :  { %v3839_v13 = vpop.f32.mrf.mxu2  ;;  %v4054_v14 = vmax.f32 %v4022_v26, 0.0 }
 0x488   :  { %v4081_v29 = vpack.c.bf16 %v4055_v30, %v4053_v43  ;;  %v3929_v52 = vpop.f32.mrf.mxu0 }
 0x489   :  { %v3883_v50 = vpop.f32.mrf.mxu3  ;;  %v3930_v17 = vadd.f32 %v3929_v52, %v9581_v8  ;;  %v3983_v31 = vpop.f32.mrf.mxu1 }
 0x48a   :  { %4242 = vmatmul.bf16.gmra.mxu2 %v4081_v29  ;;  %v3884_v40 = vadd.f32 %v3883_v50, %v3835_v55 }
 0x48b   :  { %v3979_v57 = vadd.f32 %v3978_v36, %v3930_v17 }
 0x48c   :  { %v4025_v51 = vadd.f32 %v9683_v34, %v3884_v40 }
 0x48d   :  { %v4024_v2 = vadd.f32 %v9689_v53, %v3979_v57 }
 0x48e   :  { %v4057_v36 = vmax.f32 %v4025_v51, 0.0 }
 0x48f   :  { %v4056_v58 = vmax.f32 %v4024_v2, 0.0  ;;  %v3841_v22 = vpop.f32.mrf.mxu2 }
 0x490   :  { %v3932_v61 = vpop.f32.mrf.mxu0 }
 0x491   :  { %v3885_v9 = vpop.f32.mrf.mxu3  ;;  %v4082_v8 = vpack.c.bf16 %v4056_v58, %v4054_v14  ;;  %v3933_v42 = vadd.f32 %v3932_v61, %v9587_v48  ;;  %v3986_v62 = vpop.f32.mrf.mxu1  ;;  %v3840_v48 = vadd.f32 %v3839_v13, %v9598_v18  ;;  %v3638_v14 = vadd.f32 %v9602_v25, %v9624_v37 }
 0x492   :  { %v3886_v5 = vadd.f32 %v3885_v9, %v3837_v46  ;;  %v6635_v9 = vld [vmem:[%s9883_s9 + $0x18] sm:$0xff]  ;;  %v3545_v25 = vadd.f32 %v9630_v11, %v9604_v24 }
 0x493   :  { %6254 = vmatmul.msk.bf16.gmra.mxu3 %vm929_vm2, %v4082_v8  ;;  %v3982_v6 = vadd.f32 %v3981_v44, %v3933_v42  ;;  %v3540_v44 = vadd.f32 %v9606_v41, %v9583_v38  ;;  %4435 = vmatpush.bf16.msrb.mxu0 %v6635_v9 }
 0x494   :  { %v4027_v33 = vadd.f32 %v9683_v34, %v3886_v5  ;;  %6655 = vmatpush.bf16.msra.mxu2 %v6635_v9 }
 0x495   :  { %v4026_v30 = vadd.f32 %v9689_v53, %v3982_v6  ;;  %v3842_v50 = vadd.f32 %v3841_v22, %v3540_v44 }
 0x496   :  { %v4059_v56 = vmax.f32 %v4027_v33, 0.0 }
 0x497   :  { %v3844_v39 = vpop.f32.mrf.mxu2  ;;  %v4058_v17 = vmax.f32 %v4026_v30, 0.0 }
 0x498   :  { %v4083_v4 = vpack.c.bf16 %v4059_v56, %v4057_v36  ;;  %v3934_v49 = vpop.f32.mrf.mxu0 }
 0x499   :  { %v3888_v27 = vpop.f32.mrf.mxu3  ;;  %v3935_v43 = vadd.f32 %v3934_v49, %v9600_v54  ;;  %v3988_v52 = vpop.f32.mrf.mxu1 }
 0x49a   :  { %4247 = vmatmul.bf16.gmra.mxu2 %v4083_v4  ;;  %v3889_v29 = vadd.f32 %v3888_v27, %v3840_v48 }
 0x49b   :  { %v3984_v45 = vadd.f32 %v3983_v31, %v3935_v43 }
 0x49c   :  { %v4029_v54 = vadd.f32 %v9683_v34, %v3889_v29 }
 0x49d   :  { %v4028_v35 = vadd.f32 %v9689_v53, %v3984_v45  ;;  %v3643_v45 = vadd.f32 %v9626_v15, %v9645_v28  ;;  %v3550_v15 = vadd.f32 %v9654_v10, %v9628_v19  ;;  %v6633_v19 = vld [vmem:[%s9883_s9 + $0x8] sm:$0xff] }
 0x49e   :  { %v4061_v38 = vmax.f32 %v4029_v54, 0.0 }
 0x49f   :  { %v4060_v55 = vmax.f32 %v4028_v35, 0.0  ;;  %v3846_v13 = vpop.f32.mrf.mxu2 }
 0x4a0   :  { %v3937_v40 = vpop.f32.mrf.mxu0  ;;  %v3847_v56 = vadd.f32 %v3846_v13, %v3545_v25 }
 0x4a1   :  { %v3890_v26 = vpop.f32.mrf.mxu3  ;;  %v4084_v2 = vpack.c.bf16 %v4060_v55, %v4058_v17  ;;  %v3938_v31 = vadd.f32 %v3937_v40, %v9608_v59  ;;  %v3991_v51 = vpop.f32.mrf.mxu1  ;;  %v3845_v59 = vadd.f32 %v3844_v39, %v9622_v3 }
 0x4a2   :  { %v3891_v57 = vadd.f32 %v3890_v26, %v3842_v50  ;;  %v6634_v50 = vld [vmem:[%s9883_s9 + $0x10] sm:$0xff] }
 0x4a3   :  { %6255 = vmatmul.msk.bf16.gmra.mxu3 %vm929_vm2, %v4084_v2  ;;  %v3987_v58 = vadd.f32 %v3986_v62, %v3938_v31  ;;  %4436 = vmatpush.bf16.msrb.mxu0 %v6634_v50 }
 0x4a4   :  { %v4031_v18 = vadd.f32 %v9683_v34, %v3891_v57  ;;  %6656 = vmatpush.bf16.msra.mxu2 %v6634_v50 }
 0x4a5   :  { %v4030_v8 = vadd.f32 %v9689_v53, %v3987_v58 }
 0x4a6   :  { %v4063_v41 = vmax.f32 %v4031_v18, 0.0 }
 0x4a7   :  { %v3849_v42 = vpop.f32.mrf.mxu2  ;;  %v4062_v62 = vmax.f32 %v4030_v8, 0.0  ;;  %4437 = vmatpush.bf16.msrb.mxu0 %v6633_v19 }
 0x4a8   :  { %v4085_v46 = vpack.c.bf16 %v4063_v41, %v4061_v38  ;;  %v3939_v5 = vpop.f32.mrf.mxu0  ;;  %6657 = vmatpush.bf16.msra.mxu2 %v6633_v19  ;;  %v6643_v19 = vld [vmem:[%s9885_s11 + $0x28] sm:$0xff] }
 0x4a9   :  { %v3893_v22 = vpop.f32.mrf.mxu3  ;;  %v3940_v61 = vadd.f32 %v3939_v5, %v3638_v14  ;;  %v3993_v3 = vpop.f32.mrf.mxu1  ;;  %v3648_v5 = vadd.f32 %v9647_v16, %v9668_v63 }
 0x4aa   :  { %4252 = vmatmul.bf16.gmra.mxu2 %v4085_v46  ;;  %v3894_v37 = vadd.f32 %v3893_v22, %v3845_v59 }
 0x4ab   :  { %v3989_v33 = vadd.f32 %v3988_v52, %v3940_v61 }
 0x4ac   :  { %v4033_v27 = vadd.f32 %v9683_v34, %v3894_v37 }
 0x4ad   :  { %v4032_v36 = vadd.f32 %v9689_v53, %v3989_v33 }
 0x4ae   :  { %v4065_v24 = vmax.f32 %v4033_v27, 0.0 }
 0x4af   :  { %v4064_v4 = vmax.f32 %v4032_v36, 0.0  ;;  %v3851_v44 = vpop.f32.mrf.mxu2  ;;  %v3555_v36 = vadd.f32 %v9672_v23, %v9652_v47 }
 0x4b0   :  { %v3942_v49 = vpop.f32.mrf.mxu0  ;;  %v3852_v40 = vadd.f32 %v3851_v44, %v3550_v15  ;;  %v6632_v44 = vld [vmem:[%s9883_s9] sm:$0xff] }
 0x4b1   :  { %v3895_v6 = vpop.f32.mrf.mxu3  ;;  %v4086_v43 = vpack.c.bf16 %v4064_v4, %v4062_v62  ;;  %v3943_v48 = vadd.f32 %v3942_v49, %v9632_v21  ;;  %v3850_v21 = vadd.f32 %v3849_v42, %v9643_v20  ;;  %v3996_v28 = vpop.f32.mrf.mxu1  ;;  %4438 = vmatpush.bf16.msrb.mxu0 %v6632_v44  ;;  %6658 = vmatpush.bf16.msra.mxu2 %v6632_v44 }
 0x4b2   :  { %v3896_v32 = vadd.f32 %v3895_v6, %v3847_v56 }
 0x4b3   :  { %6256 = vmatmul.msk.bf16.gmra.mxu3 %vm929_vm2, %v4086_v43  ;;  %v3992_v29 = vadd.f32 %v3991_v51, %v3943_v48 }
 0x4b4   :  { %v4035_v39 = vadd.f32 %v9683_v34, %v3896_v32 }
 0x4b5   :  { %v4034_v55 = vadd.f32 %v9689_v53, %v3992_v29 }
 0x4b6   :  { %v4067_v11 = vmax.f32 %v4035_v39, 0.0 }
 0x4b7   :  { %v4066_v2 = vmax.f32 %v4034_v55, 0.0  ;;  %v3854_v46 = vpop.f32.mrf.mxu2  ;;  %v9791_v55 = vld [vmem:[%s9882_s8] ss:$0 sm:$0xff] }
 0x4b8   :  { %v4087_v30 = vpack.c.bf16 %v4067_v11, %v4065_v24  ;;  %v3944_v52 = vpop.f32.mrf.mxu0  ;;  %v3855_v33 = vadd.f32 %v3854_v46, %v9666_v60  ;;  %v3653_v24 = vadd.f32 %v9670_v1, %v9677_v0 }
 0x4b9   :  { %v3898_v35 = vpop.f32.mrf.mxu3  ;;  %v3945_v17 = vadd.f32 %v3944_v52, %v3643_v45  ;;  %v3998_v9 = vpop.f32.mrf.mxu1 }
 0x4ba   :  { %4257 = vmatmul.bf16.gmra.mxu2 %v4087_v30  ;;  %v3899_v54 = vadd.f32 %v3898_v35, %v3850_v21 }
 0x4bb   :  { %v3994_v26 = vadd.f32 %v3993_v3, %v3945_v17 }
 0x4bc   :  { %v4037_v31 = vadd.f32 %v9683_v34, %v3899_v54 }
 0x4bd   :  { %v4036_v57 = vadd.f32 %v9689_v53, %v3994_v26  ;;  %v4516_v26 = vld [vmem:[%s9885_s11 + $0x30] sm:$0x3] }
 0x4be   :  { %v4069_v10 = vmax.f32 %v4037_v31, 0.0  ;;  %v4546_v15 = vunpack.c.l.b16 %v4516_v26 }
 0x4bf   :  { %v4068_v18 = vmax.f32 %v4036_v57, 0.0  ;;  %v3856_v25 = vpop.f32.mrf.mxu2 }
 0x4c0   :  { %v3947_v41 = vpop.f32.mrf.mxu0  ;;  %v3857_v4 = vadd.f32 %v3856_v25, %v3555_v36  ;;  %v4553_v54 = vpack.c.b16 %v4546_v15, %v4546_v15 }
 0x4c1   :  { %v3900_v13 = vpop.f32.mrf.mxu3  ;;  %v4088_v20 = vpack.c.bf16 %v4068_v18, %v4066_v2  ;;  %v3948_v58 = vadd.f32 %v3947_v41, %v9656_v7  ;;  %v4001_v27 = vpop.f32.mrf.mxu1 }
 0x4c2   :  { %v3901_v38 = vadd.f32 %v3900_v13, %v3852_v40  ;;  %v4585_v18 = vsel %vm4427_vm3, %v4553_v54, 0 }
 0x4c3   :  { %6257 = vmatmul.msk.bf16.gmra.mxu3 %vm929_vm2, %v4088_v20  ;;  %v3997_v61 = vadd.f32 %v3996_v28, %v3948_v58  ;;  %4588 = vmatpush.bf16.msrb.mxu1 %v4585_v18 }
 0x4c4   :  { %v4039_v14 = vadd.f32 %v9683_v34, %v3901_v38 }
 0x4c5   :  { %v4038_v37 = vadd.f32 %v9689_v53, %v3997_v61 }
 0x4c6   :  { %v4071_v22 = vmax.f32 %v4039_v14, 0.0 }
 0x4c7   :  { %v4070_v6 = vmax.f32 %v4038_v37, 0.0  ;;  %4589 = vmatpush.bf16.msrb.mxu1 %v6643_v19  ;;  %v6642_v37 = vld [vmem:[%s9885_s11 + $0x20] sm:$0xff] }
 0x4c8   :  { %v4089_v51 = vpack.c.bf16 %v4071_v22, %v4069_v10  ;;  %v3949_v8 = vpop.f32.mrf.mxu0 }
 0x4c9   :  { %v3903_v59 = vpop.f32.mrf.mxu3  ;;  %v3950_v7 = vadd.f32 %v3949_v8, %v3648_v5  ;;  %v4003_v29 = vpop.f32.mrf.mxu1 }
 0x4ca   :  { %4262 = vmatmul.bf16.gmra.mxu2 %v4089_v51  ;;  %v3904_v56 = vadd.f32 %v3903_v59, %v3855_v33 }
 0x4cb   :  { %v3999_v42 = vadd.f32 %v3998_v9, %v3950_v7  ;;  %4590 = vmatpush.bf16.msrb.mxu1 %v6642_v37 }
 0x4cc   :  { %v4041_v32 = vadd.f32 %v9683_v34, %v3904_v56 }
 0x4cd   :  { %v4040_v62 = vadd.f32 %v9689_v53, %v3999_v42 }
 0x4ce   :  { %v4073_v47 = vmax.f32 %v4041_v32, 0.0 }
 0x4cf   :  { %v4072_v16 = vmax.f32 %v4040_v62, 0.0 }
 0x4d0   :  { %v3952_v43 = vpop.f32.mrf.mxu0 }
 0x4d1   :  { %v3905_v63 = vpop.f32.mrf.mxu3  ;;  %v4090_v60 = vpack.c.bf16 %v4072_v16, %v4070_v6  ;;  %v3953_v39 = vadd.f32 %v3952_v43, %v9674_v12 }
 0x4d2   :  { %v3906_v49 = vadd.f32 %v3905_v63, %v3857_v4 }
 0x4d3   :  { %6258 = vmatmul.msk.bf16.gmra.mxu3 %vm929_vm2, %v4090_v60  ;;  %v4002_v11 = vadd.f32 %v4001_v27, %v3953_v39 }
 0x4d4   :  { %v4043_v3 = vadd.f32 %v9683_v34, %v3906_v49 }
 0x4d5   :  { %v4042_v34 = vadd.f32 %v9689_v53, %v4002_v11  ;;  %v6641_v11 = vld [vmem:[%s9885_s11 + $0x18] sm:$0xff] }
 0x4d6   :  { %v4075_v23 = vmax.f32 %v4043_v3, 0.0  ;;  %4591 = vmatpush.bf16.msrb.mxu1 %v6641_v11 }
 0x4d7   :  { %v4074_v50 = vmax.f32 %v4042_v34, 0.0 }
 0x4d8   :  { %v4091_v48 = vpack.c.bf16 %v4075_v23, %v4073_v47  ;;  %v3954_v30 = vpop.f32.mrf.mxu0 }
 0x4d9   :  { %v3955_v45 = vadd.f32 %v3954_v30, %v3653_v24 }
 0x4da   :  { %4267 = vmatmul.bf16.gmra.mxu2 %v4091_v48 }
 0x4db   :  { %v4004_v12 = vadd.f32 %v4003_v29, %v3955_v45 }
 0x4dd   :  { %v4044_v35 = vadd.f32 %v9689_v53, %v4004_v12 }
 0x4df   :  { %v4076_v52 = vmax.f32 %v4044_v35, 0.0 }
 0x4e1   :  { %v4092_v17 = vpack.c.bf16 %v4076_v52, %v4074_v50 }
 0x4e3   :  { %6259 = vmatmul.msk.bf16.gmra.mxu3 %vm929_vm2, %v4092_v17 }
 0x4ed   :  { %v4233_v1 = vpop.f32.mrf.mxu2 }
 0x4ee   :  { %v4234_v53 = vadd.f32 %v9791_v55, %v4233_v1 }
 0x4f5   :  { %v4235_v0 = vpop.f32.mrf.mxu2 }
 0x4f6   :  { %v4282_v21 = vpop.f32.mrf.mxu3  ;;  %v4236_v57 = vadd.f32 %v9791_v55, %v4235_v0  ;;  %v6640_v0 = vld [vmem:[%s9885_s11 + $0x10] sm:$0xff] }
 0x4f7   :  { %v4283_v40 = vadd.f32 %v4282_v21, %v4234_v53  ;;  %4592 = vmatpush.bf16.msrb.mxu1 %v6640_v0 }
 0x4f9   :  { %v4322_v31 = vmax.f32 %v4283_v40, 0.0 }
 0x4fd   :  { %v4238_v28 = vpop.f32.mrf.mxu2 }
 0x4fe   :  { %v4284_v2 = vpop.f32.mrf.mxu3  ;;  %v4239_v14 = vadd.f32 %v9791_v55, %v4238_v28 }
 0x4ff   :  { %v4285_v13 = vadd.f32 %v4284_v2, %v4236_v57 }
 0x501   :  { %v4323_v38 = vmax.f32 %v4285_v13, 0.0  ;;  %v6639_v13 = vld [vmem:[%s9885_s11 + $0x8] sm:$0xff] }
 0x502   :  { %4593 = vmatpush.bf16.msrb.mxu1 %v6639_v13 }
 0x503   :  { %v4338_v41 = vpack.c.bf16 %v4323_v38, %v4322_v31 }
 0x505   :  { %v4240_v46 = vpop.f32.mrf.mxu2  ;;  %6284 = vmatmul.msk.bf16.vlgmr.msrb.gmra.mxu0 %vm4402_vm4, %v4338_v41 }
 0x506   :  { %v4287_v20 = vpop.f32.mrf.mxu3  ;;  %v4241_v10 = vadd.f32 %v9791_v55, %v4240_v46 }
 0x507   :  { %v4288_v22 = vadd.f32 %v4287_v20, %v4239_v14 }
 0x509   :  { %v4324_v5 = vmax.f32 %v4288_v22, 0.0 }
 0x50d   :  { %v4243_v58 = vpop.f32.mrf.mxu2 }
 0x50e   :  { %v4289_v9 = vpop.f32.mrf.mxu3  ;;  %v4244_v33 = vadd.f32 %v9791_v55, %v4243_v58 }
 0x50f   :  { %v4290_v51 = vadd.f32 %v4289_v9, %v4241_v10 }
 0x511   :  { %v4325_v61 = vmax.f32 %v4290_v51, 0.0  ;;  %v6638_v51 = vld [vmem:[%s9885_s11] sm:$0xff] }
 0x512   :  { %4594 = vmatpush.bf16.msrb.mxu1 %v6638_v51 }
 0x513   :  { %v4339_v59 = vpack.c.bf16 %v4325_v61, %v4324_v5 }
 0x515   :  { %v4245_v8 = vpop.f32.mrf.mxu2  ;;  %6285 = vmatmul.msk.bf16.gmra.mxu0 %vm4402_vm4, %v4339_v59 }
 0x516   :  { %v4292_v7 = vpop.f32.mrf.mxu3  ;;  %v4246_v42 = vadd.f32 %v9791_v55, %v4245_v8 }
 0x517   :  { %v4293_v36 = vadd.f32 %v4292_v7, %v4244_v33 }
 0x519   :  { %v4326_v4 = vmax.f32 %v4293_v36, 0.0 }
 0x51d   :  { %v4248_v25 = vpop.f32.mrf.mxu2 }
 0x51e   :  { %v4294_v56 = vpop.f32.mrf.mxu3  ;;  %v4249_v32 = vadd.f32 %v9791_v55, %v4248_v25 }
 0x51f   :  { %v4295_v62 = vadd.f32 %v4294_v56, %v4246_v42 }
 0x521   :  { %v4327_v6 = vmax.f32 %v4295_v62, 0.0  ;;  %v6663_v62 = vld [vmem:[%s9884_s10] ss:$0 sm:$0xff] }
 0x523   :  { %v4340_v16 = vpack.c.bf16 %v4327_v6, %v4326_v4 }
 0x525   :  { %v4250_v63 = vpop.f32.mrf.mxu2  ;;  %6286 = vmatmul.msk.bf16.gmra.mxu0 %vm4402_vm4, %v4340_v16 }
 0x526   :  { %v4297_v27 = vpop.f32.mrf.mxu3  ;;  %v4251_v43 = vadd.f32 %v9791_v55, %v4250_v63 }
 0x527   :  { %v4298_v60 = vadd.f32 %v4297_v27, %v4249_v32 }
 0x529   :  { %v4328_v47 = vmax.f32 %v4298_v60, 0.0 }
 0x52d   :  { %v4253_v49 = vpop.f32.mrf.mxu2 }
 0x52e   :  { %v4299_v3 = vpop.f32.mrf.mxu3  ;;  %v4254_v45 = vadd.f32 %v9791_v55, %v4253_v49 }
 0x52f   :  { %v4300_v39 = vadd.f32 %v4299_v3, %v4251_v43 }
 0x531   :  { %v4329_v23 = vmax.f32 %v4300_v39, 0.0 }
 0x533   :  { %v4341_v48 = vpack.c.bf16 %v4329_v23, %v4328_v47 }
 0x535   :  { %v4255_v24 = vpop.f32.mrf.mxu2  ;;  %6287 = vmatmul.msk.bf16.gmra.mxu0 %vm4402_vm4, %v4341_v48 }
 0x536   :  { %v4302_v30 = vpop.f32.mrf.mxu3  ;;  %v4256_v29 = vadd.f32 %v9791_v55, %v4255_v24 }
 0x537   :  { %v4303_v34 = vadd.f32 %v4302_v30, %v4254_v45 }
 0x539   :  { %v4330_v50 = vmax.f32 %v4303_v34, 0.0 }
 0x53d   :  { %v4258_v44 = vpop.f32.mrf.mxu2 }
 0x53e   :  { %v4304_v12 = vpop.f32.mrf.mxu3  ;;  %v4259_v26 = vadd.f32 %v9791_v55, %v4258_v44 }
 0x53f   :  { %v4305_v35 = vadd.f32 %v4304_v12, %v4256_v29 }
 0x541   :  { %v4331_v52 = vmax.f32 %v4305_v35, 0.0 }
 0x543   :  { %v4342_v17 = vpack.c.bf16 %v4331_v52, %v4330_v50 }
 0x545   :  { %v4260_v1 = vpop.f32.mrf.mxu2  ;;  %6288 = vmatmul.msk.bf16.gmra.mxu0 %vm4402_vm4, %v4342_v17 }
 0x546   :  { %v4307_v21 = vpop.f32.mrf.mxu3  ;;  %v4261_v53 = vadd.f32 %v9791_v55, %v4260_v1 }
 0x547   :  { %v4308_v28 = vadd.f32 %v4307_v21, %v4259_v26 }
 0x549   :  { %v4332_v40 = vmax.f32 %v4308_v28, 0.0 }
 0x54d   :  { %v4263_v15 = vpop.f32.mrf.mxu2 }
 0x54e   :  { %v4309_v54 = vpop.f32.mrf.mxu3  ;;  %v4264_v41 = vadd.f32 %v9791_v55, %v4263_v15 }
 0x54f   :  { %v4310_v57 = vadd.f32 %v4309_v54, %v4261_v53 }
 0x551   :  { %v4333_v2 = vmax.f32 %v4310_v57, 0.0 }
 0x553   :  { %v4343_v18 = vpack.c.bf16 %v4333_v2, %v4332_v40 }
 0x555   :  { %6289 = vmatmul.msk.bf16.gmra.mxu0 %vm4402_vm4, %v4343_v18  ;;  %v4265_v31 = vpop.f32.mrf.mxu2 }
 0x556   :  { %v4312_v38 = vpop.f32.mrf.mxu3  ;;  %v4266_v46 = vadd.f32 %v9791_v55, %v4265_v31 }
 0x557   :  { %v4313_v20 = vadd.f32 %v4312_v38, %v4264_v41 }
 0x559   :  { %v4334_v10 = vmax.f32 %v4313_v20, 0.0 }
 0x55d   :  { %v4268_v19 = vpop.f32.mrf.mxu2 }
 0x55e   :  { %v4314_v14 = vpop.f32.mrf.mxu3  ;;  %v4269_v59 = vadd.f32 %v9791_v55, %v4268_v19 }
 0x55f   :  { %v4315_v58 = vadd.f32 %v4314_v14, %v4266_v46 }
 0x561   :  { %v4335_v22 = vmax.f32 %v4315_v58, 0.0 }
 0x563   :  { %v4344_v9 = vpack.c.bf16 %v4335_v22, %v4334_v10 }
 0x565   :  { %6290 = vmatmul.msk.bf16.gmra.mxu0 %vm4402_vm4, %v4344_v9  ;;  %v4270_v61 = vpop.f32.mrf.mxu2 }
 0x566   :  { %v4317_v5 = vpop.f32.mrf.mxu3  ;;  %v4271_v8 = vadd.f32 %v9791_v55, %v4270_v61 }
 0x567   :  { %v4318_v7 = vadd.f32 %v4317_v5, %v4269_v59 }
 0x569   :  { %v4336_v37 = vmax.f32 %v4318_v7, 0.0 }
 0x56e   :  { %v4319_v33 = vpop.f32.mrf.mxu3 }
 0x56f   :  { %v4320_v25 = vadd.f32 %v4319_v33, %v4271_v8  ;;  %v9853_v8 = vld [vmem:[%s9886_s12] ss:$0 sm:$0xff]  ;;  %s6691_s12 = smov [#allocation2]  }
 0x570   :  { %s4704_s3 = sshll.u32 %s6691_s12, 4  ;;  %s4705_s3 = int_to_ptr.vmem [resolvable:$true] %s4704_s3 }
 0x571   :  { %v4337_v42 = vmax.f32 %v4320_v25, 0.0 }
 0x573   :  { %v4345_v36 = vpack.c.bf16 %v4337_v42, %v4336_v37 }
 0x575   :  { %6291 = vmatmul.msk.bf16.vlgmr.msra.gmra.mxu2 %vm4402_vm4, %v4345_v36 }
 0x582   :  { %v4440_v56 = vpop.f32.mrf.mxu0 }
 0x583   :  { %v4441_v4 = vadd.f32 %v6663_v62, %v4440_v56 }
 0x585   :  { %v4480_v63 = vmax.f32 %v4441_v4, 0.0 }
 0x58a   :  { %v4442_v6 = vpop.f32.mrf.mxu0 }
 0x58b   :  { %v4443_v16 = vadd.f32 %v6663_v62, %v4442_v6 }
 0x58d   :  { %v4481_v27 = vmax.f32 %v4443_v16, 0.0 }
 0x58f   :  { %v4496_v32 = vpack.c.bf16 %v4481_v27, %v4480_v63 }
 0x591   :  { %6316 = vmatmul.msk.bf16.vlgmr.msrb.gmra.mxu1 %vm4402_vm4, %v4496_v32 }
 0x592   :  { %v4445_v55 = vpop.f32.mrf.mxu0 }
 0x593   :  { %v4446_v49 = vadd.f32 %v6663_v62, %v4445_v55 }
 0x595   :  { %v4482_v3 = vmax.f32 %v4446_v49, 0.0 }
 0x59a   :  { %v4447_v43 = vpop.f32.mrf.mxu0 }
 0x59b   :  { %v4448_v60 = vadd.f32 %v6663_v62, %v4447_v43 }
 0x59d   :  { %v4483_v39 = vmax.f32 %v4448_v60, 0.0 }
 0x59f   :  { %v4497_v47 = vpack.c.bf16 %v4483_v39, %v4482_v3 }
 0x5a1   :  { %6317 = vmatmul.msk.bf16.gmra.mxu1 %vm4402_vm4, %v4497_v47 }
 0x5a2   :  { %v4450_v23 = vpop.f32.mrf.mxu0 }
 0x5a3   :  { %v4451_v48 = vadd.f32 %v6663_v62, %v4450_v23 }
 0x5a5   :  { %v4484_v30 = vmax.f32 %v4451_v48, 0.0 }
 0x5aa   :  { %v4452_v24 = vpop.f32.mrf.mxu0 }
 0x5ab   :  { %v4453_v11 = vadd.f32 %v6663_v62, %v4452_v24 }
 0x5ad   :  { %v4485_v45 = vmax.f32 %v4453_v11, 0.0 }
 0x5af   :  { %v4498_v44 = vpack.c.bf16 %v4485_v45, %v4484_v30 }
 0x5b1   :  { %6318 = vmatmul.msk.bf16.gmra.mxu1 %vm4402_vm4, %v4498_v44 }
 0x5b2   :  { %v4455_v29 = vpop.f32.mrf.mxu0 }
 0x5b3   :  { %v4456_v34 = vadd.f32 %v6663_v62, %v4455_v29 }
 0x5b5   :  { %v4486_v50 = vmax.f32 %v4456_v34, 0.0 }
 0x5ba   :  { %v4457_v12 = vpop.f32.mrf.mxu0 }
 0x5bb   :  { %v4458_v35 = vadd.f32 %v6663_v62, %v4457_v12 }
 0x5bd   :  { %v4487_v52 = vmax.f32 %v4458_v35, 0.0 }
 0x5bf   :  { %v4499_v17 = vpack.c.bf16 %v4487_v52, %v4486_v50 }
 0x5c1   :  { %6319 = vmatmul.msk.bf16.gmra.mxu1 %vm4402_vm4, %v4499_v17 }
 0x5c2   :  { %v4460_v1 = vpop.f32.mrf.mxu0 }
 0x5c3   :  { %v4461_v0 = vadd.f32 %v6663_v62, %v4460_v1 }
 0x5c5   :  { %v4488_v15 = vmax.f32 %v4461_v0, 0.0 }
 0x5ca   :  { %v4462_v21 = vpop.f32.mrf.mxu0 }
 0x5cb   :  { %v4463_v26 = vadd.f32 %v6663_v62, %v4462_v21 }
 0x5cd   :  { %v4489_v53 = vmax.f32 %v4463_v26, 0.0 }
 0x5cf   :  { %v4500_v28 = vpack.c.bf16 %v4489_v53, %v4488_v15 }
 0x5d1   :  { %6320 = vmatmul.msk.bf16.gmra.mxu1 %vm4402_vm4, %v4500_v28 }
 0x5d2   :  { %v4465_v54 = vpop.f32.mrf.mxu0 }
 0x5d3   :  { %v4466_v57 = vadd.f32 %v6663_v62, %v4465_v54 }
 0x5d5   :  { %v4490_v18 = vmax.f32 %v4466_v57, 0.0 }
 0x5da   :  { %v4467_v40 = vpop.f32.mrf.mxu0 }
 0x5db   :  { %v4468_v2 = vadd.f32 %v6663_v62, %v4467_v40 }
 0x5dd   :  { %v4491_v13 = vmax.f32 %v4468_v2, 0.0 }
 0x5df   :  { %v4501_v31 = vpack.c.bf16 %v4491_v13, %v4490_v18 }
 0x5e1   :  { %6321 = vmatmul.msk.bf16.gmra.mxu1 %vm4402_vm4, %v4501_v31 }
 0x5e2   :  { %v4470_v38 = vpop.f32.mrf.mxu0 }
 0x5e3   :  { %v4471_v41 = vadd.f32 %v6663_v62, %v4470_v38 }
 0x5e5   :  { %v4492_v14 = vmax.f32 %v4471_v41, 0.0 }
 0x5ea   :  { %v4472_v46 = vpop.f32.mrf.mxu0 }
 0x5eb   :  { %v4473_v20 = vadd.f32 %v6663_v62, %v4472_v46 }
 0x5ed   :  { %v4493_v58 = vmax.f32 %v4473_v20, 0.0 }
 0x5ef   :  { %v4502_v19 = vpack.c.bf16 %v4493_v58, %v4492_v14 }
 0x5f1   :  { %6322 = vmatmul.msk.bf16.gmra.mxu1 %vm4402_vm4, %v4502_v19 }
 0x5f8   :  { %v4475_v10 = vpop.f32.mrf.mxu2 }
 0x5f9   :  { %v4476_v22 = vadd.f32 %v6663_v62, %v4475_v10 }
 0x5fb   :  { %v4494_v5 = vmax.f32 %v4476_v22, 0.0 }
 0x600   :  { %v4477_v9 = vpop.f32.mrf.mxu2 }
 0x601   :  { %v4478_v51 = vadd.f32 %v6663_v62, %v4477_v9 }
 0x603   :  { %v4495_v61 = vmax.f32 %v4478_v51, 0.0 }
 0x605   :  { %v4503_v59 = vpack.c.bf16 %v4495_v61, %v4494_v5 }
 0x607   :  { %6323 = vmatmul.msk.bf16.gmra.mxu1 %vm4402_vm4, %v4503_v59 }
 0x60e   :  { %v4596_v7 = vpop.f32.mrf.mxu1 }
 0x60f   :  { %v4597_v33 = vadd.f32 %v9853_v8, %v4596_v7 }
 0x611   :  { %vm4636_vm5 = vcmp.ge.f32.partialorder %v4597_v33, 0.0  ;;  %v4652_v25 = vmul.f32 0.01, %v4597_v33 }
 0x613   :  { %v4668_v37 = vsel %vm4636_vm5, %v4597_v33, %v4652_v25 }
 0x614   :  { %4684 = vst [vmem:[#allocation2] sm:$0xff] %v4668_v37 }
 0x616   :  { %v4598_v42 = vpop.f32.mrf.mxu1 }
 0x617   :  { %v4599_v36 = vadd.f32 %v9853_v8, %v4598_v42 }
 0x619   :  { %vm4637_vm6 = vcmp.ge.f32.partialorder %v4599_v36, 0.0  ;;  %v4653_v56 = vmul.f32 0.01, %v4599_v36 }
 0x61b   :  { %v4669_v62 = vsel %vm4637_vm6, %v4599_v36, %v4653_v56 }
 0x61c   :  { %4685 = vst [vmem:[#allocation2 + $0x8] sm:$0xff] %v4669_v62 }
 0x61e   :  { %v4601_v4 = vpop.f32.mrf.mxu1 }
 0x61f   :  { %v4602_v6 = vadd.f32 %v9853_v8, %v4601_v4 }
 0x621   :  { %vm4638_vm7 = vcmp.ge.f32.partialorder %v4602_v6, 0.0  ;;  %v4654_v16 = vmul.f32 0.01, %v4602_v6 }
 0x623   :  { %v4670_v63 = vsel %vm4638_vm7, %v4602_v6, %v4654_v16 }
 0x624   :  { %4686 = vst [vmem:[#allocation2 + $0x10] sm:$0xff] %v4670_v63 }
 0x626   :  { %v4603_v27 = vpop.f32.mrf.mxu1 }
 0x627   :  { %v4604_v32 = vadd.f32 %v9853_v8, %v4603_v27 }
 0x629   :  { %vm4639_vm8 = vcmp.ge.f32.partialorder %v4604_v32, 0.0  ;;  %v4655_v55 = vmul.f32 0.01, %v4604_v32 }
 0x62b   :  { %v4671_v49 = vsel %vm4639_vm8, %v4604_v32, %v4655_v55 }
 0x62c   :  { %4687 = vst [vmem:[#allocation2 + $0x18] sm:$0xff] %v4671_v49 }
 0x62e   :  { %v4606_v43 = vpop.f32.mrf.mxu1 }
 0x62f   :  { %v4607_v60 = vadd.f32 %v9853_v8, %v4606_v43 }
 0x631   :  { %vm4640_vm9 = vcmp.ge.f32.partialorder %v4607_v60, 0.0  ;;  %v4656_v3 = vmul.f32 0.01, %v4607_v60 }
 0x633   :  { %v4672_v39 = vsel %vm4640_vm9, %v4607_v60, %v4656_v3 }
 0x634   :  { %4688 = vst [vmem:[#allocation2 + $0x20] sm:$0xff] %v4672_v39 }
 0x636   :  { %v4608_v47 = vpop.f32.mrf.mxu1 }
 0x637   :  { %v4609_v23 = vadd.f32 %v9853_v8, %v4608_v47 }
 0x639   :  { %vm4641_vm10 = vcmp.ge.f32.partialorder %v4609_v23, 0.0  ;;  %v4657_v48 = vmul.f32 0.01, %v4609_v23 }
 0x63b   :  { %v4673_v24 = vsel %vm4641_vm10, %v4609_v23, %v4657_v48 }
 0x63c   :  { %4689 = vst [vmem:[#allocation2 + $0x28] sm:$0xff] %v4673_v24 }
 0x63e   :  { %v4611_v11 = vpop.f32.mrf.mxu1 }
 0x63f   :  { %v4612_v30 = vadd.f32 %v9853_v8, %v4611_v11 }
 0x641   :  { %vm4642_vm11 = vcmp.ge.f32.partialorder %v4612_v30, 0.0  ;;  %v4658_v45 = vmul.f32 0.01, %v4612_v30 }
 0x643   :  { %v4674_v44 = vsel %vm4642_vm11, %v4612_v30, %v4658_v45 }
 0x644   :  { %4690 = vst [vmem:[#allocation2 + $0x30] sm:$0xff] %v4674_v44 }
 0x646   :  { %v4613_v29 = vpop.f32.mrf.mxu1 }
 0x647   :  { %v4614_v34 = vadd.f32 %v9853_v8, %v4613_v29 }
 0x649   :  { %vm4643_vm12 = vcmp.ge.f32.partialorder %v4614_v34, 0.0  ;;  %v4659_v12 = vmul.f32 0.01, %v4614_v34 }
 0x64b   :  { %v4675_v35 = vsel %vm4643_vm12, %v4614_v34, %v4659_v12 }
 0x64c   :  { %4691 = vst [vmem:[#allocation2 + $0x38] sm:$0xff] %v4675_v35 }
 0x64e   :  { %v4616_v50 = vpop.f32.mrf.mxu1 }
 0x64f   :  { %v4617_v52 = vadd.f32 %v9853_v8, %v4616_v50 }
 0x651   :  { %vm4644_vm13 = vcmp.ge.f32.partialorder %v4617_v52, 0.0  ;;  %v4660_v17 = vmul.f32 0.01, %v4617_v52 }
 0x653   :  { %v4676_v1 = vsel %vm4644_vm13, %v4617_v52, %v4660_v17 }
 0x654   :  { %4692 = vst [vmem:[#allocation2 + $0x40] sm:$0xff] %v4676_v1 }
 0x656   :  { %v4618_v0 = vpop.f32.mrf.mxu1 }
 0x657   :  { %v4619_v21 = vadd.f32 %v9853_v8, %v4618_v0 }
 0x659   :  { %vm4645_vm14 = vcmp.ge.f32.partialorder %v4619_v21, 0.0  ;;  %v4661_v26 = vmul.f32 0.01, %v4619_v21 }
 0x65b   :  { %v4677_v15 = vsel %vm4645_vm14, %v4619_v21, %v4661_v26 }
 0x65c   :  { %4693 = vst [vmem:[#allocation2 + $0x48] sm:$0xff] %v4677_v15 }
 0x65e   :  { %v4621_v53 = vpop.f32.mrf.mxu1 }
 0x65f   :  { %v4622_v28 = vadd.f32 %v9853_v8, %v4621_v53 }
 0x661   :  { %vm4646_vm15 = vcmp.ge.f32.partialorder %v4622_v28, 0.0  ;;  %v4662_v54 = vmul.f32 0.01, %v4622_v28 }
 0x663   :  { %v4678_v57 = vsel %vm4646_vm15, %v4622_v28, %v4662_v54 }
 0x664   :  { %4694 = vst [vmem:[#allocation2 + $0x50] sm:$0xff] %v4678_v57 }
 0x666   :  { %v4623_v40 = vpop.f32.mrf.mxu1 }
 0x667   :  { %v4624_v2 = vadd.f32 %v9853_v8, %v4623_v40 }
 0x669   :  { %vm4647_vm0 = vcmp.ge.f32.partialorder %v4624_v2, 0.0  ;;  %v4663_v18 = vmul.f32 0.01, %v4624_v2 }
 0x66b   :  { %v4679_v13 = vsel %vm4647_vm0, %v4624_v2, %v4663_v18 }
 0x66c   :  { %4695 = vst [vmem:[#allocation2 + $0x58] sm:$0xff] %v4679_v13 }
 0x66e   :  { %v4626_v31 = vpop.f32.mrf.mxu1 }
 0x66f   :  { %v4627_v38 = vadd.f32 %v9853_v8, %v4626_v31 }
 0x671   :  { %vm4648_vm1 = vcmp.ge.f32.partialorder %v4627_v38, 0.0  ;;  %v4664_v41 = vmul.f32 0.01, %v4627_v38 }
 0x673   :  { %v4680_v46 = vsel %vm4648_vm1, %v4627_v38, %v4664_v41 }
 0x674   :  { %4696 = vst [vmem:[#allocation2 + $0x60] sm:$0xff] %v4680_v46 }
 0x676   :  { %v4628_v20 = vpop.f32.mrf.mxu1 }
 0x677   :  { %v4629_v14 = vadd.f32 %v9853_v8, %v4628_v20 }
 0x679   :  { %vm4649_vm2 = vcmp.ge.f32.partialorder %v4629_v14, 0.0  ;;  %v4665_v58 = vmul.f32 0.01, %v4629_v14 }
 0x67b   :  { %v4681_v19 = vsel %vm4649_vm2, %v4629_v14, %v4665_v58 }
 0x67c   :  { %4697 = vst [vmem:[#allocation2 + $0x68] sm:$0xff] %v4681_v19 }
 0x684   :  { %v4631_v10 = vpop.f32.mrf.mxu1 }
 0x685   :  { %v4632_v22 = vadd.f32 %v9853_v8, %v4631_v10 }
 0x687   :  { %vm4650_vm3 = vcmp.ge.f32.partialorder %v4632_v22, 0.0  ;;  %v4666_v9 = vmul.f32 0.01, %v4632_v22 }
 0x689   :  { %v4682_v51 = vsel %vm4650_vm3, %v4632_v22, %v4666_v9 }
 0x68a   :  { %4698 = vst [vmem:[#allocation2 + $0x70] sm:$0xff] %v4682_v51 }
 0x68c   :  { %v4633_v5 = vpop.f32.mrf.mxu1 }
 0x68d   :  { %v4634_v61 = vadd.f32 %v9853_v8, %v4633_v5 }
 0x68f   :  { %vm4651_vm4 = vcmp.ge.f32.partialorder %v4634_v61, 0.0  ;;  %v4667_v59 = vmul.f32 0.01, %v4634_v61 }
 0x691   :  { %v4683_v7 = vsel %vm4651_vm4, %v4634_v61, %v4667_v59 }
 0x692   :  { %4699 = vst [vmem:[#allocation2 + $0x78] sm:$0xff] %v4683_v7 }
 0x693   :  { %4712 = dma.vmem_to_hbm [thread:$0]  %s4705_s3, 2048, %s4707_s5, [#allocation3], %s6692_s27, %s6692_s27, %s6693_s28  }
 0x694   :  { %6689 = dma.done.wait [#allocation3], 2048  }
 0x695   :  { %6690 = vsyncadd [#allocation3], 4294965248 }
 0x696   :  { %4717 = vsyncpa [#allocation3], 1 }

</bundles_post_ra>
